<compile_context>
chip_gen: v7x
topology: tpu7x:2x2x1
jax: 0.10.0
libtpu: 0.0.40
codegen_flags: <defaults>
</compile_context>

<pallas_src>
import functools

import jax
import jax.numpy as jnp
from jax import lax
from jax.experimental import pallas as pl
from jax.experimental.pallas import tpu as pltpu


# ---------------------------------------------------------------------------
# Pallas kernels
# ---------------------------------------------------------------------------
def _stem_bn_relu_kernel(w_ref, z_ref, g_ref, b_ref, o_ref, *, eps, c_out, spatial):
    # GEMM: (spatial*C_out, nz) @ (nz, N) -> f32 (spatial*C_out, N); rows ordered (s, co).
    y = jnp.dot(w_ref[...], z_ref[...], preferred_element_type=jnp.float32)
    n = y.shape[1]
    blocks = [y[i * c_out:(i + 1) * c_out, :] for i in range(spatial)]

    # One-pass BN stats per channel over (spatial, N).
    tot = blocks[0]
    totsq = blocks[0] * blocks[0]
    for b in blocks[1:]:
        tot = tot + b
        totsq = totsq + b * b
    inv_cnt = 1.0 / float(spatial * n)
    mean = jnp.sum(tot, axis=1, keepdims=True) * inv_cnt               # (C_out, 1)
    var = jnp.sum(totsq, axis=1, keepdims=True) * inv_cnt - mean * mean
    scale = g_ref[...] * lax.rsqrt(var + eps)
    shift = b_ref[...] - mean * scale

    for i in range(spatial):
        o_ref[i * c_out:(i + 1) * c_out, :] = jnp.maximum(
            blocks[i] * scale + shift, 0.0).astype(o_ref.dtype)


def _up_bn_relu_kernel(w_ref, a_ref, g_ref, b_ref, o_ref, *, eps):
    # Sub-pixel decomposition: 4 parity GEMMs (C_out, K2) @ (K2, M), K2 = C_in*2*2.
    m = a_ref.shape[2]
    ys = [jnp.dot(w_ref[p], a_ref[p], preferred_element_type=jnp.float32)
          for p in range(4)]

    # One-pass BN stats (sum / sum-of-squares) per channel over all 4 parities x M.
    s1 = ys[0] * 0.0
    s1 = sum((jnp.sum(y, axis=1, keepdims=True) for y in ys),
             jnp.zeros((ys[0].shape[0], 1), jnp.float32))
    s2 = sum((jnp.sum(y * y, axis=1, keepdims=True) for y in ys),
             jnp.zeros((ys[0].shape[0], 1), jnp.float32))
    inv_cnt = 1.0 / float(4 * m)
    mean = s1 * inv_cnt
    var = s2 * inv_cnt - mean * mean
    scale = g_ref[...] * lax.rsqrt(var + eps)
    shift = b_ref[...] - mean * scale

    for p in range(4):
        o_ref[:, p * m:(p + 1) * m] = jnp.maximum(
            ys[p] * scale + shift, 0.0).astype(o_ref.dtype)


def _up_tanh_kernel(w_ref, a_ref, o_ref):
    # One parity / lane-tile per grid step; C_out padded to 8 sublanes.
    y = jnp.dot(w_ref[0], a_ref[0], preferred_element_type=jnp.float32)
    o_ref[0] = jnp.tanh(y).astype(o_ref.dtype)


# ---------------------------------------------------------------------------
# pallas_call wrappers
# ---------------------------------------------------------------------------
def pallas_stem_bn_relu(w1m, zt, gamma, beta, eps, out_dtype):
    rows, nz = w1m.shape                      # rows = 16 * C_out
    _, n = zt.shape
    c_out = gamma.shape[0]
    kern = functools.partial(_stem_bn_relu_kernel, eps=eps, c_out=c_out,
                             spatial=rows // c_out)
    return pl.pallas_call(
        kern,
        out_shape=jax.ShapeDtypeStruct((rows, n), out_dtype),
        grid=(1,),
        in_specs=[
            pl.BlockSpec((rows, nz), lambda i: (0, 0)),
            pl.BlockSpec((nz, n), lambda i: (0, 0)),
            pl.BlockSpec((c_out, 1), lambda i: (0, 0)),
            pl.BlockSpec((c_out, 1), lambda i: (0, 0)),
        ],
        out_specs=pl.BlockSpec((rows, n), lambda i: (0, 0)),
        compiler_params=pltpu.CompilerParams(dimension_semantics=("arbitrary",)),
    )(w1m, zt, gamma, beta)


def pallas_up_bn_relu(w4, a4, gamma, beta, eps, out_dtype):
    _, c_out, k2 = w4.shape
    _, _, m = a4.shape
    kern = functools.partial(_up_bn_relu_kernel, eps=eps)
    return pl.pallas_call(
        kern,
        out_shape=jax.ShapeDtypeStruct((c_out, 4 * m), out_dtype),
        grid=(1,),
        in_specs=[
            pl.BlockSpec((4, c_out, k2), lambda i: (0, 0, 0)),
            pl.BlockSpec((4, k2, m), lambda i: (0, 0, 0)),
            pl.BlockSpec((c_out, 1), lambda i: (0, 0)),
            pl.BlockSpec((c_out, 1), lambda i: (0, 0)),
        ],
        out_specs=pl.BlockSpec((c_out, 4 * m), lambda i: (0, 0)),
        compiler_params=pltpu.CompilerParams(dimension_semantics=("arbitrary",)),
    )(w4, a4, gamma, beta)


def _pick_lane_tile(m, cap=4096):
    # Largest divisor of m that is <=cap and a multiple of 128 (keeps VMEM bounded as
    # batch grows while staying a single block at the small demo sizes).
    if m <= cap:
        return m
    for t in range(cap - (cap % 128), 127, -128):
        if m % t == 0:
            return t
    return m


def pallas_up_tanh(w4, a4, out_dtype):
    _, c_pad, k2 = w4.shape
    _, _, m = a4.shape
    tm = _pick_lane_tile(m)
    nj = m // tm
    return pl.pallas_call(
        _up_tanh_kernel,
        out_shape=jax.ShapeDtypeStruct((4, c_pad, m), out_dtype),
        grid=(4, nj),
        in_specs=[
            pl.BlockSpec((1, c_pad, k2), lambda p, j: (p, 0, 0)),
            pl.BlockSpec((1, k2, tm), lambda p, j: (p, 0, j)),
        ],
        out_specs=pl.BlockSpec((1, c_pad, tm), lambda p, j: (p, 0, j)),
        compiler_params=pltpu.CompilerParams(
            dimension_semantics=("parallel", "parallel")),
    )(w4, a4)


# ---------------------------------------------------------------------------
# One-time weight packing (hoisted out of the forward pass)
# ---------------------------------------------------------------------------
def prep_stem_weight(wt):
    # wt: (nz, C_out, 4, 4) -> (16*C_out, nz) with rows ordered (kh, kw, co).
    nz, c_out = wt.shape[0], wt.shape[1]
    return wt.transpose(2, 3, 1, 0).reshape(16 * c_out, nz).astype(jnp.bfloat16)


def prep_up_weight(wt, pad_rows_to=None):
    # wt: PyTorch ConvTranspose2d weight (C_in, C_out, 4, 4), stride 2, pad 1.
    # Sub-pixel tap subsets: W_sub[(ph,pw)][co, (ci,dh,dw)] = wt[ci, co, 3-ph-2dh, 3-pw-2dw].
    c_in, c_out = wt.shape[0], wt.shape[1]
    mats = []
    for ph in range(2):
        for pw in range(2):
            sub = wt[:, :, 3 - ph::-2, 3 - pw::-2]            # (C_in, C_out, 2, 2)
            mats.append(sub.transpose(1, 0, 2, 3).reshape(c_out, c_in * 4))
    w4 = jnp.stack(mats, axis=0)                              # (4, C_out, C_in*4)
    if pad_rows_to is not None and pad_rows_to > c_out:
        w4 = jnp.pad(w4, ((0, 0), (0, pad_rows_to - c_out), (0, 0)))
    return w4.astype(jnp.bfloat16)


def init_params(key, nz=16, nc=3, ngf=8):
    ks = jax.random.split(key, 9)

    def convt_w(k, cin, cout):
        # DCGAN init N(0, 0.02); PyTorch ConvTranspose2d layout (C_in, C_out, kH, kW).
        return 0.02 * jax.random.normal(k, (cin, cout, 4, 4), jnp.float32)

    def bn_g(k, c):
        return (1.0 + 0.02 * jax.random.normal(k, (c,), jnp.float32)).reshape(c, 1)

    def bn_b(c):
        return jnp.zeros((c, 1), jnp.float32)

    c1, c2, c3, c4 = ngf * 8, ngf * 4, ngf * 2, ngf
    return {
        "w1m": prep_stem_weight(convt_w(ks[0], nz, c1)),
        "g1": bn_g(ks[1], c1), "b1": bn_b(c1),
        "w2m": prep_up_weight(convt_w(ks[2], c1, c2)),
        "g2": bn_g(ks[3], c2), "b2": bn_b(c2),
        "w3m": prep_up_weight(convt_w(ks[4], c2, c3)),
        "g3": bn_g(ks[5], c3), "b3": bn_b(c3),
        "w4m": prep_up_weight(convt_w(ks[6], c3, c4)),
        "g4": bn_g(ks[7], c4), "b4": bn_b(c4),
        "w5m": prep_up_weight(convt_w(ks[8], c4, nc), pad_rows_to=8),
    }


# ---------------------------------------------------------------------------
# Forward pass (feature maps carried bf16 in CNHW layout)
# ---------------------------------------------------------------------------
def _subpixel_a(x_cnhw):
    # A^T[(ph,pw)] with rows (c_in, dh, dw) and columns (n, q, r); dense, no dilation zeros.
    c, n, h, w = x_cnhw.shape
    xp = jnp.pad(x_cnhw, ((0, 0), (0, 0), (1, 1), (1, 1)))
    parts = []
    for ph in range(2):
        for pw in range(2):
            taps = [xp[:, :, ph + dh:ph + dh + h, pw + dw:pw + dw + w]
                    for dh in range(2) for dw in range(2)]
            a = jnp.stack(taps, axis=1)                       # (C_in, 4, N, H, W)
            parts.append(a.reshape(c * 4, n * h * w))
    return jnp.stack(parts, axis=0)                           # (4, C_in*4, M)


def generator_forward(params, z_nchw, nc=3):
    eps = 1e-5
    n = z_nchw.shape[0]
    zt = z_nchw.reshape(n, -1).T.astype(jnp.bfloat16)          # (nz, N)

    # Layer 1: 1x1 -> 4x4 (direct GEMM, fused BN+ReLU).
    c1 = params["g1"].shape[0]
    y1 = pallas_stem_bn_relu(params["w1m"], zt, params["g1"], params["b1"],
                             eps, jnp.bfloat16)                # (16*C1, N), rows (kh,kw,co)
    x = y1.reshape(4, 4, c1, n).transpose(2, 3, 0, 1)          # CNHW (C1, N, 4, 4)

    # Layers 2-4: stride-2 upsample via sub-pixel GEMMs, fused BN+ReLU.
    for idx in (2, 3, 4):
        g, b = params[f"g{idx}"], params[f"b{idx}"]
        c_out = g.shape[0]
        _, nb, h, w = x.shape
        a4 = _subpixel_a(x)                                    # (4, C_in*4, N*H*W) bf16
        y = pallas_up_bn_relu(params[f"w{idx}m"], a4, g, b, eps, jnp.bfloat16)
        x = (y.reshape(c_out, 2, 2, nb, h, w)
               .transpose(0, 3, 4, 1, 5, 2)
               .reshape(c_out, nb, 2 * h, 2 * w))              # CNHW

    # Layer 5: stride-2 upsample + Tanh head (C_out padded to 8 rows inside the kernel).
    _, nb, h, w = x.shape
    a4 = _subpixel_a(x)
    y = pallas_up_tanh(params["w5m"], a4, jnp.float32)         # (4, 8, N*H*W)
    out = (y[:, :nc, :].reshape(2, 2, nc, nb, h, w)
             .transpose(2, 3, 4, 0, 5, 1)
             .reshape(nc, nb, 2 * h, 2 * w))                   # CNHW (nc, N, 64, 64)
    return jnp.transpose(out, (1, 0, 2, 3))                    # NCHW


if __name__ == "__main__":
    key = jax.random.PRNGKey(0)
    k_param, k_z = jax.random.split(key)

    nz, nc, ngf, batch = 16, 3, 8, 2
    params = init_params(k_param, nz=nz, nc=nc, ngf=ngf)
    z = jax.random.normal(k_z, (batch, nz, 1, 1), jnp.float32)

    fwd = jax.jit(generator_forward)
    out = jax.block_until_ready(fwd(params, z))

    assert out.shape == (batch, nc, 64, 64), out.shape
    assert bool(jnp.all(jnp.isfinite(out)))
    assert bool(jnp.all((out >= -1.0) & (out <= 1.0)))   # tanh output range
    print("KERNEL_OK")
</pallas_src>

<mosaic_0001>
module attributes {stable_mosaic.version = 11 : i64} {
  func.func @_stem_bn_relu_kernel(%arg0: i32, %arg1: memref<1024x16xbf16, #tpu.memory_space<vmem>>, %arg2: memref<16x2xbf16, #tpu.memory_space<vmem>>, %arg3: memref<64x1xf32, #tpu.memory_space<vmem>>, %arg4: memref<64x1xf32, #tpu.memory_space<vmem>>, %arg5: memref<1024x2xbf16, #tpu.memory_space<vmem>>) attributes {dimension_semantics = [#tpu.dimension_semantics<arbitrary>], iteration_bounds = array<i64: 1>, scalar_prefetch = 0 : i64, scratch_operands = 0 : i64, tpu.core_type = #tpu.core_type<tc>, window_params = [{pipeline_mode = #tpu.pipeline_mode<synchronous>, transform_indices = @transform_0, window_bounds = array<i64: 1024, 16>}, {pipeline_mode = #tpu.pipeline_mode<synchronous>, transform_indices = @transform_1, window_bounds = array<i64: 16, 2>}, {pipeline_mode = #tpu.pipeline_mode<synchronous>, transform_indices = @transform_2, window_bounds = array<i64: 64, 1>}, {pipeline_mode = #tpu.pipeline_mode<synchronous>, transform_indices = @transform_3, window_bounds = array<i64: 64, 1>}, {pipeline_mode = #tpu.pipeline_mode<synchronous>, transform_indices = @transform_4, window_bounds = array<i64: 1024, 2>}]} {
    %c0 = arith.constant 0 : index
    %c0_0 = arith.constant 0 : index
    %0 = vector.load %arg1[%c0, %c0_0] : memref<1024x16xbf16, #tpu.memory_space<vmem>>, vector<1024x16xbf16>
    %c0_1 = arith.constant 0 : index
    %c0_2 = arith.constant 0 : index
    %1 = vector.load %arg2[%c0_1, %c0_2] : memref<16x2xbf16, #tpu.memory_space<vmem>>, vector<16x2xbf16>
    %cst = arith.constant dense<0.000000e+00> : vector<1024x2xf32>
    %2 = tpu.matmul %0, %1, %cst {dimension_numbers = #tpu.dot_dimension_numbers<[1], [0], [0], [1], [0, 0, 1, 1], [], []>} : vector<1024x16xbf16>, vector<16x2xbf16>, vector<1024x2xf32> -> vector<1024x2xf32>
    %3 = vector.extract_strided_slice %2 {offsets = [0, 0], sizes = [64, 2], strides = [1, 1]} : vector<1024x2xf32> to vector<64x2xf32>
    %4 = vector.extract_strided_slice %2 {offsets = [64, 0], sizes = [64, 2], strides = [1, 1]} : vector<1024x2xf32> to vector<64x2xf32>
    %5 = vector.extract_strided_slice %2 {offsets = [128, 0], sizes = [64, 2], strides = [1, 1]} : vector<1024x2xf32> to vector<64x2xf32>
    %6 = vector.extract_strided_slice %2 {offsets = [192, 0], sizes = [64, 2], strides = [1, 1]} : vector<1024x2xf32> to vector<64x2xf32>
    %7 = vector.extract_strided_slice %2 {offsets = [256, 0], sizes = [64, 2], strides = [1, 1]} : vector<1024x2xf32> to vector<64x2xf32>
    %8 = vector.extract_strided_slice %2 {offsets = [320, 0], sizes = [64, 2], strides = [1, 1]} : vector<1024x2xf32> to vector<64x2xf32>
    %9 = vector.extract_strided_slice %2 {offsets = [384, 0], sizes = [64, 2], strides = [1, 1]} : vector<1024x2xf32> to vector<64x2xf32>
    %10 = vector.extract_strided_slice %2 {offsets = [448, 0], sizes = [64, 2], strides = [1, 1]} : vector<1024x2xf32> to vector<64x2xf32>
    %11 = vector.extract_strided_slice %2 {offsets = [512, 0], sizes = [64, 2], strides = [1, 1]} : vector<1024x2xf32> to vector<64x2xf32>
    %12 = vector.extract_strided_slice %2 {offsets = [576, 0], sizes = [64, 2], strides = [1, 1]} : vector<1024x2xf32> to vector<64x2xf32>
    %13 = vector.extract_strided_slice %2 {offsets = [640, 0], sizes = [64, 2], strides = [1, 1]} : vector<1024x2xf32> to vector<64x2xf32>
    %14 = vector.extract_strided_slice %2 {offsets = [704, 0], sizes = [64, 2], strides = [1, 1]} : vector<1024x2xf32> to vector<64x2xf32>
    %15 = vector.extract_strided_slice %2 {offsets = [768, 0], sizes = [64, 2], strides = [1, 1]} : vector<1024x2xf32> to vector<64x2xf32>
    %16 = vector.extract_strided_slice %2 {offsets = [832, 0], sizes = [64, 2], strides = [1, 1]} : vector<1024x2xf32> to vector<64x2xf32>
    %17 = vector.extract_strided_slice %2 {offsets = [896, 0], sizes = [64, 2], strides = [1, 1]} : vector<1024x2xf32> to vector<64x2xf32>
    %18 = vector.extract_strided_slice %2 {offsets = [960, 0], sizes = [64, 2], strides = [1, 1]} : vector<1024x2xf32> to vector<64x2xf32>
    %19 = arith.mulf %3, %3 : vector<64x2xf32>
    %20 = arith.addf %3, %4 : vector<64x2xf32>
    %21 = arith.mulf %4, %4 : vector<64x2xf32>
    %22 = arith.addf %19, %21 : vector<64x2xf32>
    %23 = arith.addf %20, %5 : vector<64x2xf32>
    %24 = arith.mulf %5, %5 : vector<64x2xf32>
    %25 = arith.addf %22, %24 : vector<64x2xf32>
    %26 = arith.addf %23, %6 : vector<64x2xf32>
    %27 = arith.mulf %6, %6 : vector<64x2xf32>
    %28 = arith.addf %25, %27 : vector<64x2xf32>
    %29 = arith.addf %26, %7 : vector<64x2xf32>
    %30 = arith.mulf %7, %7 : vector<64x2xf32>
    %31 = arith.addf %28, %30 : vector<64x2xf32>
    %32 = arith.addf %29, %8 : vector<64x2xf32>
    %33 = arith.mulf %8, %8 : vector<64x2xf32>
    %34 = arith.addf %31, %33 : vector<64x2xf32>
    %35 = arith.addf %32, %9 : vector<64x2xf32>
    %36 = arith.mulf %9, %9 : vector<64x2xf32>
    %37 = arith.addf %34, %36 : vector<64x2xf32>
    %38 = arith.addf %35, %10 : vector<64x2xf32>
    %39 = arith.mulf %10, %10 : vector<64x2xf32>
    %40 = arith.addf %37, %39 : vector<64x2xf32>
    %41 = arith.addf %38, %11 : vector<64x2xf32>
    %42 = arith.mulf %11, %11 : vector<64x2xf32>
    %43 = arith.addf %40, %42 : vector<64x2xf32>
    %44 = arith.addf %41, %12 : vector<64x2xf32>
    %45 = arith.mulf %12, %12 : vector<64x2xf32>
    %46 = arith.addf %43, %45 : vector<64x2xf32>
    %47 = arith.addf %44, %13 : vector<64x2xf32>
    %48 = arith.mulf %13, %13 : vector<64x2xf32>
    %49 = arith.addf %46, %48 : vector<64x2xf32>
    %50 = arith.addf %47, %14 : vector<64x2xf32>
    %51 = arith.mulf %14, %14 : vector<64x2xf32>
    %52 = arith.addf %49, %51 : vector<64x2xf32>
    %53 = arith.addf %50, %15 : vector<64x2xf32>
    %54 = arith.mulf %15, %15 : vector<64x2xf32>
    %55 = arith.addf %52, %54 : vector<64x2xf32>
    %56 = arith.addf %53, %16 : vector<64x2xf32>
    %57 = arith.mulf %16, %16 : vector<64x2xf32>
    %58 = arith.addf %55, %57 : vector<64x2xf32>
    %59 = arith.addf %56, %17 : vector<64x2xf32>
    %60 = arith.mulf %17, %17 : vector<64x2xf32>
    %61 = arith.addf %58, %60 : vector<64x2xf32>
    %62 = arith.addf %59, %18 : vector<64x2xf32>
    %63 = arith.mulf %18, %18 : vector<64x2xf32>
    %64 = arith.addf %61, %63 : vector<64x2xf32>
    %cst_3 = arith.constant dense<0.000000e+00> : vector<64xf32>
    %65 = vector.multi_reduction <add>, %62, %cst_3 [1] : vector<64x2xf32> to vector<64xf32>
    %66 = vector.shape_cast %65 : vector<64xf32> to vector<64x1xf32>
    %cst_4 = arith.constant 3.125000e-02 : f32
    %67 = vector.broadcast %cst_4 : f32 to vector<64x1xf32>
    %68 = arith.mulf %66, %67 : vector<64x1xf32>
    %cst_5 = arith.constant dense<0.000000e+00> : vector<64xf32>
    %69 = vector.multi_reduction <add>, %64, %cst_5 [1] : vector<64x2xf32> to vector<64xf32>
    %70 = vector.shape_cast %69 : vector<64xf32> to vector<64x1xf32>
    %cst_6 = arith.constant 3.125000e-02 : f32
    %71 = vector.broadcast %cst_6 : f32 to vector<64x1xf32>
    %72 = arith.mulf %70, %71 : vector<64x1xf32>
    %73 = arith.mulf %68, %68 : vector<64x1xf32>
    %74 = arith.subf %72, %73 : vector<64x1xf32>
    %c0_7 = arith.constant 0 : index
    %c0_8 = arith.constant 0 : index
    %75 = vector.load %arg3[%c0_7, %c0_8] : memref<64x1xf32, #tpu.memory_space<vmem>>, vector<64x1xf32>
    %cst_9 = arith.constant 9.99999974E-6 : f32
    %76 = vector.broadcast %cst_9 : f32 to vector<64x1xf32>
    %77 = arith.addf %74, %76 : vector<64x1xf32>
    %78 = math.rsqrt %77 : vector<64x1xf32>
    %79 = arith.mulf %75, %78 : vector<64x1xf32>
    %c0_10 = arith.constant 0 : index
    %c0_11 = arith.constant 0 : index
    %80 = vector.load %arg4[%c0_10, %c0_11] : memref<64x1xf32, #tpu.memory_space<vmem>>, vector<64x1xf32>
    %81 = arith.mulf %68, %79 : vector<64x1xf32>
    %82 = arith.subf %80, %81 : vector<64x1xf32>
    %83 = vector.broadcast %79 : vector<64x1xf32> to vector<64x2xf32>
    %84 = arith.mulf %3, %83 : vector<64x2xf32>
    %85 = vector.broadcast %82 : vector<64x1xf32> to vector<64x2xf32>
    %86 = arith.addf %84, %85 : vector<64x2xf32>
    %cst_12 = arith.constant 0.000000e+00 : f32
    %87 = vector.broadcast %cst_12 : f32 to vector<64x2xf32>
    %88 = arith.maximumf %86, %87 : vector<64x2xf32>
    %89 = arith.truncf %88 : vector<64x2xf32> to vector<64x2xbf16>
    %c0_13 = arith.constant 0 : index
    %c0_14 = arith.constant 0 : index
    %90 = vector.load %arg5[%c0_13, %c0_14] : memref<1024x2xbf16, #tpu.memory_space<vmem>>, vector<64x2xbf16>
    tpu.vector_store %arg5[%c0_13, %c0_14], %89 {strides = array<i32>} : memref<1024x2xbf16, #tpu.memory_space<vmem>>, vector<64x2xbf16>,
    %91 = vector.broadcast %79 : vector<64x1xf32> to vector<64x2xf32>
    %92 = arith.mulf %4, %91 : vector<64x2xf32>
    %93 = vector.broadcast %82 : vector<64x1xf32> to vector<64x2xf32>
    %94 = arith.addf %92, %93 : vector<64x2xf32>
    %cst_15 = arith.constant 0.000000e+00 : f32
    %95 = vector.broadcast %cst_15 : f32 to vector<64x2xf32>
    %96 = arith.maximumf %94, %95 : vector<64x2xf32>
    %97 = arith.truncf %96 : vector<64x2xf32> to vector<64x2xbf16>
    %c64 = arith.constant 64 : index
    %c0_16 = arith.constant 0 : index
    %98 = vector.load %arg5[%c64, %c0_16] : memref<1024x2xbf16, #tpu.memory_space<vmem>>, vector<64x2xbf16>
    tpu.vector_store %arg5[%c64, %c0_16], %97 {strides = array<i32>} : memref<1024x2xbf16, #tpu.memory_space<vmem>>, vector<64x2xbf16>,
    %99 = vector.broadcast %79 : vector<64x1xf32> to vector<64x2xf32>
    %100 = arith.mulf %5, %99 : vector<64x2xf32>
    %101 = vector.broadcast %82 : vector<64x1xf32> to vector<64x2xf32>
    %102 = arith.addf %100, %101 : vector<64x2xf32>
    %cst_17 = arith.constant 0.000000e+00 : f32
    %103 = vector.broadcast %cst_17 : f32 to vector<64x2xf32>
    %104 = arith.maximumf %102, %103 : vector<64x2xf32>
    %105 = arith.truncf %104 : vector<64x2xf32> to vector<64x2xbf16>
    %c128 = arith.constant 128 : index
    %c0_18 = arith.constant 0 : index
    %106 = vector.load %arg5[%c128, %c0_18] : memref<1024x2xbf16, #tpu.memory_space<vmem>>, vector<64x2xbf16>
    tpu.vector_store %arg5[%c128, %c0_18], %105 {strides = array<i32>} : memref<1024x2xbf16, #tpu.memory_space<vmem>>, vector<64x2xbf16>,
    %107 = vector.broadcast %79 : vector<64x1xf32> to vector<64x2xf32>
    %108 = arith.mulf %6, %107 : vector<64x2xf32>
    %109 = vector.broadcast %82 : vector<64x1xf32> to vector<64x2xf32>
    %110 = arith.addf %108, %109 : vector<64x2xf32>
    %cst_19 = arith.constant 0.000000e+00 : f32
    %111 = vector.broadcast %cst_19 : f32 to vector<64x2xf32>
    %112 = arith.maximumf %110, %111 : vector<64x2xf32>
    %113 = arith.truncf %112 : vector<64x2xf32> to vector<64x2xbf16>
    %c192 = arith.constant 192 : index
    %c0_20 = arith.constant 0 : index
    %114 = vector.load %arg5[%c192, %c0_20] : memref<1024x2xbf16, #tpu.memory_space<vmem>>, vector<64x2xbf16>
    tpu.vector_store %arg5[%c192, %c0_20], %113 {strides = array<i32>} : memref<1024x2xbf16, #tpu.memory_space<vmem>>, vector<64x2xbf16>,
    %115 = vector.broadcast %79 : vector<64x1xf32> to vector<64x2xf32>
    %116 = arith.mulf %7, %115 : vector<64x2xf32>
    %117 = vector.broadcast %82 : vector<64x1xf32> to vector<64x2xf32>
    %118 = arith.addf %116, %117 : vector<64x2xf32>
    %cst_21 = arith.constant 0.000000e+00 : f32
    %119 = vector.broadcast %cst_21 : f32 to vector<64x2xf32>
    %120 = arith.maximumf %118, %119 : vector<64x2xf32>
    %121 = arith.truncf %120 : vector<64x2xf32> to vector<64x2xbf16>
    %c256 = arith.constant 256 : index
    %c0_22 = arith.constant 0 : index
    %122 = vector.load %arg5[%c256, %c0_22] : memref<1024x2xbf16, #tpu.memory_space<vmem>>, vector<64x2xbf16>
    tpu.vector_store %arg5[%c256, %c0_22], %121 {strides = array<i32>} : memref<1024x2xbf16, #tpu.memory_space<vmem>>, vector<64x2xbf16>,
    %123 = vector.broadcast %79 : vector<64x1xf32> to vector<64x2xf32>
    %124 = arith.mulf %8, %123 : vector<64x2xf32>
    %125 = vector.broadcast %82 : vector<64x1xf32> to vector<64x2xf32>
    %126 = arith.addf %124, %125 : vector<64x2xf32>
    %cst_23 = arith.constant 0.000000e+00 : f32
    %127 = vector.broadcast %cst_23 : f32 to vector<64x2xf32>
    %128 = arith.maximumf %126, %127 : vector<64x2xf32>
    %129 = arith.truncf %128 : vector<64x2xf32> to vector<64x2xbf16>
    %c320 = arith.constant 320 : index
    %c0_24 = arith.constant 0 : index
    %130 = vector.load %arg5[%c320, %c0_24] : memref<1024x2xbf16, #tpu.memory_space<vmem>>, vector<64x2xbf16>
    tpu.vector_store %arg5[%c320, %c0_24], %129 {strides = array<i32>} : memref<1024x2xbf16, #tpu.memory_space<vmem>>, vector<64x2xbf16>,
    %131 = vector.broadcast %79 : vector<64x1xf32> to vector<64x2xf32>
    %132 = arith.mulf %9, %131 : vector<64x2xf32>
    %133 = vector.broadcast %82 : vector<64x1xf32> to vector<64x2xf32>
    %134 = arith.addf %132, %133 : vector<64x2xf32>
    %cst_25 = arith.constant 0.000000e+00 : f32
    %135 = vector.broadcast %cst_25 : f32 to vector<64x2xf32>
    %136 = arith.maximumf %134, %135 : vector<64x2xf32>
    %137 = arith.truncf %136 : vector<64x2xf32> to vector<64x2xbf16>
    %c384 = arith.constant 384 : index
    %c0_26 = arith.constant 0 : index
    %138 = vector.load %arg5[%c384, %c0_26] : memref<1024x2xbf16, #tpu.memory_space<vmem>>, vector<64x2xbf16>
    tpu.vector_store %arg5[%c384, %c0_26], %137 {strides = array<i32>} : memref<1024x2xbf16, #tpu.memory_space<vmem>>, vector<64x2xbf16>,
    %139 = vector.broadcast %79 : vector<64x1xf32> to vector<64x2xf32>
    %140 = arith.mulf %10, %139 : vector<64x2xf32>
    %141 = vector.broadcast %82 : vector<64x1xf32> to vector<64x2xf32>
    %142 = arith.addf %140, %141 : vector<64x2xf32>
    %cst_27 = arith.constant 0.000000e+00 : f32
    %143 = vector.broadcast %cst_27 : f32 to vector<64x2xf32>
    %144 = arith.maximumf %142, %143 : vector<64x2xf32>
    %145 = arith.truncf %144 : vector<64x2xf32> to vector<64x2xbf16>
    %c448 = arith.constant 448 : index
    %c0_28 = arith.constant 0 : index
    %146 = vector.load %arg5[%c448, %c0_28] : memref<1024x2xbf16, #tpu.memory_space<vmem>>, vector<64x2xbf16>
    tpu.vector_store %arg5[%c448, %c0_28], %145 {strides = array<i32>} : memref<1024x2xbf16, #tpu.memory_space<vmem>>, vector<64x2xbf16>,
    %147 = vector.broadcast %79 : vector<64x1xf32> to vector<64x2xf32>
    %148 = arith.mulf %11, %147 : vector<64x2xf32>
    %149 = vector.broadcast %82 : vector<64x1xf32> to vector<64x2xf32>
    %150 = arith.addf %148, %149 : vector<64x2xf32>
    %cst_29 = arith.constant 0.000000e+00 : f32
    %151 = vector.broadcast %cst_29 : f32 to vector<64x2xf32>
    %152 = arith.maximumf %150, %151 : vector<64x2xf32>
    %153 = arith.truncf %152 : vector<64x2xf32> to vector<64x2xbf16>
    %c512 = arith.constant 512 : index
    %c0_30 = arith.constant 0 : index
    %154 = vector.load %arg5[%c512, %c0_30] : memref<1024x2xbf16, #tpu.memory_space<vmem>>, vector<64x2xbf16>
    tpu.vector_store %arg5[%c512, %c0_30], %153 {strides = array<i32>} : memref<1024x2xbf16, #tpu.memory_space<vmem>>, vector<64x2xbf16>,
    %155 = vector.broadcast %79 : vector<64x1xf32> to vector<64x2xf32>
    %156 = arith.mulf %12, %155 : vector<64x2xf32>
    %157 = vector.broadcast %82 : vector<64x1xf32> to vector<64x2xf32>
    %158 = arith.addf %156, %157 : vector<64x2xf32>
    %cst_31 = arith.constant 0.000000e+00 : f32
    %159 = vector.broadcast %cst_31 : f32 to vector<64x2xf32>
    %160 = arith.maximumf %158, %159 : vector<64x2xf32>
    %161 = arith.truncf %160 : vector<64x2xf32> to vector<64x2xbf16>
    %c576 = arith.constant 576 : index
    %c0_32 = arith.constant 0 : index
    %162 = vector.load %arg5[%c576, %c0_32] : memref<1024x2xbf16, #tpu.memory_space<vmem>>, vector<64x2xbf16>
    tpu.vector_store %arg5[%c576, %c0_32], %161 {strides = array<i32>} : memref<1024x2xbf16, #tpu.memory_space<vmem>>, vector<64x2xbf16>,
    %163 = vector.broadcast %79 : vector<64x1xf32> to vector<64x2xf32>
    %164 = arith.mulf %13, %163 : vector<64x2xf32>
    %165 = vector.broadcast %82 : vector<64x1xf32> to vector<64x2xf32>
    %166 = arith.addf %164, %165 : vector<64x2xf32>
    %cst_33 = arith.constant 0.000000e+00 : f32
    %167 = vector.broadcast %cst_33 : f32 to vector<64x2xf32>
    %168 = arith.maximumf %166, %167 : vector<64x2xf32>
    %169 = arith.truncf %168 : vector<64x2xf32> to vector<64x2xbf16>
    %c640 = arith.constant 640 : index
    %c0_34 = arith.constant 0 : index
    %170 = vector.load %arg5[%c640, %c0_34] : memref<1024x2xbf16, #tpu.memory_space<vmem>>, vector<64x2xbf16>
    tpu.vector_store %arg5[%c640, %c0_34], %169 {strides = array<i32>} : memref<1024x2xbf16, #tpu.memory_space<vmem>>, vector<64x2xbf16>,
    %171 = vector.broadcast %79 : vector<64x1xf32> to vector<64x2xf32>
    %172 = arith.mulf %14, %171 : vector<64x2xf32>
    %173 = vector.broadcast %82 : vector<64x1xf32> to vector<64x2xf32>
    %174 = arith.addf %172, %173 : vector<64x2xf32>
    %cst_35 = arith.constant 0.000000e+00 : f32
    %175 = vector.broadcast %cst_35 : f32 to vector<64x2xf32>
    %176 = arith.maximumf %174, %175 : vector<64x2xf32>
    %177 = arith.truncf %176 : vector<64x2xf32> to vector<64x2xbf16>
    %c704 = arith.constant 704 : index
    %c0_36 = arith.constant 0 : index
    %178 = vector.load %arg5[%c704, %c0_36] : memref<1024x2xbf16, #tpu.memory_space<vmem>>, vector<64x2xbf16>
    tpu.vector_store %arg5[%c704, %c0_36], %177 {strides = array<i32>} : memref<1024x2xbf16, #tpu.memory_space<vmem>>, vector<64x2xbf16>,
    %179 = vector.broadcast %79 : vector<64x1xf32> to vector<64x2xf32>
    %180 = arith.mulf %15, %179 : vector<64x2xf32>
    %181 = vector.broadcast %82 : vector<64x1xf32> to vector<64x2xf32>
    %182 = arith.addf %180, %181 : vector<64x2xf32>
    %cst_37 = arith.constant 0.000000e+00 : f32
    %183 = vector.broadcast %cst_37 : f32 to vector<64x2xf32>
    %184 = arith.maximumf %182, %183 : vector<64x2xf32>
    %185 = arith.truncf %184 : vector<64x2xf32> to vector<64x2xbf16>
    %c768 = arith.constant 768 : index
    %c0_38 = arith.constant 0 : index
    %186 = vector.load %arg5[%c768, %c0_38] : memref<1024x2xbf16, #tpu.memory_space<vmem>>, vector<64x2xbf16>
    tpu.vector_store %arg5[%c768, %c0_38], %185 {strides = array<i32>} : memref<1024x2xbf16, #tpu.memory_space<vmem>>, vector<64x2xbf16>,
    %187 = vector.broadcast %79 : vector<64x1xf32> to vector<64x2xf32>
    %188 = arith.mulf %16, %187 : vector<64x2xf32>
    %189 = vector.broadcast %82 : vector<64x1xf32> to vector<64x2xf32>
    %190 = arith.addf %188, %189 : vector<64x2xf32>
    %cst_39 = arith.constant 0.000000e+00 : f32
    %191 = vector.broadcast %cst_39 : f32 to vector<64x2xf32>
    %192 = arith.maximumf %190, %191 : vector<64x2xf32>
    %193 = arith.truncf %192 : vector<64x2xf32> to vector<64x2xbf16>
    %c832 = arith.constant 832 : index
    %c0_40 = arith.constant 0 : index
    %194 = vector.load %arg5[%c832, %c0_40] : memref<1024x2xbf16, #tpu.memory_space<vmem>>, vector<64x2xbf16>
    tpu.vector_store %arg5[%c832, %c0_40], %193 {strides = array<i32>} : memref<1024x2xbf16, #tpu.memory_space<vmem>>, vector<64x2xbf16>,
    %195 = vector.broadcast %79 : vector<64x1xf32> to vector<64x2xf32>
    %196 = arith.mulf %17, %195 : vector<64x2xf32>
    %197 = vector.broadcast %82 : vector<64x1xf32> to vector<64x2xf32>
    %198 = arith.addf %196, %197 : vector<64x2xf32>
    %cst_41 = arith.constant 0.000000e+00 : f32
    %199 = vector.broadcast %cst_41 : f32 to vector<64x2xf32>
    %200 = arith.maximumf %198, %199 : vector<64x2xf32>
    %201 = arith.truncf %200 : vector<64x2xf32> to vector<64x2xbf16>
    %c896 = arith.constant 896 : index
    %c0_42 = arith.constant 0 : index
    %202 = vector.load %arg5[%c896, %c0_42] : memref<1024x2xbf16, #tpu.memory_space<vmem>>, vector<64x2xbf16>
    tpu.vector_store %arg5[%c896, %c0_42], %201 {strides = array<i32>} : memref<1024x2xbf16, #tpu.memory_space<vmem>>, vector<64x2xbf16>,
    %203 = vector.broadcast %79 : vector<64x1xf32> to vector<64x2xf32>
    %204 = arith.mulf %18, %203 : vector<64x2xf32>
    %205 = vector.broadcast %82 : vector<64x1xf32> to vector<64x2xf32>
    %206 = arith.addf %204, %205 : vector<64x2xf32>
    %cst_43 = arith.constant 0.000000e+00 : f32
    %207 = vector.broadcast %cst_43 : f32 to vector<64x2xf32>
    %208 = arith.maximumf %206, %207 : vector<64x2xf32>
    %209 = arith.truncf %208 : vector<64x2xf32> to vector<64x2xbf16>
    %c960 = arith.constant 960 : index
    %c0_44 = arith.constant 0 : index
    %210 = vector.load %arg5[%c960, %c0_44] : memref<1024x2xbf16, #tpu.memory_space<vmem>>, vector<64x2xbf16>
    tpu.vector_store %arg5[%c960, %c0_44], %209 {strides = array<i32>} : memref<1024x2xbf16, #tpu.memory_space<vmem>>, vector<64x2xbf16>,
    return
  }
  func.func @transform_0(%arg0: i32) -> (i32, i32) {
    %c0_i32 = arith.constant 0 : i32
    %c0_i32_0 = arith.constant 0 : i32
    %c0_i32_1 = arith.constant 0 : i32
    return %c0_i32, %c0_i32_0 : i32, i32
  }
  func.func @transform_1(%arg0: i32) -> (i32, i32) {
    %c0_i32 = arith.constant 0 : i32
    %c0_i32_0 = arith.constant 0 : i32
    %c0_i32_1 = arith.constant 0 : i32
    return %c0_i32, %c0_i32_0 : i32, i32
  }
  func.func @transform_2(%arg0: i32) -> (i32, i32) {
    %c0_i32 = arith.constant 0 : i32
    %c0_i32_0 = arith.constant 0 : i32
    %c0_i32_1 = arith.constant 0 : i32
    return %c0_i32, %c0_i32_0 : i32, i32
  }
  func.func @transform_3(%arg0: i32) -> (i32, i32) {
    %c0_i32 = arith.constant 0 : i32
    %c0_i32_0 = arith.constant 0 : i32
    %c0_i32_1 = arith.constant 0 : i32
    return %c0_i32, %c0_i32_0 : i32, i32
  }
  func.func @transform_4(%arg0: i32) -> (i32, i32) {
    %c0_i32 = arith.constant 0 : i32
    %c0_i32_0 = arith.constant 0 : i32
    %c0_i32_1 = arith.constant 0 : i32
    return %c0_i32, %c0_i32_0 : i32, i32
  }
}

module attributes {stable_mosaic.version = 11 : i64} {
  func.func @_up_bn_relu_kernel(%arg0: i32, %arg1: memref<4x32x256xbf16, #tpu.memory_space<vmem>>, %arg2: memref<4x256x32xbf16, #tpu.memory_space<vmem>>, %arg3: memref<32x1xf32, #tpu.memory_space<vmem>>, %arg4: memref<32x1xf32, #tpu.memory_space<vmem>>, %arg5: memref<32x128xbf16, #tpu.memory_space<vmem>>) attributes {dimension_semantics = [#tpu.dimension_semantics<arbitrary>], iteration_bounds = array<i64: 1>, scalar_prefetch = 0 : i64, scratch_operands = 0 : i64, tpu.core_type = #tpu.core_type<tc>, window_params = [{pipeline_mode = #tpu.pipeline_mode<synchronous>, transform_indices = @transform_0, window_bounds = array<i64: 4, 32, 256>}, {pipeline_mode = #tpu.pipeline_mode<synchronous>, transform_indices = @transform_1, window_bounds = array<i64: 4, 256, 32>}, {pipeline_mode = #tpu.pipeline_mode<synchronous>, transform_indices = @transform_2, window_bounds = array<i64: 32, 1>}, {pipeline_mode = #tpu.pipeline_mode<synchronous>, transform_indices = @transform_3, window_bounds = array<i64: 32, 1>}, {pipeline_mode = #tpu.pipeline_mode<synchronous>, transform_indices = @transform_4, window_bounds = array<i64: 32, 128>}]} {
    %c0 = arith.constant 0 : index
    %c0_0 = arith.constant 0 : index
    %c0_1 = arith.constant 0 : index
    %0 = vector.load %arg1[%c0, %c0_0, %c0_1] : memref<4x32x256xbf16, #tpu.memory_space<vmem>>, vector<1x32x256xbf16>
    %1 = vector.shape_cast %0 : vector<1x32x256xbf16> to vector<32x256xbf16>
    %c0_2 = arith.constant 0 : index
    %c0_3 = arith.constant 0 : index
    %c0_4 = arith.constant 0 : index
    %2 = vector.load %arg2[%c0_2, %c0_3, %c0_4] : memref<4x256x32xbf16, #tpu.memory_space<vmem>>, vector<1x256x32xbf16>
    %3 = vector.shape_cast %2 : vector<1x256x32xbf16> to vector<256x32xbf16>
    %cst = arith.constant dense<0.000000e+00> : vector<32x32xf32>
    %4 = tpu.matmul %1, %3, %cst {dimension_numbers = #tpu.dot_dimension_numbers<[1], [0], [0], [1], [0, 0, 1, 1], [], []>} : vector<32x256xbf16>, vector<256x32xbf16>, vector<32x32xf32> -> vector<32x32xf32>
    %c1 = arith.constant 1 : index
    %c0_5 = arith.constant 0 : index
    %c0_6 = arith.constant 0 : index
    %5 = vector.load %arg1[%c1, %c0_5, %c0_6] : memref<4x32x256xbf16, #tpu.memory_space<vmem>>, vector<1x32x256xbf16>
    %6 = vector.shape_cast %5 : vector<1x32x256xbf16> to vector<32x256xbf16>
    %c1_7 = arith.constant 1 : index
    %c0_8 = arith.constant 0 : index
    %c0_9 = arith.constant 0 : index
    %7 = vector.load %arg2[%c1_7, %c0_8, %c0_9] : memref<4x256x32xbf16, #tpu.memory_space<vmem>>, vector<1x256x32xbf16>
    %8 = vector.shape_cast %7 : vector<1x256x32xbf16> to vector<256x32xbf16>
    %cst_10 = arith.constant dense<0.000000e+00> : vector<32x32xf32>
    %9 = tpu.matmul %6, %8, %cst_10 {dimension_numbers = #tpu.dot_dimension_numbers<[1], [0], [0], [1], [0, 0, 1, 1], [], []>} : vector<32x256xbf16>, vector<256x32xbf16>, vector<32x32xf32> -> vector<32x32xf32>
    %c2 = arith.constant 2 : index
    %c0_11 = arith.constant 0 : index
    %c0_12 = arith.constant 0 : index
    %10 = vector.load %arg1[%c2, %c0_11, %c0_12] : memref<4x32x256xbf16, #tpu.memory_space<vmem>>, vector<1x32x256xbf16>
    %11 = vector.shape_cast %10 : vector<1x32x256xbf16> to vector<32x256xbf16>
    %c2_13 = arith.constant 2 : index
    %c0_14 = arith.constant 0 : index
    %c0_15 = arith.constant 0 : index
    %12 = vector.load %arg2[%c2_13, %c0_14, %c0_15] : memref<4x256x32xbf16, #tpu.memory_space<vmem>>, vector<1x256x32xbf16>
    %13 = vector.shape_cast %12 : vector<1x256x32xbf16> to vector<256x32xbf16>
    %cst_16 = arith.constant dense<0.000000e+00> : vector<32x32xf32>
    %14 = tpu.matmul %11, %13, %cst_16 {dimension_numbers = #tpu.dot_dimension_numbers<[1], [0], [0], [1], [0, 0, 1, 1], [], []>} : vector<32x256xbf16>, vector<256x32xbf16>, vector<32x32xf32> -> vector<32x32xf32>
    %c3 = arith.constant 3 : index
    %c0_17 = arith.constant 0 : index
    %c0_18 = arith.constant 0 : index
    %15 = vector.load %arg1[%c3, %c0_17, %c0_18] : memref<4x32x256xbf16, #tpu.memory_space<vmem>>, vector<1x32x256xbf16>
    %16 = vector.shape_cast %15 : vector<1x32x256xbf16> to vector<32x256xbf16>
    %c3_19 = arith.constant 3 : index
    %c0_20 = arith.constant 0 : index
    %c0_21 = arith.constant 0 : index
    %17 = vector.load %arg2[%c3_19, %c0_20, %c0_21] : memref<4x256x32xbf16, #tpu.memory_space<vmem>>, vector<1x256x32xbf16>
    %18 = vector.shape_cast %17 : vector<1x256x32xbf16> to vector<256x32xbf16>
    %cst_22 = arith.constant dense<0.000000e+00> : vector<32x32xf32>
    %19 = tpu.matmul %16, %18, %cst_22 {dimension_numbers = #tpu.dot_dimension_numbers<[1], [0], [0], [1], [0, 0, 1, 1], [], []>} : vector<32x256xbf16>, vector<256x32xbf16>, vector<32x32xf32> -> vector<32x32xf32>
    %cst_23 = arith.constant 0.000000e+00 : f32
    %20 = vector.broadcast %cst_23 : f32 to vector<32x1xf32>
    %cst_24 = arith.constant dense<0.000000e+00> : vector<32xf32>
    %21 = vector.multi_reduction <add>, %4, %cst_24 [1] : vector<32x32xf32> to vector<32xf32>
    %22 = vector.shape_cast %21 : vector<32xf32> to vector<32x1xf32>
    %23 = arith.addf %20, %22 : vector<32x1xf32>
    %cst_25 = arith.constant dense<0.000000e+00> : vector<32xf32>
    %24 = vector.multi_reduction <add>, %9, %cst_25 [1] : vector<32x32xf32> to vector<32xf32>
    %25 = vector.shape_cast %24 : vector<32xf32> to vector<32x1xf32>
    %26 = arith.addf %23, %25 : vector<32x1xf32>
    %cst_26 = arith.constant dense<0.000000e+00> : vector<32xf32>
    %27 = vector.multi_reduction <add>, %14, %cst_26 [1] : vector<32x32xf32> to vector<32xf32>
    %28 = vector.shape_cast %27 : vector<32xf32> to vector<32x1xf32>
    %29 = arith.addf %26, %28 : vector<32x1xf32>
    %cst_27 = arith.constant dense<0.000000e+00> : vector<32xf32>
    %30 = vector.multi_reduction <add>, %19, %cst_27 [1] : vector<32x32xf32> to vector<32xf32>
    %31 = vector.shape_cast %30 : vector<32xf32> to vector<32x1xf32>
    %32 = arith.addf %29, %31 : vector<32x1xf32>
    %cst_28 = arith.constant 0.000000e+00 : f32
    %33 = vector.broadcast %cst_28 : f32 to vector<32x1xf32>
    %34 = arith.mulf %4, %4 : vector<32x32xf32>
    %cst_29 = arith.constant dense<0.000000e+00> : vector<32xf32>
    %35 = vector.multi_reduction <add>, %34, %cst_29 [1] : vector<32x32xf32> to vector<32xf32>
    %36 = vector.shape_cast %35 : vector<32xf32> to vector<32x1xf32>
    %37 = arith.addf %33, %36 : vector<32x1xf32>
    %38 = arith.mulf %9, %9 : vector<32x32xf32>
    %cst_30 = arith.constant dense<0.000000e+00> : vector<32xf32>
    %39 = vector.multi_reduction <add>, %38, %cst_30 [1] : vector<32x32xf32> to vector<32xf32>
    %40 = vector.shape_cast %39 : vector<32xf32> to vector<32x1xf32>
    %41 = arith.addf %37, %40 : vector<32x1xf32>
    %42 = arith.mulf %14, %14 : vector<32x32xf32>
    %cst_31 = arith.constant dense<0.000000e+00> : vector<32xf32>
    %43 = vector.multi_reduction <add>, %42, %cst_31 [1] : vector<32x32xf32> to vector<32xf32>
    %44 = vector.shape_cast %43 : vector<32xf32> to vector<32x1xf32>
    %45 = arith.addf %41, %44 : vector<32x1xf32>
    %46 = arith.mulf %19, %19 : vector<32x32xf32>
    %cst_32 = arith.constant dense<0.000000e+00> : vector<32xf32>
    %47 = vector.multi_reduction <add>, %46, %cst_32 [1] : vector<32x32xf32> to vector<32xf32>
    %48 = vector.shape_cast %47 : vector<32xf32> to vector<32x1xf32>
    %49 = arith.addf %45, %48 : vector<32x1xf32>
    %cst_33 = arith.constant 7.812500e-03 : f32
    %50 = vector.broadcast %cst_33 : f32 to vector<32x1xf32>
    %51 = arith.mulf %32, %50 : vector<32x1xf32>
    %cst_34 = arith.constant 7.812500e-03 : f32
    %52 = vector.broadcast %cst_34 : f32 to vector<32x1xf32>
    %53 = arith.mulf %49, %52 : vector<32x1xf32>
    %54 = arith.mulf %51, %51 : vector<32x1xf32>
    %55 = arith.subf %53, %54 : vector<32x1xf32>
    %c0_35 = arith.constant 0 : index
    %c0_36 = arith.constant 0 : index
    %56 = vector.load %arg3[%c0_35, %c0_36] : memref<32x1xf32, #tpu.memory_space<vmem>>, vector<32x1xf32>
    %cst_37 = arith.constant 9.99999974E-6 : f32
    %57 = vector.broadcast %cst_37 : f32 to vector<32x1xf32>
    %58 = arith.addf %55, %57 : vector<32x1xf32>
    %59 = math.rsqrt %58 : vector<32x1xf32>
    %60 = arith.mulf %56, %59 : vector<32x1xf32>
    %c0_38 = arith.constant 0 : index
    %c0_39 = arith.constant 0 : index
    %61 = vector.load %arg4[%c0_38, %c0_39] : memref<32x1xf32, #tpu.memory_space<vmem>>, vector<32x1xf32>
    %62 = arith.mulf %51, %60 : vector<32x1xf32>
    %63 = arith.subf %61, %62 : vector<32x1xf32>
    %64 = vector.broadcast %60 : vector<32x1xf32> to vector<32x32xf32>
    %65 = arith.mulf %4, %64 : vector<32x32xf32>
    %66 = vector.broadcast %63 : vector<32x1xf32> to vector<32x32xf32>
    %67 = arith.addf %65, %66 : vector<32x32xf32>
    %cst_40 = arith.constant 0.000000e+00 : f32
    %68 = vector.broadcast %cst_40 : f32 to vector<32x32xf32>
    %69 = arith.maximumf %67, %68 : vector<32x32xf32>
    %70 = arith.truncf %69 : vector<32x32xf32> to vector<32x32xbf16>
    %c0_41 = arith.constant 0 : index
    %c0_42 = arith.constant 0 : index
    %71 = vector.load %arg5[%c0_41, %c0_42] : memref<32x128xbf16, #tpu.memory_space<vmem>>, vector<32x32xbf16>
    tpu.vector_store %arg5[%c0_41, %c0_42], %70 {strides = array<i32>} : memref<32x128xbf16, #tpu.memory_space<vmem>>, vector<32x32xbf16>,
    %72 = vector.broadcast %60 : vector<32x1xf32> to vector<32x32xf32>
    %73 = arith.mulf %9, %72 : vector<32x32xf32>
    %74 = vector.broadcast %63 : vector<32x1xf32> to vector<32x32xf32>
    %75 = arith.addf %73, %74 : vector<32x32xf32>
    %cst_43 = arith.constant 0.000000e+00 : f32
    %76 = vector.broadcast %cst_43 : f32 to vector<32x32xf32>
    %77 = arith.maximumf %75, %76 : vector<32x32xf32>
    %78 = arith.truncf %77 : vector<32x32xf32> to vector<32x32xbf16>
    %c0_44 = arith.constant 0 : index
    %c32 = arith.constant 32 : index
    %79 = vector.load %arg5[%c0_44, %c32] : memref<32x128xbf16, #tpu.memory_space<vmem>>, vector<32x32xbf16>
    tpu.vector_store %arg5[%c0_44, %c32], %78 {strides = array<i32>} : memref<32x128xbf16, #tpu.memory_space<vmem>>, vector<32x32xbf16>,
    %80 = vector.broadcast %60 : vector<32x1xf32> to vector<32x32xf32>
    %81 = arith.mulf %14, %80 : vector<32x32xf32>
    %82 = vector.broadcast %63 : vector<32x1xf32> to vector<32x32xf32>
    %83 = arith.addf %81, %82 : vector<32x32xf32>
    %cst_45 = arith.constant 0.000000e+00 : f32
    %84 = vector.broadcast %cst_45 : f32 to vector<32x32xf32>
    %85 = arith.maximumf %83, %84 : vector<32x32xf32>
    %86 = arith.truncf %85 : vector<32x32xf32> to vector<32x32xbf16>
    %c0_46 = arith.constant 0 : index
    %c64 = arith.constant 64 : index
    %87 = vector.load %arg5[%c0_46, %c64] : memref<32x128xbf16, #tpu.memory_space<vmem>>, vector<32x32xbf16>
    tpu.vector_store %arg5[%c0_46, %c64], %86 {strides = array<i32>} : memref<32x128xbf16, #tpu.memory_space<vmem>>, vector<32x32xbf16>,
    %88 = vector.broadcast %60 : vector<32x1xf32> to vector<32x32xf32>
    %89 = arith.mulf %19, %88 : vector<32x32xf32>
    %90 = vector.broadcast %63 : vector<32x1xf32> to vector<32x32xf32>
    %91 = arith.addf %89, %90 : vector<32x32xf32>
    %cst_47 = arith.constant 0.000000e+00 : f32
    %92 = vector.broadcast %cst_47 : f32 to vector<32x32xf32>
    %93 = arith.maximumf %91, %92 : vector<32x32xf32>
    %94 = arith.truncf %93 : vector<32x32xf32> to vector<32x32xbf16>
    %c0_48 = arith.constant 0 : index
    %c96 = arith.constant 96 : index
    %95 = vector.load %arg5[%c0_48, %c96] : memref<32x128xbf16, #tpu.memory_space<vmem>>, vector<32x32xbf16>
    tpu.vector_store %arg5[%c0_48, %c96], %94 {strides = array<i32>} : memref<32x128xbf16, #tpu.memory_space<vmem>>, vector<32x32xbf16>,
    return
  }
  func.func @transform_0(%arg0: i32) -> (i32, i32, i32) {
    %c0_i32 = arith.constant 0 : i32
    %c0_i32_0 = arith.constant 0 : i32
    %c0_i32_1 = arith.constant 0 : i32
    %c0_i32_2 = arith.constant 0 : i32
    return %c0_i32, %c0_i32_0, %c0_i32_1 : i32, i32, i32
  }
  func.func @transform_1(%arg0: i32) -> (i32, i32, i32) {
    %c0_i32 = arith.constant 0 : i32
    %c0_i32_0 = arith.constant 0 : i32
    %c0_i32_1 = arith.constant 0 : i32
    %c0_i32_2 = arith.constant 0 : i32
    return %c0_i32, %c0_i32_0, %c0_i32_1 : i32, i32, i32
  }
  func.func @transform_2(%arg0: i32) -> (i32, i32) {
    %c0_i32 = arith.constant 0 : i32
    %c0_i32_0 = arith.constant 0 : i32
    %c0_i32_1 = arith.constant 0 : i32
    return %c0_i32, %c0_i32_0 : i32, i32
  }
  func.func @transform_3(%arg0: i32) -> (i32, i32) {
    %c0_i32 = arith.constant 0 : i32
    %c0_i32_0 = arith.constant 0 : i32
    %c0_i32_1 = arith.constant 0 : i32
    return %c0_i32, %c0_i32_0 : i32, i32
  }
  func.func @transform_4(%arg0: i32) -> (i32, i32) {
    %c0_i32 = arith.constant 0 : i32
    %c0_i32_0 = arith.constant 0 : i32
    %c0_i32_1 = arith.constant 0 : i32
    return %c0_i32, %c0_i32_0 : i32, i32
  }
}

module attributes {stable_mosaic.version = 11 : i64} {
  func.func @_up_bn_relu_kernel(%arg0: i32, %arg1: memref<4x16x128xbf16, #tpu.memory_space<vmem>>, %arg2: memref<4x128x128xbf16, #tpu.memory_space<vmem>>, %arg3: memref<16x1xf32, #tpu.memory_space<vmem>>, %arg4: memref<16x1xf32, #tpu.memory_space<vmem>>, %arg5: memref<16x512xbf16, #tpu.memory_space<vmem>>) attributes {dimension_semantics = [#tpu.dimension_semantics<arbitrary>], iteration_bounds = array<i64: 1>, scalar_prefetch = 0 : i64, scratch_operands = 0 : i64, tpu.core_type = #tpu.core_type<tc>, window_params = [{pipeline_mode = #tpu.pipeline_mode<synchronous>, transform_indices = @transform_0, window_bounds = array<i64: 4, 16, 128>}, {pipeline_mode = #tpu.pipeline_mode<synchronous>, transform_indices = @transform_1, window_bounds = array<i64: 4, 128, 128>}, {pipeline_mode = #tpu.pipeline_mode<synchronous>, transform_indices = @transform_2, window_bounds = array<i64: 16, 1>}, {pipeline_mode = #tpu.pipeline_mode<synchronous>, transform_indices = @transform_3, window_bounds = array<i64: 16, 1>}, {pipeline_mode = #tpu.pipeline_mode<synchronous>, transform_indices = @transform_4, window_bounds = array<i64: 16, 512>}]} {
    %c0 = arith.constant 0 : index
    %c0_0 = arith.constant 0 : index
    %c0_1 = arith.constant 0 : index
    %0 = vector.load %arg1[%c0, %c0_0, %c0_1] : memref<4x16x128xbf16, #tpu.memory_space<vmem>>, vector<1x16x128xbf16>
    %1 = vector.shape_cast %0 : vector<1x16x128xbf16> to vector<16x128xbf16>
    %c0_2 = arith.constant 0 : index
    %c0_3 = arith.constant 0 : index
    %c0_4 = arith.constant 0 : index
    %2 = vector.load %arg2[%c0_2, %c0_3, %c0_4] : memref<4x128x128xbf16, #tpu.memory_space<vmem>>, vector<1x128x128xbf16>
    %3 = vector.shape_cast %2 : vector<1x128x128xbf16> to vector<128x128xbf16>
    %cst = arith.constant dense<0.000000e+00> : vector<16x128xf32>
    %4 = tpu.matmul %1, %3, %cst {dimension_numbers = #tpu.dot_dimension_numbers<[1], [0], [0], [1], [0, 0, 1, 1], [], []>} : vector<16x128xbf16>, vector<128x128xbf16>, vector<16x128xf32> -> vector<16x128xf32>
    %c1 = arith.constant 1 : index
    %c0_5 = arith.constant 0 : index
    %c0_6 = arith.constant 0 : index
    %5 = vector.load %arg1[%c1, %c0_5, %c0_6] : memref<4x16x128xbf16, #tpu.memory_space<vmem>>, vector<1x16x128xbf16>
    %6 = vector.shape_cast %5 : vector<1x16x128xbf16> to vector<16x128xbf16>
    %c1_7 = arith.constant 1 : index
    %c0_8 = arith.constant 0 : index
    %c0_9 = arith.constant 0 : index
    %7 = vector.load %arg2[%c1_7, %c0_8, %c0_9] : memref<4x128x128xbf16, #tpu.memory_space<vmem>>, vector<1x128x128xbf16>
    %8 = vector.shape_cast %7 : vector<1x128x128xbf16> to vector<128x128xbf16>
    %cst_10 = arith.constant dense<0.000000e+00> : vector<16x128xf32>
    %9 = tpu.matmul %6, %8, %cst_10 {dimension_numbers = #tpu.dot_dimension_numbers<[1], [0], [0], [1], [0, 0, 1, 1], [], []>} : vector<16x128xbf16>, vector<128x128xbf16>, vector<16x128xf32> -> vector<16x128xf32>
    %c2 = arith.constant 2 : index
    %c0_11 = arith.constant 0 : index
    %c0_12 = arith.constant 0 : index
    %10 = vector.load %arg1[%c2, %c0_11, %c0_12] : memref<4x16x128xbf16, #tpu.memory_space<vmem>>, vector<1x16x128xbf16>
    %11 = vector.shape_cast %10 : vector<1x16x128xbf16> to vector<16x128xbf16>
    %c2_13 = arith.constant 2 : index
    %c0_14 = arith.constant 0 : index
    %c0_15 = arith.constant 0 : index
    %12 = vector.load %arg2[%c2_13, %c0_14, %c0_15] : memref<4x128x128xbf16, #tpu.memory_space<vmem>>, vector<1x128x128xbf16>
    %13 = vector.shape_cast %12 : vector<1x128x128xbf16> to vector<128x128xbf16>
    %cst_16 = arith.constant dense<0.000000e+00> : vector<16x128xf32>
    %14 = tpu.matmul %11, %13, %cst_16 {dimension_numbers = #tpu.dot_dimension_numbers<[1], [0], [0], [1], [0, 0, 1, 1], [], []>} : vector<16x128xbf16>, vector<128x128xbf16>, vector<16x128xf32> -> vector<16x128xf32>
    %c3 = arith.constant 3 : index
    %c0_17 = arith.constant 0 : index
    %c0_18 = arith.constant 0 : index
    %15 = vector.load %arg1[%c3, %c0_17, %c0_18] : memref<4x16x128xbf16, #tpu.memory_space<vmem>>, vector<1x16x128xbf16>
    %16 = vector.shape_cast %15 : vector<1x16x128xbf16> to vector<16x128xbf16>
    %c3_19 = arith.constant 3 : index
    %c0_20 = arith.constant 0 : index
    %c0_21 = arith.constant 0 : index
    %17 = vector.load %arg2[%c3_19, %c0_20, %c0_21] : memref<4x128x128xbf16, #tpu.memory_space<vmem>>, vector<1x128x128xbf16>
    %18 = vector.shape_cast %17 : vector<1x128x128xbf16> to vector<128x128xbf16>
    %cst_22 = arith.constant dense<0.000000e+00> : vector<16x128xf32>
    %19 = tpu.matmul %16, %18, %cst_22 {dimension_numbers = #tpu.dot_dimension_numbers<[1], [0], [0], [1], [0, 0, 1, 1], [], []>} : vector<16x128xbf16>, vector<128x128xbf16>, vector<16x128xf32> -> vector<16x128xf32>
    %cst_23 = arith.constant 0.000000e+00 : f32
    %20 = vector.broadcast %cst_23 : f32 to vector<16x1xf32>
    %cst_24 = arith.constant dense<0.000000e+00> : vector<16xf32>
    %21 = vector.multi_reduction <add>, %4, %cst_24 [1] : vector<16x128xf32> to vector<16xf32>
    %22 = vector.shape_cast %21 : vector<16xf32> to vector<16x1xf32>
    %23 = arith.addf %20, %22 : vector<16x1xf32>
    %cst_25 = arith.constant dense<0.000000e+00> : vector<16xf32>
    %24 = vector.multi_reduction <add>, %9, %cst_25 [1] : vector<16x128xf32> to vector<16xf32>
    %25 = vector.shape_cast %24 : vector<16xf32> to vector<16x1xf32>
    %26 = arith.addf %23, %25 : vector<16x1xf32>
    %cst_26 = arith.constant dense<0.000000e+00> : vector<16xf32>
    %27 = vector.multi_reduction <add>, %14, %cst_26 [1] : vector<16x128xf32> to vector<16xf32>
    %28 = vector.shape_cast %27 : vector<16xf32> to vector<16x1xf32>
    %29 = arith.addf %26, %28 : vector<16x1xf32>
    %cst_27 = arith.constant dense<0.000000e+00> : vector<16xf32>
    %30 = vector.multi_reduction <add>, %19, %cst_27 [1] : vector<16x128xf32> to vector<16xf32>
    %31 = vector.shape_cast %30 : vector<16xf32> to vector<16x1xf32>
    %32 = arith.addf %29, %31 : vector<16x1xf32>
    %cst_28 = arith.constant 0.000000e+00 : f32
    %33 = vector.broadcast %cst_28 : f32 to vector<16x1xf32>
    %34 = arith.mulf %4, %4 : vector<16x128xf32>
    %cst_29 = arith.constant dense<0.000000e+00> : vector<16xf32>
    %35 = vector.multi_reduction <add>, %34, %cst_29 [1] : vector<16x128xf32> to vector<16xf32>
    %36 = vector.shape_cast %35 : vector<16xf32> to vector<16x1xf32>
    %37 = arith.addf %33, %36 : vector<16x1xf32>
    %38 = arith.mulf %9, %9 : vector<16x128xf32>
    %cst_30 = arith.constant dense<0.000000e+00> : vector<16xf32>
    %39 = vector.multi_reduction <add>, %38, %cst_30 [1] : vector<16x128xf32> to vector<16xf32>
    %40 = vector.shape_cast %39 : vector<16xf32> to vector<16x1xf32>
    %41 = arith.addf %37, %40 : vector<16x1xf32>
    %42 = arith.mulf %14, %14 : vector<16x128xf32>
    %cst_31 = arith.constant dense<0.000000e+00> : vector<16xf32>
    %43 = vector.multi_reduction <add>, %42, %cst_31 [1] : vector<16x128xf32> to vector<16xf32>
    %44 = vector.shape_cast %43 : vector<16xf32> to vector<16x1xf32>
    %45 = arith.addf %41, %44 : vector<16x1xf32>
    %46 = arith.mulf %19, %19 : vector<16x128xf32>
    %cst_32 = arith.constant dense<0.000000e+00> : vector<16xf32>
    %47 = vector.multi_reduction <add>, %46, %cst_32 [1] : vector<16x128xf32> to vector<16xf32>
    %48 = vector.shape_cast %47 : vector<16xf32> to vector<16x1xf32>
    %49 = arith.addf %45, %48 : vector<16x1xf32>
    %cst_33 = arith.constant 0.001953125 : f32
    %50 = vector.broadcast %cst_33 : f32 to vector<16x1xf32>
    %51 = arith.mulf %32, %50 : vector<16x1xf32>
    %cst_34 = arith.constant 0.001953125 : f32
    %52 = vector.broadcast %cst_34 : f32 to vector<16x1xf32>
    %53 = arith.mulf %49, %52 : vector<16x1xf32>
    %54 = arith.mulf %51, %51 : vector<16x1xf32>
    %55 = arith.subf %53, %54 : vector<16x1xf32>
    %c0_35 = arith.constant 0 : index
    %c0_36 = arith.constant 0 : index
    %56 = vector.load %arg3[%c0_35, %c0_36] : memref<16x1xf32, #tpu.memory_space<vmem>>, vector<16x1xf32>
    %cst_37 = arith.constant 9.99999974E-6 : f32
    %57 = vector.broadcast %cst_37 : f32 to vector<16x1xf32>
    %58 = arith.addf %55, %57 : vector<16x1xf32>
    %59 = math.rsqrt %58 : vector<16x1xf32>
    %60 = arith.mulf %56, %59 : vector<16x1xf32>
    %c0_38 = arith.constant 0 : index
    %c0_39 = arith.constant 0 : index
    %61 = vector.load %arg4[%c0_38, %c0_39] : memref<16x1xf32, #tpu.memory_space<vmem>>, vector<16x1xf32>
    %62 = arith.mulf %51, %60 : vector<16x1xf32>
    %63 = arith.subf %61, %62 : vector<16x1xf32>
    %64 = vector.broadcast %60 : vector<16x1xf32> to vector<16x128xf32>
    %65 = arith.mulf %4, %64 : vector<16x128xf32>
    %66 = vector.broadcast %63 : vector<16x1xf32> to vector<16x128xf32>
    %67 = arith.addf %65, %66 : vector<16x128xf32>
    %cst_40 = arith.constant 0.000000e+00 : f32
    %68 = vector.broadcast %cst_40 : f32 to vector<16x128xf32>
    %69 = arith.maximumf %67, %68 : vector<16x128xf32>
    %70 = arith.truncf %69 : vector<16x128xf32> to vector<16x128xbf16>
    %c0_41 = arith.constant 0 : index
    %c0_42 = arith.constant 0 : index
    %71 = vector.load %arg5[%c0_41, %c0_42] : memref<16x512xbf16, #tpu.memory_space<vmem>>, vector<16x128xbf16>
    tpu.vector_store %arg5[%c0_41, %c0_42], %70 {strides = array<i32>} : memref<16x512xbf16, #tpu.memory_space<vmem>>, vector<16x128xbf16>,
    %72 = vector.broadcast %60 : vector<16x1xf32> to vector<16x128xf32>
    %73 = arith.mulf %9, %72 : vector<16x128xf32>
    %74 = vector.broadcast %63 : vector<16x1xf32> to vector<16x128xf32>
    %75 = arith.addf %73, %74 : vector<16x128xf32>
    %cst_43 = arith.constant 0.000000e+00 : f32
    %76 = vector.broadcast %cst_43 : f32 to vector<16x128xf32>
    %77 = arith.maximumf %75, %76 : vector<16x128xf32>
    %78 = arith.truncf %77 : vector<16x128xf32> to vector<16x128xbf16>
    %c0_44 = arith.constant 0 : index
    %c128 = arith.constant 128 : index
    %79 = vector.load %arg5[%c0_44, %c128] : memref<16x512xbf16, #tpu.memory_space<vmem>>, vector<16x128xbf16>
    tpu.vector_store %arg5[%c0_44, %c128], %78 {strides = array<i32>} : memref<16x512xbf16, #tpu.memory_space<vmem>>, vector<16x128xbf16>,
    %80 = vector.broadcast %60 : vector<16x1xf32> to vector<16x128xf32>
    %81 = arith.mulf %14, %80 : vector<16x128xf32>
    %82 = vector.broadcast %63 : vector<16x1xf32> to vector<16x128xf32>
    %83 = arith.addf %81, %82 : vector<16x128xf32>
    %cst_45 = arith.constant 0.000000e+00 : f32
    %84 = vector.broadcast %cst_45 : f32 to vector<16x128xf32>
    %85 = arith.maximumf %83, %84 : vector<16x128xf32>
    %86 = arith.truncf %85 : vector<16x128xf32> to vector<16x128xbf16>
    %c0_46 = arith.constant 0 : index
    %c256 = arith.constant 256 : index
    %87 = vector.load %arg5[%c0_46, %c256] : memref<16x512xbf16, #tpu.memory_space<vmem>>, vector<16x128xbf16>
    tpu.vector_store %arg5[%c0_46, %c256], %86 {strides = array<i32>} : memref<16x512xbf16, #tpu.memory_space<vmem>>, vector<16x128xbf16>,
    %88 = vector.broadcast %60 : vector<16x1xf32> to vector<16x128xf32>
    %89 = arith.mulf %19, %88 : vector<16x128xf32>
    %90 = vector.broadcast %63 : vector<16x1xf32> to vector<16x128xf32>
    %91 = arith.addf %89, %90 : vector<16x128xf32>
    %cst_47 = arith.constant 0.000000e+00 : f32
    %92 = vector.broadcast %cst_47 : f32 to vector<16x128xf32>
    %93 = arith.maximumf %91, %92 : vector<16x128xf32>
    %94 = arith.truncf %93 : vector<16x128xf32> to vector<16x128xbf16>
    %c0_48 = arith.constant 0 : index
    %c384 = arith.constant 384 : index
    %95 = vector.load %arg5[%c0_48, %c384] : memref<16x512xbf16, #tpu.memory_space<vmem>>, vector<16x128xbf16>
    tpu.vector_store %arg5[%c0_48, %c384], %94 {strides = array<i32>} : memref<16x512xbf16, #tpu.memory_space<vmem>>, vector<16x128xbf16>,
    return
  }
  func.func @transform_0(%arg0: i32) -> (i32, i32, i32) {
    %c0_i32 = arith.constant 0 : i32
    %c0_i32_0 = arith.constant 0 : i32
    %c0_i32_1 = arith.constant 0 : i32
    %c0_i32_2 = arith.constant 0 : i32
    return %c0_i32, %c0_i32_0, %c0_i32_1 : i32, i32, i32
  }
  func.func @transform_1(%arg0: i32) -> (i32, i32, i32) {
    %c0_i32 = arith.constant 0 : i32
    %c0_i32_0 = arith.constant 0 : i32
    %c0_i32_1 = arith.constant 0 : i32
    %c0_i32_2 = arith.constant 0 : i32
    return %c0_i32, %c0_i32_0, %c0_i32_1 : i32, i32, i32
  }
  func.func @transform_2(%arg0: i32) -> (i32, i32) {
    %c0_i32 = arith.constant 0 : i32
    %c0_i32_0 = arith.constant 0 : i32
    %c0_i32_1 = arith.constant 0 : i32
    return %c0_i32, %c0_i32_0 : i32, i32
  }
  func.func @transform_3(%arg0: i32) -> (i32, i32) {
    %c0_i32 = arith.constant 0 : i32
    %c0_i32_0 = arith.constant 0 : i32
    %c0_i32_1 = arith.constant 0 : i32
    return %c0_i32, %c0_i32_0 : i32, i32
  }
  func.func @transform_4(%arg0: i32) -> (i32, i32) {
    %c0_i32 = arith.constant 0 : i32
    %c0_i32_0 = arith.constant 0 : i32
    %c0_i32_1 = arith.constant 0 : i32
    return %c0_i32, %c0_i32_0 : i32, i32
  }
}

module attributes {stable_mosaic.version = 11 : i64} {
  func.func @_up_bn_relu_kernel(%arg0: i32, %arg1: memref<4x8x64xbf16, #tpu.memory_space<vmem>>, %arg2: memref<4x64x512xbf16, #tpu.memory_space<vmem>>, %arg3: memref<8x1xf32, #tpu.memory_space<vmem>>, %arg4: memref<8x1xf32, #tpu.memory_space<vmem>>, %arg5: memref<8x2048xbf16, #tpu.memory_space<vmem>>) attributes {dimension_semantics = [#tpu.dimension_semantics<arbitrary>], iteration_bounds = array<i64: 1>, scalar_prefetch = 0 : i64, scratch_operands = 0 : i64, tpu.core_type = #tpu.core_type<tc>, window_params = [{pipeline_mode = #tpu.pipeline_mode<synchronous>, transform_indices = @transform_0, window_bounds = array<i64: 4, 8, 64>}, {pipeline_mode = #tpu.pipeline_mode<synchronous>, transform_indices = @transform_1, window_bounds = array<i64: 4, 64, 512>}, {pipeline_mode = #tpu.pipeline_mode<synchronous>, transform_indices = @transform_2, window_bounds = array<i64: 8, 1>}, {pipeline_mode = #tpu.pipeline_mode<synchronous>, transform_indices = @transform_3, window_bounds = array<i64: 8, 1>}, {pipeline_mode = #tpu.pipeline_mode<synchronous>, transform_indices = @transform_4, window_bounds = array<i64: 8, 2048>}]} {
    %c0 = arith.constant 0 : index
    %c0_0 = arith.constant 0 : index
    %c0_1 = arith.constant 0 : index
    %0 = vector.load %arg1[%c0, %c0_0, %c0_1] : memref<4x8x64xbf16, #tpu.memory_space<vmem>>, vector<1x8x64xbf16>
    %1 = vector.shape_cast %0 : vector<1x8x64xbf16> to vector<8x64xbf16>
    %c0_2 = arith.constant 0 : index
    %c0_3 = arith.constant 0 : index
    %c0_4 = arith.constant 0 : index
    %2 = vector.load %arg2[%c0_2, %c0_3, %c0_4] : memref<4x64x512xbf16, #tpu.memory_space<vmem>>, vector<1x64x512xbf16>
    %3 = vector.shape_cast %2 : vector<1x64x512xbf16> to vector<64x512xbf16>
    %cst = arith.constant dense<0.000000e+00> : vector<8x512xf32>
    %4 = tpu.matmul %1, %3, %cst {dimension_numbers = #tpu.dot_dimension_numbers<[1], [0], [0], [1], [0, 0, 1, 1], [], []>} : vector<8x64xbf16>, vector<64x512xbf16>, vector<8x512xf32> -> vector<8x512xf32>
    %c1 = arith.constant 1 : index
    %c0_5 = arith.constant 0 : index
    %c0_6 = arith.constant 0 : index
    %5 = vector.load %arg1[%c1, %c0_5, %c0_6] : memref<4x8x64xbf16, #tpu.memory_space<vmem>>, vector<1x8x64xbf16>
    %6 = vector.shape_cast %5 : vector<1x8x64xbf16> to vector<8x64xbf16>
    %c1_7 = arith.constant 1 : index
    %c0_8 = arith.constant 0 : index
    %c0_9 = arith.constant 0 : index
    %7 = vector.load %arg2[%c1_7, %c0_8, %c0_9] : memref<4x64x512xbf16, #tpu.memory_space<vmem>>, vector<1x64x512xbf16>
    %8 = vector.shape_cast %7 : vector<1x64x512xbf16> to vector<64x512xbf16>
    %cst_10 = arith.constant dense<0.000000e+00> : vector<8x512xf32>
    %9 = tpu.matmul %6, %8, %cst_10 {dimension_numbers = #tpu.dot_dimension_numbers<[1], [0], [0], [1], [0, 0, 1, 1], [], []>} : vector<8x64xbf16>, vector<64x512xbf16>, vector<8x512xf32> -> vector<8x512xf32>
    %c2 = arith.constant 2 : index
    %c0_11 = arith.constant 0 : index
    %c0_12 = arith.constant 0 : index
    %10 = vector.load %arg1[%c2, %c0_11, %c0_12] : memref<4x8x64xbf16, #tpu.memory_space<vmem>>, vector<1x8x64xbf16>
    %11 = vector.shape_cast %10 : vector<1x8x64xbf16> to vector<8x64xbf16>
    %c2_13 = arith.constant 2 : index
    %c0_14 = arith.constant 0 : index
    %c0_15 = arith.constant 0 : index
    %12 = vector.load %arg2[%c2_13, %c0_14, %c0_15] : memref<4x64x512xbf16, #tpu.memory_space<vmem>>, vector<1x64x512xbf16>
    %13 = vector.shape_cast %12 : vector<1x64x512xbf16> to vector<64x512xbf16>
    %cst_16 = arith.constant dense<0.000000e+00> : vector<8x512xf32>
    %14 = tpu.matmul %11, %13, %cst_16 {dimension_numbers = #tpu.dot_dimension_numbers<[1], [0], [0], [1], [0, 0, 1, 1], [], []>} : vector<8x64xbf16>, vector<64x512xbf16>, vector<8x512xf32> -> vector<8x512xf32>
    %c3 = arith.constant 3 : index
    %c0_17 = arith.constant 0 : index
    %c0_18 = arith.constant 0 : index
    %15 = vector.load %arg1[%c3, %c0_17, %c0_18] : memref<4x8x64xbf16, #tpu.memory_space<vmem>>, vector<1x8x64xbf16>
    %16 = vector.shape_cast %15 : vector<1x8x64xbf16> to vector<8x64xbf16>
    %c3_19 = arith.constant 3 : index
    %c0_20 = arith.constant 0 : index
    %c0_21 = arith.constant 0 : index
    %17 = vector.load %arg2[%c3_19, %c0_20, %c0_21] : memref<4x64x512xbf16, #tpu.memory_space<vmem>>, vector<1x64x512xbf16>
    %18 = vector.shape_cast %17 : vector<1x64x512xbf16> to vector<64x512xbf16>
    %cst_22 = arith.constant dense<0.000000e+00> : vector<8x512xf32>
    %19 = tpu.matmul %16, %18, %cst_22 {dimension_numbers = #tpu.dot_dimension_numbers<[1], [0], [0], [1], [0, 0, 1, 1], [], []>} : vector<8x64xbf16>, vector<64x512xbf16>, vector<8x512xf32> -> vector<8x512xf32>
    %cst_23 = arith.constant 0.000000e+00 : f32
    %20 = vector.broadcast %cst_23 : f32 to vector<8x1xf32>
    %cst_24 = arith.constant dense<0.000000e+00> : vector<8xf32>
    %21 = vector.multi_reduction <add>, %4, %cst_24 [1] : vector<8x512xf32> to vector<8xf32>
    %22 = vector.shape_cast %21 : vector<8xf32> to vector<8x1xf32>
    %23 = arith.addf %20, %22 : vector<8x1xf32>
    %cst_25 = arith.constant dense<0.000000e+00> : vector<8xf32>
    %24 = vector.multi_reduction <add>, %9, %cst_25 [1] : vector<8x512xf32> to vector<8xf32>
    %25 = vector.shape_cast %24 : vector<8xf32> to vector<8x1xf32>
    %26 = arith.addf %23, %25 : vector<8x1xf32>
    %cst_26 = arith.constant dense<0.000000e+00> : vector<8xf32>
    %27 = vector.multi_reduction <add>, %14, %cst_26 [1] : vector<8x512xf32> to vector<8xf32>
    %28 = vector.shape_cast %27 : vector<8xf32> to vector<8x1xf32>
    %29 = arith.addf %26, %28 : vector<8x1xf32>
    %cst_27 = arith.constant dense<0.000000e+00> : vector<8xf32>
    %30 = vector.multi_reduction <add>, %19, %cst_27 [1] : vector<8x512xf32> to vector<8xf32>
    %31 = vector.shape_cast %30 : vector<8xf32> to vector<8x1xf32>
    %32 = arith.addf %29, %31 : vector<8x1xf32>
    %cst_28 = arith.constant 0.000000e+00 : f32
    %33 = vector.broadcast %cst_28 : f32 to vector<8x1xf32>
    %34 = arith.mulf %4, %4 : vector<8x512xf32>
    %cst_29 = arith.constant dense<0.000000e+00> : vector<8xf32>
    %35 = vector.multi_reduction <add>, %34, %cst_29 [1] : vector<8x512xf32> to vector<8xf32>
    %36 = vector.shape_cast %35 : vector<8xf32> to vector<8x1xf32>
    %37 = arith.addf %33, %36 : vector<8x1xf32>
    %38 = arith.mulf %9, %9 : vector<8x512xf32>
    %cst_30 = arith.constant dense<0.000000e+00> : vector<8xf32>
    %39 = vector.multi_reduction <add>, %38, %cst_30 [1] : vector<8x512xf32> to vector<8xf32>
    %40 = vector.shape_cast %39 : vector<8xf32> to vector<8x1xf32>
    %41 = arith.addf %37, %40 : vector<8x1xf32>
    %42 = arith.mulf %14, %14 : vector<8x512xf32>
    %cst_31 = arith.constant dense<0.000000e+00> : vector<8xf32>
    %43 = vector.multi_reduction <add>, %42, %cst_31 [1] : vector<8x512xf32> to vector<8xf32>
    %44 = vector.shape_cast %43 : vector<8xf32> to vector<8x1xf32>
    %45 = arith.addf %41, %44 : vector<8x1xf32>
    %46 = arith.mulf %19, %19 : vector<8x512xf32>
    %cst_32 = arith.constant dense<0.000000e+00> : vector<8xf32>
    %47 = vector.multi_reduction <add>, %46, %cst_32 [1] : vector<8x512xf32> to vector<8xf32>
    %48 = vector.shape_cast %47 : vector<8xf32> to vector<8x1xf32>
    %49 = arith.addf %45, %48 : vector<8x1xf32>
    %cst_33 = arith.constant 4.8828125E-4 : f32
    %50 = vector.broadcast %cst_33 : f32 to vector<8x1xf32>
    %51 = arith.mulf %32, %50 : vector<8x1xf32>
    %cst_34 = arith.constant 4.8828125E-4 : f32
    %52 = vector.broadcast %cst_34 : f32 to vector<8x1xf32>
    %53 = arith.mulf %49, %52 : vector<8x1xf32>
    %54 = arith.mulf %51, %51 : vector<8x1xf32>
    %55 = arith.subf %53, %54 : vector<8x1xf32>
    %c0_35 = arith.constant 0 : index
    %c0_36 = arith.constant 0 : index
    %56 = vector.load %arg3[%c0_35, %c0_36] : memref<8x1xf32, #tpu.memory_space<vmem>>, vector<8x1xf32>
    %cst_37 = arith.constant 9.99999974E-6 : f32
    %57 = vector.broadcast %cst_37 : f32 to vector<8x1xf32>
    %58 = arith.addf %55, %57 : vector<8x1xf32>
    %59 = math.rsqrt %58 : vector<8x1xf32>
    %60 = arith.mulf %56, %59 : vector<8x1xf32>
    %c0_38 = arith.constant 0 : index
    %c0_39 = arith.constant 0 : index
    %61 = vector.load %arg4[%c0_38, %c0_39] : memref<8x1xf32, #tpu.memory_space<vmem>>, vector<8x1xf32>
    %62 = arith.mulf %51, %60 : vector<8x1xf32>
    %63 = arith.subf %61, %62 : vector<8x1xf32>
    %64 = vector.broadcast %60 : vector<8x1xf32> to vector<8x512xf32>
    %65 = arith.mulf %4, %64 : vector<8x512xf32>
    %66 = vector.broadcast %63 : vector<8x1xf32> to vector<8x512xf32>
    %67 = arith.addf %65, %66 : vector<8x512xf32>
    %cst_40 = arith.constant 0.000000e+00 : f32
    %68 = vector.broadcast %cst_40 : f32 to vector<8x512xf32>
    %69 = arith.maximumf %67, %68 : vector<8x512xf32>
    %70 = arith.truncf %69 : vector<8x512xf32> to vector<8x512xbf16>
    %c0_41 = arith.constant 0 : index
    %c0_42 = arith.constant 0 : index
    %71 = vector.load %arg5[%c0_41, %c0_42] : memref<8x2048xbf16, #tpu.memory_space<vmem>>, vector<8x512xbf16>
    tpu.vector_store %arg5[%c0_41, %c0_42], %70 {strides = array<i32>} : memref<8x2048xbf16, #tpu.memory_space<vmem>>, vector<8x512xbf16>,
    %72 = vector.broadcast %60 : vector<8x1xf32> to vector<8x512xf32>
    %73 = arith.mulf %9, %72 : vector<8x512xf32>
    %74 = vector.broadcast %63 : vector<8x1xf32> to vector<8x512xf32>
    %75 = arith.addf %73, %74 : vector<8x512xf32>
    %cst_43 = arith.constant 0.000000e+00 : f32
    %76 = vector.broadcast %cst_43 : f32 to vector<8x512xf32>
    %77 = arith.maximumf %75, %76 : vector<8x512xf32>
    %78 = arith.truncf %77 : vector<8x512xf32> to vector<8x512xbf16>
    %c0_44 = arith.constant 0 : index
    %c512 = arith.constant 512 : index
    %79 = vector.load %arg5[%c0_44, %c512] : memref<8x2048xbf16, #tpu.memory_space<vmem>>, vector<8x512xbf16>
    tpu.vector_store %arg5[%c0_44, %c512], %78 {strides = array<i32>} : memref<8x2048xbf16, #tpu.memory_space<vmem>>, vector<8x512xbf16>,
    %80 = vector.broadcast %60 : vector<8x1xf32> to vector<8x512xf32>
    %81 = arith.mulf %14, %80 : vector<8x512xf32>
    %82 = vector.broadcast %63 : vector<8x1xf32> to vector<8x512xf32>
    %83 = arith.addf %81, %82 : vector<8x512xf32>
    %cst_45 = arith.constant 0.000000e+00 : f32
    %84 = vector.broadcast %cst_45 : f32 to vector<8x512xf32>
    %85 = arith.maximumf %83, %84 : vector<8x512xf32>
    %86 = arith.truncf %85 : vector<8x512xf32> to vector<8x512xbf16>
    %c0_46 = arith.constant 0 : index
    %c1024 = arith.constant 1024 : index
    %87 = vector.load %arg5[%c0_46, %c1024] : memref<8x2048xbf16, #tpu.memory_space<vmem>>, vector<8x512xbf16>
    tpu.vector_store %arg5[%c0_46, %c1024], %86 {strides = array<i32>} : memref<8x2048xbf16, #tpu.memory_space<vmem>>, vector<8x512xbf16>,
    %88 = vector.broadcast %60 : vector<8x1xf32> to vector<8x512xf32>
    %89 = arith.mulf %19, %88 : vector<8x512xf32>
    %90 = vector.broadcast %63 : vector<8x1xf32> to vector<8x512xf32>
    %91 = arith.addf %89, %90 : vector<8x512xf32>
    %cst_47 = arith.constant 0.000000e+00 : f32
    %92 = vector.broadcast %cst_47 : f32 to vector<8x512xf32>
    %93 = arith.maximumf %91, %92 : vector<8x512xf32>
    %94 = arith.truncf %93 : vector<8x512xf32> to vector<8x512xbf16>
    %c0_48 = arith.constant 0 : index
    %c1536 = arith.constant 1536 : index
    %95 = vector.load %arg5[%c0_48, %c1536] : memref<8x2048xbf16, #tpu.memory_space<vmem>>, vector<8x512xbf16>
    tpu.vector_store %arg5[%c0_48, %c1536], %94 {strides = array<i32>} : memref<8x2048xbf16, #tpu.memory_space<vmem>>, vector<8x512xbf16>,
    return
  }
  func.func @transform_0(%arg0: i32) -> (i32, i32, i32) {
    %c0_i32 = arith.constant 0 : i32
    %c0_i32_0 = arith.constant 0 : i32
    %c0_i32_1 = arith.constant 0 : i32
    %c0_i32_2 = arith.constant 0 : i32
    return %c0_i32, %c0_i32_0, %c0_i32_1 : i32, i32, i32
  }
  func.func @transform_1(%arg0: i32) -> (i32, i32, i32) {
    %c0_i32 = arith.constant 0 : i32
    %c0_i32_0 = arith.constant 0 : i32
    %c0_i32_1 = arith.constant 0 : i32
    %c0_i32_2 = arith.constant 0 : i32
    return %c0_i32, %c0_i32_0, %c0_i32_1 : i32, i32, i32
  }
  func.func @transform_2(%arg0: i32) -> (i32, i32) {
    %c0_i32 = arith.constant 0 : i32
    %c0_i32_0 = arith.constant 0 : i32
    %c0_i32_1 = arith.constant 0 : i32
    return %c0_i32, %c0_i32_0 : i32, i32
  }
  func.func @transform_3(%arg0: i32) -> (i32, i32) {
    %c0_i32 = arith.constant 0 : i32
    %c0_i32_0 = arith.constant 0 : i32
    %c0_i32_1 = arith.constant 0 : i32
    return %c0_i32, %c0_i32_0 : i32, i32
  }
  func.func @transform_4(%arg0: i32) -> (i32, i32) {
    %c0_i32 = arith.constant 0 : i32
    %c0_i32_0 = arith.constant 0 : i32
    %c0_i32_1 = arith.constant 0 : i32
    return %c0_i32, %c0_i32_0 : i32, i32
  }
}

module attributes {stable_mosaic.version = 11 : i64} {
  func.func @_up_tanh_kernel(%arg0: i32, %arg1: i32, %arg2: memref<1x8x32xbf16, #tpu.memory_space<vmem>>, %arg3: memref<1x32x2048xbf16, #tpu.memory_space<vmem>>, %arg4: memref<1x8x2048xf32, #tpu.memory_space<vmem>>) attributes {dimension_semantics = [#tpu.dimension_semantics<parallel>, #tpu.dimension_semantics<parallel>], iteration_bounds = array<i64: 4, 1>, scalar_prefetch = 0 : i64, scratch_operands = 0 : i64, tpu.core_type = #tpu.core_type<tc>, window_params = [{transform_indices = @transform_0, window_bounds = array<i64: 1, 8, 32>}, {transform_indices = @transform_1, window_bounds = array<i64: 1, 32, 2048>}, {transform_indices = @transform_2, window_bounds = array<i64: 1, 8, 2048>}]} {
    %c0 = arith.constant 0 : index
    %c0_0 = arith.constant 0 : index
    %c0_1 = arith.constant 0 : index
    %0 = vector.load %arg2[%c0, %c0_0, %c0_1] : memref<1x8x32xbf16, #tpu.memory_space<vmem>>, vector<1x8x32xbf16>
    %1 = vector.shape_cast %0 : vector<1x8x32xbf16> to vector<8x32xbf16>
    %c0_2 = arith.constant 0 : index
    %c0_3 = arith.constant 0 : index
    %c0_4 = arith.constant 0 : index
    %2 = vector.load %arg3[%c0_2, %c0_3, %c0_4] : memref<1x32x2048xbf16, #tpu.memory_space<vmem>>, vector<1x32x2048xbf16>
    %3 = vector.shape_cast %2 : vector<1x32x2048xbf16> to vector<32x2048xbf16>
    %cst = arith.constant dense<0.000000e+00> : vector<8x2048xf32>
    %4 = tpu.matmul %1, %3, %cst {dimension_numbers = #tpu.dot_dimension_numbers<[1], [0], [0], [1], [0, 0, 1, 1], [], []>} : vector<8x32xbf16>, vector<32x2048xbf16>, vector<8x2048xf32> -> vector<8x2048xf32>
    %5 = math.tanh %4 : vector<8x2048xf32>
    %c0_5 = arith.constant 0 : index
    %c0_6 = arith.constant 0 : index
    %c0_7 = arith.constant 0 : index
    %6 = vector.load %arg4[%c0_5, %c0_6, %c0_7] : memref<1x8x2048xf32, #tpu.memory_space<vmem>>, vector<1x8x2048xf32>
    %7 = vector.shape_cast %6 : vector<1x8x2048xf32> to vector<8x2048xf32>
    %8 = vector.shape_cast %5 : vector<8x2048xf32> to vector<1x8x2048xf32>
    tpu.vector_store %arg4[%c0_5, %c0_6, %c0_7], %8 {strides = array<i32>} : memref<1x8x2048xf32, #tpu.memory_space<vmem>>, vector<1x8x2048xf32>,
    return
  }
  func.func @transform_0(%arg0: i32, %arg1: i32) -> (i32, i32, i32) {
    %c0_i32 = arith.constant 0 : i32
    %c0_i32_0 = arith.constant 0 : i32
    %c0_i32_1 = arith.constant 0 : i32
    return %arg0, %c0_i32, %c0_i32_0 : i32, i32, i32
  }
  func.func @transform_1(%arg0: i32, %arg1: i32) -> (i32, i32, i32) {
    %c0_i32 = arith.constant 0 : i32
    %c0_i32_0 = arith.constant 0 : i32
    return %arg0, %c0_i32, %arg1 : i32, i32, i32
  }
  func.func @transform_2(%arg0: i32, %arg1: i32) -> (i32, i32, i32) {
    %c0_i32 = arith.constant 0 : i32
    %c0_i32_0 = arith.constant 0 : i32
    return %arg0, %c0_i32, %arg1 : i32, i32, i32
  }
}

</mosaic_0001>

<bundles_post_ra>
// kernel: generator_forward.6
= control target key start
LH: loop header
LB: loop body
LE: loop exit
PB: predicated region body
PF: predicated region fallthrough
CT: control target
= control target key end

     0   :  { %vm828_vm0 = vcmask 261120   ;;  %vm1085_vm1 = vcmask 257024   ;;  %s1653_s10 = smov 64   ;;  %vm1126_vm2 = vcmask 519424   ;;  %vm1167_vm3 = vcmask 781824   ;;  %s2148_s1 = inlined_call_operand.vmem [shape: bf16[4,256,32], index: 1, kind: input, shape index: {}]   ;;  %s2149_s0 = inlined_call_operand.vmem [shape: bf16[4,32,256], index: 0, kind: input, shape index: {}]   ;;  %s2150_s2 = inlined_call_operand.vmem [shape: f32[32,1], index: 2, kind: input, shape index: {}]   ;;  %s2151_s3 = inlined_call_operand.vmem [shape: f32[32,1], index: 3, kind: input, shape index: {}]   ;;  %s2152_s4 = inlined_call_operand.vmem [shape: bf16[32,128], index: 4, kind: output, shape index: {}]  }
   0x1   :  { %v1555_v0 = vld [vmem:[%s2148_s1 + $0x40] sm:$0xff]   ;;  %v1559_v4 = vld [vmem:[%s2148_s1 + $0x48] sm:$0xff]   ;;  %v1563_v8 = vld [vmem:[%s2148_s1 + $0x50] sm:$0xff]   ;;  %vm1208_vm4 = vcmask 1044224  }
   0x2   :  { %v1556_v1 = vld [vmem:[%s2148_s1 + $0xc0] sm:$0xff]   ;;  %1437 = vmatprep.subr.bf16.mxu0 %v1555_v0  ;;  %v1560_v5 = vld [vmem:[%s2148_s1 + $0xc8] sm:$0xff]   ;;  %v1564_v9 = vld [vmem:[%s2148_s1 + $0xd0] sm:$0xff]  }
   0x3   :  { %v1557_v2 = vld [vmem:[%s2148_s1] sm:$0xff]   ;;  %1465 = vmatprep.subr.bf16.mxu1 %v1556_v1  ;;  %v1561_v6 = vld [vmem:[%s2148_s1 + $0x8] sm:$0xff]   ;;  %v1565_v10 = vld [vmem:[%s2148_s1 + $0x10] sm:$0xff]  }
   0x4   :  { %v1558_v3 = vld [vmem:[%s2148_s1 + $0x80] sm:$0xff]   ;;  %1438 = vmatpush3.bf16.msra.mxu0 %v1557_v2  ;;  %v1562_v7 = vld [vmem:[%s2148_s1 + $0x88] sm:$0xff]   ;;  %v1566_v11 = vld [vmem:[%s2148_s1 + $0x90] sm:$0xff]  }
   0x5   :  { %1466 = vmatpush3.bf16.msra.mxu1 %v1558_v3  ;;  %1439 = vmatprep.subr.bf16.mxu0 %v1559_v4  ;;  %v1567_v12 = vld [vmem:[%s2148_s1 + $0x58] sm:$0xff]   ;;  %v1571_v16 = vld [vmem:[%s2148_s1 + $0x60] sm:$0xff]   ;;  %v1575_v20 = vld [vmem:[%s2148_s1 + $0x68] sm:$0xff]  }
   0x6   :  { %1467 = vmatprep.subr.bf16.mxu1 %v1560_v5  ;;  %v1568_v13 = vld [vmem:[%s2148_s1 + $0xd8] sm:$0xff]   ;;  %v1572_v17 = vld [vmem:[%s2148_s1 + $0xe0] sm:$0xff]   ;;  %v1576_v21 = vld [vmem:[%s2148_s1 + $0xe8] sm:$0xff]  }
   0x7   :  { %v1569_v14 = vld [vmem:[%s2148_s1 + $0x18] sm:$0xff]   ;;  %v1573_v18 = vld [vmem:[%s2148_s1 + $0x20] sm:$0xff]   ;;  %v1577_v22 = vld [vmem:[%s2148_s1 + $0x28] sm:$0xff]  }
   0x8   :  { %1440 = vmatpush3.bf16.msra.mxu0 %v1561_v6  ;;  %v1570_v15 = vld [vmem:[%s2148_s1 + $0x98] sm:$0xff]   ;;  %v1574_v19 = vld [vmem:[%s2148_s1 + $0xa0] sm:$0xff]   ;;  %v1578_v23 = vld [vmem:[%s2148_s1 + $0xa8] sm:$0xff]  }
   0x9   :  { %1468 = vmatpush3.bf16.msra.mxu1 %v1562_v7  ;;  %1441 = vmatprep.subr.bf16.mxu0 %v1563_v8  ;;  %v1579_v24 = vld [vmem:[%s2148_s1 + $0x70] sm:$0xff]   ;;  %v1583_v28 = vld [vmem:[%s2148_s1 + $0x78] sm:$0xff]   ;;  %v1587_v32 = vld [vmem:[%s2149_s0] ss:$8 sps:$4 sm:$0xff]  }
   0xa   :  { %1469 = vmatprep.subr.bf16.mxu1 %v1564_v9  ;;  %v1580_v25 = vld [vmem:[%s2148_s1 + $0xf0] sm:$0xff]   ;;  %v1584_v29 = vld [vmem:[%s2148_s1 + $0xf8] sm:$0xff]   ;;  %v1589_v33 = vld [vmem:[%s2149_s0 + $0x4] ss:$8 sps:$4 sm:$0xff]  }
   0xb   :  { %v1581_v26 = vld [vmem:[%s2148_s1 + $0x30] sm:$0xff]   ;;  %v1585_v30 = vld [vmem:[%s2148_s1 + $0x38] sm:$0xff]   ;;  %v1590_v34 = vld [vmem:[%s2149_s0 + $0x20] ss:$8 sps:$4 sm:$0xff]   ;;  %202 = vmatprep.mubr.bf16.mxu0 %v1589_v33 }
   0xc   :  { %1442 = vmatpush3.bf16.msra.mxu0 %v1565_v10  ;;  %v1582_v27 = vld [vmem:[%s2148_s1 + $0xb0] sm:$0xff]   ;;  %v1586_v31 = vld [vmem:[%s2148_s1 + $0xb8] sm:$0xff]   ;;  %v1592_v35 = vld [vmem:[%s2149_s0 + $0x24] ss:$8 sps:$4 sm:$0xff]  }
   0xd   :  { %1470 = vmatpush3.bf16.msra.mxu1 %v1566_v11  ;;  %1443 = vmatprep.subr.bf16.mxu0 %v1567_v12  ;;  %v1593_v36 = vld [vmem:[%s2148_s1 + $0x140] sm:$0xff]   ;;  %v1597_v40 = vld [vmem:[%s2148_s1 + $0x148] sm:$0xff]   ;;  %v1601_v44 = vld [vmem:[%s2148_s1 + $0x150] sm:$0xff]  }
   0xe   :  { %1471 = vmatprep.subr.bf16.mxu1 %v1568_v13  ;;  %405 = vmatprep.mubr.bf16.mxu1 %v1592_v35  ;;  %v1594_v37 = vld [vmem:[%s2148_s1 + $0x100] sm:$0xff]   ;;  %v1598_v41 = vld [vmem:[%s2148_s1 + $0x108] sm:$0xff]   ;;  %v1602_v45 = vld [vmem:[%s2148_s1 + $0x110] sm:$0xff]  }
   0xf   :  { %v1595_v38 = vld [vmem:[%s2148_s1 + $0x1c0] sm:$0xff]   ;;  %v1599_v42 = vld [vmem:[%s2148_s1 + $0x1c8] sm:$0xff]   ;;  %v1603_v46 = vld [vmem:[%s2148_s1 + $0x1d0] sm:$0xff]  }
  0x10   :  { %1444 = vmatpush3.bf16.msra.mxu0 %v1569_v14  ;;  %v1596_v39 = vld [vmem:[%s2148_s1 + $0x180] sm:$0xff]   ;;  %v1600_v43 = vld [vmem:[%s2148_s1 + $0x188] sm:$0xff]   ;;  %v1604_v47 = vld [vmem:[%s2148_s1 + $0x190] sm:$0xff]  }
  0x11   :  { %1472 = vmatpush3.bf16.msra.mxu1 %v1570_v15  ;;  %1445 = vmatprep.subr.bf16.mxu0 %v1571_v16  ;;  %v1605_v48 = vld [vmem:[%s2149_s0 + $0x14] ss:$8 sps:$4 sm:$0xff]   ;;  %v1608_v50 = vld [vmem:[%s2149_s0 + $0x10] ss:$8 sps:$4 sm:$0xff]   ;;  %v1614_v55 = vld [vmem:[%s2148_s1 + $0x160] sm:$0xff]  }
  0x12   :  { %1473 = vmatprep.subr.bf16.mxu1 %v1572_v17  ;;  %v1607_v49 = vld [vmem:[%s2148_s1 + $0x158] sm:$0xff]   ;;  %v1616_v57 = vld [vmem:[%s2148_s1 + $0x120] sm:$0xff]   ;;  %v1619_v60 = vld [vmem:[%s2148_s1 + $0x168] sm:$0xff]  }
  0x13   :  { %v1609_v51 = vld [vmem:[%s2148_s1 + $0x118] sm:$0xff]   ;;  %v1617_v58 = vld [vmem:[%s2148_s1 + $0x1e0] sm:$0xff]   ;;  %v1620_v61 = vld [vmem:[%s2148_s1 + $0x128] sm:$0xff]  }
  0x14   :  { %1446 = vmatpush3.bf16.msra.mxu0 %v1573_v18  ;;  %v1610_v52 = vld [vmem:[%s2148_s1 + $0x1d8] sm:$0xff]   ;;  %v1618_v59 = vld [vmem:[%s2148_s1 + $0x1a0] sm:$0xff]   ;;  %v1621_v62 = vld [vmem:[%s2148_s1 + $0x1e8] sm:$0xff]  }
  0x15   :  { %1474 = vmatpush3.bf16.msra.mxu1 %v1574_v19  ;;  %1447 = vmatprep.subr.bf16.mxu0 %v1575_v20  ;;  %v1611_v53 = vld [vmem:[%s2148_s1 + $0x198] sm:$0xff]   ;;  %v1622_v63 = vld [vmem:[%s2148_s1 + $0x1a8] sm:$0xff]   ;;  %v1623_v0 = vld [vmem:[%s2148_s1 + $0x170] sm:$0xff]  }
  0x16   :  { %1475 = vmatprep.subr.bf16.mxu1 %v1576_v21  ;;  %v1612_v54 = vld [vmem:[%s2149_s0 + $0x34] ss:$8 sps:$4 sm:$0xff]   ;;  %v1615_v56 = vld [vmem:[%s2149_s0 + $0x30] ss:$8 sps:$4 sm:$0xff]   ;;  %v1631_v8 = vld [vmem:[%s2149_s0 + $0x40] ss:$8 sps:$4 sm:$0xff]  }
  0x17   :  { %v1624_v1 = vld [vmem:[%s2148_s1 + $0x130] sm:$0xff]   ;;  %v1627_v4 = vld [vmem:[%s2148_s1 + $0x178] sm:$0xff]   ;;  %v1633_v9 = vld [vmem:[%s2149_s0 + $0x44] ss:$8 sps:$4 sm:$0xff]  }
  0x18   :  { %1448 = vmatpush3.bf16.msra.mxu0 %v1577_v22  ;;  %v1625_v2 = vld [vmem:[%s2148_s1 + $0x1f0] sm:$0xff]   ;;  %v1628_v5 = vld [vmem:[%s2148_s1 + $0x138] sm:$0xff]   ;;  %v1634_v10 = vld [vmem:[%s2149_s0 + $0x60] ss:$8 sps:$4 sm:$0xff]  }
  0x19   :  { %1476 = vmatpush3.bf16.msra.mxu1 %v1578_v23  ;;  %1449 = vmatprep.subr.bf16.mxu0 %v1579_v24  ;;  %v1626_v3 = vld [vmem:[%s2148_s1 + $0x1b0] sm:$0xff]   ;;  %v1629_v6 = vld [vmem:[%s2148_s1 + $0x1f8] sm:$0xff]   ;;  %v1636_v11 = vld [vmem:[%s2149_s0 + $0x64] ss:$8 sps:$4 sm:$0xff]  }
  0x1a   :  { %1477 = vmatprep.subr.bf16.mxu1 %v1580_v25  ;;  %v1630_v7 = vld [vmem:[%s2148_s1 + $0x1b8] sm:$0xff]   ;;  %s1654_s1 = smov 96  }
  0x1b   :  { %v1637_v12 = vld [vmem:[%s2149_s0 + $0x54] ss:$8 sps:$4 sm:$0xff]   ;;  %v1639_v14 = vld [vmem:[%s2149_s0 + $0x50] ss:$8 sps:$4 sm:$0xff]  }
  0x1c   :  { %1450 = vmatpush3.bf16.msra.mxu0 %v1581_v26  ;;  %v1640_v13 = vld [vmem:[%s2149_s0 + $0x74] ss:$8 sps:$4 sm:$0xff]   ;;  %v1642_v15 = vld [vmem:[%s2149_s0 + $0x70] ss:$8 sps:$4 sm:$0xff]  }
  0x1d   :  { %1478 = vmatpush3.bf16.msra.mxu1 %v1582_v27  ;;  %1451 = vmatprep.subr.bf16.mxu0 %v1583_v28 }
  0x1e   :  { %1479 = vmatprep.subr.bf16.mxu1 %v1584_v29 }
  0x20   :  { %1452 = vmatpush3.bf16.msra.mxu0 %v1585_v30 }
  0x21   :  { %1480 = vmatpush3.bf16.msra.mxu1 %v1586_v31  ;;  %1493 = vmatprep.subr.bf16.mxu0 %v1593_v36 }
  0x22   :  { %1521 = vmatprep.subr.bf16.mxu1 %v1595_v38 }
  0x23   :  { %203 = vmatmul.mubr.bf16.vlgmr.msra.gmra.mrb[0].mxu0 %v1587_v32 }
  0x24   :  { %406 = vmatmul.mubr.bf16.vlgmr.msra.gmra.mrb[0].mxu1 %v1590_v34  ;;  %1494 = vmatpush3.bf16.msra.mxu0 %v1594_v37 }
  0x25   :  { %1522 = vmatpush3.bf16.msra.mxu1 %v1596_v39  ;;  %1495 = vmatprep.subr.bf16.mxu0 %v1597_v40 }
  0x26   :  { %1523 = vmatprep.subr.bf16.mxu1 %v1599_v42  ;;  %210 = vmatprep.mubr.bf16.mxu0 %v1605_v48 }
  0x27   :  { %413 = vmatprep.mubr.bf16.mxu1 %v1612_v54 }
  0x28   :  { %1496 = vmatpush3.bf16.msra.mxu0 %v1598_v41 }
  0x29   :  { %1524 = vmatpush3.bf16.msra.mxu1 %v1600_v43  ;;  %1497 = vmatprep.subr.bf16.mxu0 %v1601_v44 }
  0x2a   :  { %1525 = vmatprep.subr.bf16.mxu1 %v1603_v46 }
  0x2b   :  { %211 = vmatmul.mubr.bf16.gmra.mrb[4].mxu0 %v1608_v50 }
  0x2c   :  { %1498 = vmatpush3.bf16.msra.mxu0 %v1602_v45  ;;  %414 = vmatmul.mubr.bf16.gmra.mrb[4].mxu1 %v1615_v56 }
  0x2d   :  { %1526 = vmatpush3.bf16.msra.mxu1 %v1604_v47  ;;  %1499 = vmatprep.subr.bf16.mxu0 %v1607_v49 }
  0x2e   :  { %1527 = vmatprep.subr.bf16.mxu1 %v1610_v52  ;;  %608 = vmatprep.mubr.bf16.mxu0 %v1633_v9 }
  0x2f   :  { %811 = vmatprep.mubr.bf16.mxu1 %v1636_v11 }
  0x30   :  { %1500 = vmatpush3.bf16.msra.mxu0 %v1609_v51 }
  0x31   :  { %1528 = vmatpush3.bf16.msra.mxu1 %v1611_v53  ;;  %1501 = vmatprep.subr.bf16.mxu0 %v1614_v55 }
  0x32   :  { %1529 = vmatprep.subr.bf16.mxu1 %v1617_v58 }
  0x34   :  { %1502 = vmatpush3.bf16.msra.mxu0 %v1616_v57 }
  0x35   :  { %1530 = vmatpush3.bf16.msra.mxu1 %v1618_v59  ;;  %1503 = vmatprep.subr.bf16.mxu0 %v1619_v60 }
  0x36   :  { %1531 = vmatprep.subr.bf16.mxu1 %v1621_v62 }
  0x38   :  { %1504 = vmatpush3.bf16.msra.mxu0 %v1620_v61 }
  0x39   :  { %1532 = vmatpush3.bf16.msra.mxu1 %v1622_v63  ;;  %1505 = vmatprep.subr.bf16.mxu0 %v1623_v0 }
  0x3a   :  { %1533 = vmatprep.subr.bf16.mxu1 %v1625_v2 }
  0x3c   :  { %1506 = vmatpush3.bf16.msra.mxu0 %v1624_v1 }
  0x3d   :  { %1534 = vmatpush3.bf16.msra.mxu1 %v1626_v3  ;;  %1507 = vmatprep.subr.bf16.mxu0 %v1627_v4 }
  0x3e   :  { %1535 = vmatprep.subr.bf16.mxu1 %v1629_v6 }
  0x40   :  { %1508 = vmatpush3.bf16.msra.mxu0 %v1628_v5 }
  0x41   :  { %1536 = vmatpush3.bf16.msra.mxu1 %v1630_v7 }
  0x43   :  { %609 = vmatmul.mubr.bf16.vlgmr.msra.gmra.mrb[8].mxu0 %v1631_v8 }
  0x44   :  { %812 = vmatmul.mubr.bf16.vlgmr.msra.gmra.mrb[8].mxu1 %v1634_v10  ;;  %616 = vmatprep.mubr.bf16.mxu0 %v1637_v12 }
  0x45   :  { %819 = vmatprep.mubr.bf16.mxu1 %v1640_v13 }
  0x4b   :  { %617 = vmatmul.mubr.bf16.gmra.mrb[12].mxu0 %v1639_v14 }
  0x4c   :  { %820 = vmatmul.mubr.bf16.gmra.mrb[12].mxu1 %v1642_v15 }
  0xf6   :  { %v1453_v16 = vpop.f32.mrb[0].mxu0 }
  0xf7   :  { %v1481_v17 = vpop.f32.mrb[0].mxu1  ;;  %v1454_v18 = vpop.f32.mrb[1].mxu0 }
  0xf8   :  { %v1920_v19 = vadd.f32 %v1454_v18, %v1453_v16  ;;  %v1482_v20 = vpop.f32.mrb[1].mxu1  ;;  %v1456_v21 = vpop.f32.mrb[2].mxu0 }
  0xf9   :  { %v1922_v22 = vadd.f32 %v1482_v20, %v1481_v17  ;;  %v1484_v23 = vpop.f32.mrb[2].mxu1  ;;  %v1457_v24 = vpop.f32.mrb[3].mxu0 }
  0xfa   :  { %v1924_v25 = vadd.f32 %v1457_v24, %v1456_v21  ;;  %v1485_v26 = vpop.f32.mrb[3].mxu1  ;;  %v829_v27 = vsel %vm828_vm0, %v1920_v19, 0.0  ;;  %v893_v35 = vmul.f32 %v1920_v19, %v1920_v19 }
  0xfb   :  { %v1928_v28 = vadd.f32 %v1485_v26, %v1484_v23  ;;  %830 = vadd.xlane.f32.xlu0 %v829_v27  ;;  %v845_v31 = vsel %vm828_vm0, %v1922_v22, 0.0  ;;  %v913_v42 = vmul.f32 %v1922_v22, %v1922_v22 }
  0xfc   :  { %v894_v30 = vmul.f32 %v1924_v25, %v1924_v25  ;;  %v832_v34 = vsel %vm828_vm0, %v1924_v25, 0.0  ;;  %v897_v41 = vsel %vm828_vm0, %v893_v35, 0.0 }
  0xfd   :  { %v848_v29 = vsel %vm828_vm0, %v1928_v28, 0.0  ;;  %v914_v33 = vmul.f32 %v1928_v28, %v1928_v28  ;;  %v917_v47 = vsel %vm828_vm0, %v913_v42, 0.0 }
  0xfe   :  { %849 = vadd.xlane.f32.xlu1 %v848_v29  ;;  %v900_v32 = vsel %vm828_vm0, %v894_v30, 0.0  ;;  %v1459_v36 = vpop.f32.mrb[4].mxu0 }
  0xff   :  { %846 = vadd.xlane.f32.xlu0 %v845_v31  ;;  %v1460_v37 = vpop.f32.mrb[5].mxu0  ;;  %v920_v38 = vsel %vm828_vm0, %v914_v33, 0.0  ;;  %v1487_v46 = vpop.f32.mrb[4].mxu1 }
 0x100   :  { %v1944_v39 = vadd.f32 %v1460_v37, %v1459_v36  ;;  %v1462_v40 = vpop.f32.mrb[6].mxu0  ;;  %v1488_v48 = vpop.f32.mrb[5].mxu1 }
 0x101   :  { %v1463_v43 = vpop.f32.mrb[7].mxu0  ;;  %v1954_v49 = vadd.f32 %v1488_v48, %v1487_v46  ;;  %v1490_v50 = vpop.f32.mrb[6].mxu1 }
 0x102   :  { %901 = vadd.xlane.f32.xlu1 %v900_v32  ;;  %v1949_v44 = vadd.f32 %v1463_v43, %v1462_v40  ;;  %v835_v45 = vsel %vm828_vm0, %v1944_v39, 0.0  ;;  %v1491_v51 = vpop.f32.mrb[7].mxu1  ;;  %v895_v55 = vmul.f32 %v1944_v39, %v1944_v39 }
 0x103   :  { %833 = vadd.xlane.f32.xlu0 %v832_v34  ;;  %v1958_v53 = vadd.f32 %v1491_v51, %v1490_v50  ;;  %v851_v54 = vsel %vm828_vm0, %v1954_v49, 0.0  ;;  %v915_v59 = vmul.f32 %v1954_v49, %v1954_v49 }
 0x104   :  { %v838_v52 = vsel %vm828_vm0, %v1949_v44, 0.0  ;;  %v896_v57 = vmul.f32 %v1949_v44, %v1949_v44  ;;  %v903_v58 = vsel %vm828_vm0, %v895_v55, 0.0 }
 0x105   :  { %v854_v56 = vsel %vm828_vm0, %v1958_v53, 0.0  ;;  %v916_v61 = vmul.f32 %v1958_v53, %v1958_v53  ;;  %v923_v62 = vsel %vm828_vm0, %v915_v59, 0.0 }
 0x106   :  { %921 = vadd.xlane.f32.xlu1 %v920_v38  ;;  %v906_v60 = vsel %vm828_vm0, %v896_v57, 0.0 }
 0x107   :  { %898 = vadd.xlane.f32.xlu0 %v897_v41  ;;  %v926_v63 = vsel %vm828_vm0, %v916_v61, 0.0 }
 0x10a   :  { %836 = vadd.xlane.f32.xlu1 %v835_v45 }
 0x10b   :  { %918 = vadd.xlane.f32.xlu0 %v917_v47 }
 0x10e   :  { %839 = vadd.xlane.f32.xlu1 %v838_v52 }
 0x10f   :  { %852 = vadd.xlane.f32.xlu0 %v851_v54 }
 0x112   :  { %855 = vadd.xlane.f32.xlu1 %v854_v56  ;;  %v1651_v56 = vmov 0  }
 0x113   :  { %904 = vadd.xlane.f32.xlu0 %v903_v58  ;;  %1554 = vset.pattern.permute.xlu1 %v1651_v56 }
 0x114   :  { %1553 = vset.pattern.permute.xlu0 %v1651_v56 }
 0x116   :  { %907 = vadd.xlane.f32.xlu1 %v906_v60  ;;  %v1509_v0 = vpop.f32.mrb[8].mxu0 }
 0x117   :  { %924 = vadd.xlane.f32.xlu0 %v923_v62  ;;  %v1510_v1 = vpop.f32.mrb[9].mxu0  ;;  %v1537_v2 = vpop.f32.mrb[8].mxu1 }
 0x118   :  { %v1976_v3 = vadd.f32 %v1510_v1, %v1509_v0  ;;  %v1512_v4 = vpop.f32.mrb[10].mxu0  ;;  %v1538_v5 = vpop.f32.mrb[9].mxu1 }
 0x119   :  { %v1978_v6 = vadd.f32 %v1538_v5, %v1537_v2  ;;  %v1513_v7 = vpop.f32.mrb[11].mxu0  ;;  %v1540_v8 = vpop.f32.mrb[10].mxu1 }
 0x11a   :  { %927 = vadd.xlane.f32.xlu1 %v926_v63  ;;  %v1980_v9 = vadd.f32 %v1513_v7, %v1512_v4  ;;  %v1541_v10 = vpop.f32.mrb[11].mxu1  ;;  %v861_v11 = vsel %vm828_vm0, %v1976_v3, 0.0  ;;  %v933_v16 = vmul.f32 %v1976_v3, %v1976_v3 }
 0x11b   :  { %v1984_v12 = vadd.f32 %v1541_v10, %v1540_v8  ;;  %862 = vadd.xlane.f32.xlu0 %v861_v11  ;;  %v877_v14 = vsel %vm828_vm0, %v1978_v6, 0.0  ;;  %v953_v33 = vmul.f32 %v1978_v6, %v1978_v6 }
 0x11c   :  { %v864_v13 = vsel %vm828_vm0, %v1980_v9, 0.0  ;;  %v934_v24 = vmul.f32 %v1980_v9, %v1980_v9  ;;  %v937_v31 = vsel %vm828_vm0, %v933_v16, 0.0 }
 0x11d   :  { %v880_v20 = vsel %vm828_vm0, %v1984_v12, 0.0  ;;  %v954_v37 = vmul.f32 %v1984_v12, %v1984_v12  ;;  %v957_v38 = vsel %vm828_vm0, %v953_v33, 0.0 }
 0x11e   :  { %865 = vadd.xlane.f32.xlu1 %v864_v13  ;;  %v1515_v15 = vpop.f32.mrb[12].mxu0  ;;  %v940_v36 = vsel %vm828_vm0, %v934_v24, 0.0 }
 0x11f   :  { %878 = vadd.xlane.f32.xlu0 %v877_v14  ;;  %v1516_v17 = vpop.f32.mrb[13].mxu0  ;;  %v1543_v18 = vpop.f32.mrb[12].mxu1  ;;  %v960_v40 = vsel %vm828_vm0, %v954_v37, 0.0 }
 0x120   :  { %v1994_v21 = vadd.f32 %v1516_v17, %v1515_v15  ;;  %v1518_v23 = vpop.f32.mrb[14].mxu0  ;;  %v1544_v26 = vpop.f32.mrb[13].mxu1 }
 0x121   :  { %v1519_v27 = vpop.f32.mrb[15].mxu0  ;;  %v1998_v29 = vadd.f32 %v1544_v26, %v1543_v18  ;;  %v1546_v30 = vpop.f32.mrb[14].mxu1 }
 0x122   :  { %881 = vadd.xlane.f32.xlu1 %v880_v20  ;;  %v2001_v32 = vadd.f32 %v1519_v27, %v1518_v23  ;;  %v1547_v34 = vpop.f32.mrb[15].mxu1  ;;  %v867_v41 = vsel %vm828_vm0, %v1994_v21, 0.0  ;;  %v935_v45 = vmul.f32 %v1994_v21, %v1994_v21 }
 0x123   :  { %938 = vadd.xlane.f32.xlu0 %v937_v31  ;;  %v2005_v35 = vadd.f32 %v1547_v34, %v1546_v30  ;;  %v883_v43 = vsel %vm828_vm0, %v1998_v29, 0.0  ;;  %v955_v50 = vmul.f32 %v1998_v29, %v1998_v29 }
 0x124   :  { %v870_v42 = vsel %vm828_vm0, %v2001_v32, 0.0  ;;  %v936_v47 = vmul.f32 %v2001_v32, %v2001_v32  ;;  %v943_v48 = vsel %vm828_vm0, %v935_v45, 0.0 }
 0x125   :  { %v886_v46 = vsel %vm828_vm0, %v2005_v35, 0.0  ;;  %v956_v52 = vmul.f32 %v2005_v35, %v2005_v35  ;;  %v963_v54 = vsel %vm828_vm0, %v955_v50, 0.0 }
 0x126   :  { %941 = vadd.xlane.f32.xlu1 %v940_v36  ;;  %v946_v51 = vsel %vm828_vm0, %v936_v47, 0.0 }
 0x127   :  { %958 = vadd.xlane.f32.xlu0 %v957_v38  ;;  %v966_v55 = vsel %vm828_vm0, %v956_v52, 0.0 }
 0x12a   :  { %961 = vadd.xlane.f32.xlu1 %v960_v40 }
 0x12b   :  { %868 = vadd.xlane.f32.xlu0 %v867_v41 }
 0x12e   :  { %871 = vadd.xlane.f32.xlu1 %v870_v42 }
 0x12f   :  { %884 = vadd.xlane.f32.xlu0 %v883_v43 }
 0x132   :  { %887 = vadd.xlane.f32.xlu1 %v886_v46 }
 0x133   :  { %944 = vadd.xlane.f32.xlu0 %v943_v48 }
 0x136   :  { %947 = vadd.xlane.f32.xlu1 %v946_v51 }
 0x137   :  { %964 = vadd.xlane.f32.xlu0 %v963_v54 }
 0x13a   :  { %967 = vadd.xlane.f32.xlu1 %v966_v55 }
 0x188   :  { %v831_v57 = vpop.xlane.xlu0 %830 }
 0x18b   :  { %v850_v58 = vpop.xlane.xlu1 %849 }
 0x18c   :  { %v847_v59 = vpop.xlane.xlu0 %846 }
 0x18d   :  { %v857_v15 = vadd.f32 %v847_v59, %v831_v57 }
 0x18f   :  { %v902_v60 = vpop.xlane.xlu1 %901 }
 0x190   :  { %v834_v61 = vpop.xlane.xlu0 %833 }
 0x191   :  { %v858_v17 = vadd.f32 %v850_v58, %v834_v61 }
 0x193   :  { %v922_v62 = vpop.xlane.xlu1 %921 }
 0x194   :  { %v899_v63 = vpop.xlane.xlu0 %898  ;;  %v930_v33 = vadd.f32 %v922_v62, %v902_v60 }
 0x197   :  { %v837_v0 = vpop.xlane.xlu1 %836 }
 0x198   :  { %v919_v1 = vpop.xlane.xlu0 %918 }
 0x199   :  { %v929_v27 = vadd.f32 %v919_v1, %v899_v63 }
 0x19b   :  { %v840_v2 = vpop.xlane.xlu1 %839 }
 0x19c   :  { %v853_v4 = vpop.xlane.xlu0 %852 }
 0x19d   :  { %v859_v54 = vadd.f32 %v853_v4, %v837_v0 }
 0x19f   :  { %v856_v5 = vpop.xlane.xlu1 %855 }
 0x1a0   :  { %v905_v7 = vpop.xlane.xlu0 %904  ;;  %v860_v58 = vadd.f32 %v856_v5, %v840_v2  ;;  %v989_v2 = vld [vmem:[%s2150_s2] sm:$0xff] }
 0x1a3   :  { %v908_v8 = vpop.xlane.xlu1 %907 }
 0x1a4   :  { %v925_v10 = vpop.xlane.xlu0 %924 }
 0x1a7   :  { %v928_v11 = vpop.xlane.xlu1 %927 }
 0x1a8   :  { %v863_v13 = vpop.xlane.xlu0 %862 }
 0x1a9   :  { %v873_v18 = vadd.f32 %v863_v13, %v857_v15  ;;  %v931_v13 = vadd.f32 %v925_v10, %v905_v7  ;;  %v990_v7 = vld [vmem:[%s2150_s2 + $0x8] sm:$0xff] }
 0x1ab   :  { %v866_v14 = vpop.xlane.xlu1 %865 }
 0x1ac   :  { %v879_v16 = vpop.xlane.xlu0 %878  ;;  %v874_v23 = vadd.f32 %v866_v14, %v858_v17 }
 0x1ad   :  { %v889_v24 = vadd.f32 %v879_v16, %v873_v18  ;;  %v932_v16 = vadd.f32 %v928_v11, %v908_v8 }
 0x1af   :  { %v882_v20 = vpop.xlane.xlu1 %881  ;;  %v973_v34 = vmul.f32 0.0078125, %v889_v24 }
 0x1b0   :  { %v939_v26 = vpop.xlane.xlu0 %938  ;;  %v890_v30 = vadd.f32 %v882_v20, %v874_v23 }
 0x1b1   :  { %v949_v36 = vadd.f32 %v939_v26, %v929_v27  ;;  %v981_v43 = vmul.f32 %v973_v34, %v973_v34 }
 0x1b2   :  { %v974_v38 = vmul.f32 0.0078125, %v890_v30 }
 0x1b3   :  { %v942_v31 = vpop.xlane.xlu1 %941 }
 0x1b4   :  { %v959_v37 = vpop.xlane.xlu0 %958  ;;  %v950_v40 = vadd.f32 %v942_v31, %v930_v33  ;;  %v982_v48 = vmul.f32 %v974_v38, %v974_v38 }
 0x1b5   :  { %v969_v41 = vadd.f32 %v959_v37, %v949_v36 }
 0x1b7   :  { %v962_v42 = vpop.xlane.xlu1 %961  ;;  %v977_v45 = vmul.f32 0.0078125, %v969_v41 }
 0x1b8   :  { %v970_v46 = vadd.f32 %v962_v42, %v950_v40  ;;  %v869_v47 = vpop.xlane.xlu0 %868  ;;  %v1005_v42 = vld [vmem:[%s2151_s3] sm:$0xff] }
 0x1b9   :  { %v985_v50 = vsub.f32 %v977_v45, %v981_v43  ;;  %v875_v60 = vadd.f32 %v869_v47, %v859_v54  ;;  %v1006_v47 = vld [vmem:[%s2151_s3 + $0x8] sm:$0xff]  ;;  %v992_v54 = vld [vmem:[%s2150_s2 + $0x18] sm:$0xff] }
 0x1ba   :  { %v978_v51 = vmul.f32 0.0078125, %v970_v46 }
 0x1bb   :  { %v872_v52 = vpop.xlane.xlu1 %871  ;;  %v993_v55 = vadd.f32 1e-05, %v985_v50 }
 0x1bc   :  { %v986_v56 = vsub.f32 %v978_v51, %v982_v48  ;;  %v885_v57 = vpop.xlane.xlu0 %884  ;;  %v876_v62 = vadd.f32 %v872_v52, %v860_v58 }
 0x1bd   :  { %1643 = vrsqrt.f32 %v993_v55  ;;  %v891_v63 = vadd.f32 %v885_v57, %v875_v60 }
 0x1be   :  { %v994_v59 = vadd.f32 1e-05, %v986_v56  ;;  %v1007_v56 = vld [vmem:[%s2151_s3 + $0x10] sm:$0xff] }
 0x1bf   :  { %v888_v61 = vpop.xlane.xlu1 %887  ;;  %v975_v17 = vmul.f32 0.0078125, %v891_v63 }
 0x1c0   :  { %1645 = vrsqrt.f32 %v994_v59  ;;  %v945_v1 = vpop.xlane.xlu0 %944  ;;  %v892_v14 = vadd.f32 %v888_v61, %v876_v62  ;;  %v1008_v59 = vld [vmem:[%s2151_s3 + $0x18] sm:$0xff] }
 0x1c1   :  { %v951_v18 = vadd.f32 %v945_v1, %v931_v13  ;;  %v983_v26 = vmul.f32 %v975_v17, %v975_v17 }
 0x1c2   :  { %v976_v0 = vmul.f32 0.0078125, %v892_v14 }
 0x1c3   :  { %v948_v15 = vpop.xlane.xlu1 %947 }
 0x1c4   :  { %v965_v20 = vpop.xlane.xlu0 %964  ;;  %v952_v4 = vadd.f32 %v948_v15, %v932_v16  ;;  %v984_v11 = vmul.f32 %v976_v0, %v976_v0 }
 0x1c5   :  { %v971_v23 = vadd.f32 %v965_v20, %v951_v18 }
 0x1c7   :  { %v968_v5 = vpop.xlane.xlu1 %967  ;;  %v1644_v24 = vpop.eup %1643  ;;  %v979_v27 = vmul.f32 0.0078125, %v971_v23 }
 0x1c8   :  { %v972_v30 = vadd.f32 %v968_v5, %v952_v4  ;;  %v1001_v8 = vmul.f32 %v1644_v24, %v989_v2 }
 0x1c9   :  { %v987_v31 = vsub.f32 %v979_v27, %v983_v26 }
 0x1ca   :  { %v1646_v10 = vpop.eup %1645  ;;  %v980_v33 = vmul.f32 0.0078125, %v972_v30  ;;  %1019 = vperm.xlu0 %1553, %v1001_v8   ;;  %v1009_v37 = vmul.f32 %v1001_v8, %v973_v34  ;;  %v991_v34 = vld [vmem:[%s2150_s2 + $0x10] sm:$0xff]  ;;  %s1652_s2 = smov 32  }
 0x1cb   :  { %v1002_v36 = vmul.f32 %v1646_v10, %v990_v7  ;;  %v995_v40 = vadd.f32 1e-05, %v987_v31 }
 0x1cc   :  { %v988_v41 = vsub.f32 %v980_v33, %v984_v11  ;;  %v1013_v45 = vsub.f32 %v1005_v42, %v1009_v37 }
 0x1cd   :  { %1024 = vperm.xlu1 %1554, %v1002_v36   ;;  %1647 = vrsqrt.f32 %v995_v40  ;;  %v1010_v46 = vmul.f32 %v1002_v36, %v974_v38 }
 0x1ce   :  { %v996_v43 = vadd.f32 1e-05, %v988_v41 }
 0x1cf   :  { %v1014_v48 = vsub.f32 %v1006_v47, %v1010_v46 }
 0x1d0   :  { %1649 = vrsqrt.f32 %v996_v43 }
 0x1d1   :  { %1043 = vperm.xlu1 %1554, %v1013_v45  }
 0x1d5   :  { %1048 = vperm.xlu1 %1554, %v1014_v48  }
 0x1d7   :  { %v1648_v50 = vpop.eup %1647 }
 0x1d8   :  { %v1003_v51 = vmul.f32 %v1648_v50, %v991_v34 }
 0x1da   :  { %v1650_v52 = vpop.eup %1649  ;;  %1029 = vperm.xlu1 %1554, %v1003_v51   ;;  %v1011_v55 = vmul.f32 %v1003_v51, %v975_v17 }
 0x1db   :  { %v1004_v38 = vmul.f32 %v1650_v52, %v992_v54 }
 0x1dc   :  { %v1015_v57 = vsub.f32 %v1007_v56, %v1011_v55 }
 0x1dd   :  { %v1012_v58 = vmul.f32 %v1004_v38, %v976_v0 }
 0x1de   :  { %1034 = vperm.xlu1 %1554, %v1004_v38  }
 0x1df   :  { %v1016_v60 = vsub.f32 %v1008_v59, %v1012_v58 }
 0x1e2   :  { %1053 = vperm.xlu1 %1554, %v1015_v57  }
 0x1e6   :  { %1058 = vperm.xlu1 %1554, %v1016_v60  }
 0x249   :  { %v1020_v61 = vpop.permute.xlu0 %1019 }
 0x24a   :  { %v1037_v63 = vmul.f32 %v1920_v19, %v1020_v61  ;;  %v1090_v1 = vmul.f32 %v1922_v22, %v1020_v61  ;;  %v1131_v13 = vmul.f32 %v1976_v3, %v1020_v61  ;;  %v1172_v23 = vmul.f32 %v1978_v6, %v1020_v61 }
 0x24c   :  { %v1025_v62 = vpop.permute.xlu1 %1024 }
 0x24d   :  { %v1038_v18 = vmul.f32 %v1924_v25, %v1025_v62  ;;  %v1091_v20 = vmul.f32 %v1928_v28, %v1025_v62  ;;  %v1132_v2 = vmul.f32 %v1980_v9, %v1025_v62  ;;  %v1173_v7 = vmul.f32 %v1984_v12, %v1025_v62 }
 0x250   :  { %v1044_v14 = vpop.permute.xlu1 %1043 }
 0x251   :  { %v1061_v15 = vadd.f32 %v1044_v14, %v1037_v63  ;;  %v1094_v16 = vadd.f32 %v1090_v1, %v1044_v14  ;;  %v1135_v17 = vadd.f32 %v1131_v13, %v1044_v14  ;;  %v1176_v30 = vadd.f32 %v1172_v23, %v1044_v14 }
 0x253   :  { %v1065_v0 = vmax.f32 %v1061_v15, 0.0  ;;  %v1098_v4 = vmax.f32 %v1094_v16, 0.0  ;;  %v1139_v26 = vmax.f32 %v1135_v17, 0.0  ;;  %v1180_v33 = vmax.f32 %v1176_v30, 0.0 }
 0x254   :  { %v1049_v5 = vpop.permute.xlu1 %1048 }
 0x255   :  { %v1421_v19 = vpack.c.bf16 %v1065_v0, %v1065_v0  ;;  %v1062_v22 = vadd.f32 %v1049_v5, %v1038_v18  ;;  %v1425_v24 = vpack.c.bf16 %v1098_v4, %v1098_v4  ;;  %v1095_v3 = vadd.f32 %v1091_v20, %v1049_v5 }
 0x256   :  { %v1136_v27 = vadd.f32 %v1132_v2, %v1049_v5  ;;  %v1177_v10 = vadd.f32 %v1173_v7, %v1049_v5  ;;  %v1429_v31 = vpack.c.bf16 %v1139_v26, %v1139_v26  ;;  %v1433_v40 = vpack.c.bf16 %v1180_v33, %v1180_v33 }
 0x257   :  { %v1066_v25 = vmax.f32 %v1062_v22, 0.0  ;;  %1114 = vrot.lane.b32.xlu1 %v1425_v24, %s1652_s2  ;;  %v1099_v28 = vmax.f32 %v1095_v3, 0.0  ;;  %1086 = vst.msk [vmem:[%s2152_s4] sm:$0xf] %vm1085_vm1, %v1421_v19 }
 0x258   :  { %v1140_v8 = vmax.f32 %v1136_v27, 0.0  ;;  %v1181_v36 = vmax.f32 %v1177_v10, 0.0 }
 0x259   :  { %v1422_v6 = vpack.c.bf16 %v1066_v25, %v1066_v25  ;;  %v1426_v9 = vpack.c.bf16 %v1099_v28, %v1099_v28  ;;  %v1030_v11 = vpop.permute.xlu1 %1029 }
 0x25a   :  { %v1430_v12 = vpack.c.bf16 %v1140_v8, %v1140_v8  ;;  %v1039_v41 = vmul.f32 %v1944_v39, %v1030_v11  ;;  %v1092_v42 = vmul.f32 %v1954_v49, %v1030_v11  ;;  %v1133_v43 = vmul.f32 %v1994_v21, %v1030_v11 }
 0x25b   :  { %1116 = vrot.lane.b32.xlu0 %v1426_v9, %s1652_s2  ;;  %1087 = vst.msk [vmem:[%s2152_s4 + $0x4] sm:$0xf] %vm1085_vm1, %v1422_v6  ;;  %1155 = vrot.lane.b32.xlu1 %v1429_v31, %s1653_s10  ;;  %v1434_v45 = vpack.c.bf16 %v1181_v36, %v1181_v36  ;;  %v1174_v50 = vmul.f32 %v1998_v29, %v1030_v11 }
 0x25d   :  { %v1035_v37 = vpop.permute.xlu1 %1034 }
 0x25e   :  { %v1040_v51 = vmul.f32 %v1949_v44, %v1035_v37  ;;  %v1093_v52 = vmul.f32 %v1958_v53, %v1035_v37  ;;  %v1134_v39 = vmul.f32 %v2001_v32, %v1035_v37  ;;  %v1175_v61 = vmul.f32 %v2005_v35, %v1035_v37 }
 0x25f   :  { %1157 = vrot.lane.b32.xlu0 %v1430_v12, %s1653_s10  ;;  %1196 = vrot.lane.b32.xlu1 %v1433_v40, %s1654_s1 }
 0x261   :  { %v1054_v46 = vpop.permute.xlu1 %1053 }
 0x262   :  { %v1063_v47 = vadd.f32 %v1054_v46, %v1039_v41  ;;  %v1096_v48 = vadd.f32 %v1092_v42, %v1054_v46  ;;  %v1137_v34 = vadd.f32 %v1133_v43, %v1054_v46  ;;  %v1178_v21 = vadd.f32 %v1174_v50, %v1054_v46 }
 0x263   :  { %1198 = vrot.lane.b32.xlu0 %v1434_v45, %s1654_s1 }
 0x264   :  { %v1067_v54 = vmax.f32 %v1063_v47, 0.0  ;;  %v1100_v38 = vmax.f32 %v1096_v48, 0.0  ;;  %v1141_v55 = vmax.f32 %v1137_v34, 0.0  ;;  %v1182_v29 = vmax.f32 %v1178_v21, 0.0 }
 0x265   :  { %v1059_v49 = vpop.permute.xlu1 %1058 }
 0x266   :  { %v1423_v56 = vpack.c.bf16 %v1067_v54, %v1067_v54  ;;  %v1064_v57 = vadd.f32 %v1059_v49, %v1040_v51  ;;  %v1427_v58 = vpack.c.bf16 %v1100_v38, %v1100_v38  ;;  %v1097_v59 = vadd.f32 %v1093_v52, %v1059_v49 }
 0x267   :  { %v1138_v60 = vadd.f32 %v1134_v39, %v1059_v49  ;;  %v1431_v53 = vpack.c.bf16 %v1141_v55, %v1141_v55  ;;  %v1179_v13 = vadd.f32 %v1175_v61, %v1059_v49  ;;  %v1435_v14 = vpack.c.bf16 %v1182_v29, %v1182_v29 }
 0x268   :  { %v1068_v62 = vmax.f32 %v1064_v57, 0.0  ;;  %1118 = vrot.lane.b32.xlu1 %v1427_v58, %s1652_s2  ;;  %v1101_v44 = vmax.f32 %v1097_v59, 0.0  ;;  %1088 = vst.msk [vmem:[%s2152_s4 + $0x8] sm:$0xf] %vm1085_vm1, %v1423_v56 }
 0x269   :  { %v1142_v1 = vmax.f32 %v1138_v60, 0.0  ;;  %v1183_v15 = vmax.f32 %v1179_v13, 0.0 }
 0x26a   :  { %v1424_v32 = vpack.c.bf16 %v1068_v62, %v1068_v62  ;;  %v1428_v63 = vpack.c.bf16 %v1101_v44, %v1101_v44 }
 0x26b   :  { %v1432_v35 = vpack.c.bf16 %v1142_v1, %v1142_v1  ;;  %v1436_v16 = vpack.c.bf16 %v1183_v15, %v1183_v15 }
 0x26c   :  { %1120 = vrot.lane.b32.xlu0 %v1428_v63, %s1652_s2  ;;  %1159 = vrot.lane.b32.xlu1 %v1431_v53, %s1653_s10  ;;  %1089 = vst.msk [vmem:[%s2152_s4 + $0xc] sm:$0xf] %vm1085_vm1, %v1424_v32 }
 0x270   :  { %1161 = vrot.lane.b32.xlu0 %v1432_v35, %s1653_s10  ;;  %1200 = vrot.lane.b32.xlu1 %v1435_v14, %s1654_s1 }
 0x274   :  { %1202 = vrot.lane.b32.xlu0 %v1436_v16, %s1654_s1 }
 0x2c9   :  { %v1115_v17 = vpop.permute.xlu1 %1114 }
 0x2ca   :  { %1127 = vst.msk [vmem:[%s2152_s4] sm:$0xf] %vm1126_vm2, %v1115_v17 }
 0x2cd   :  { %v1117_v18 = vpop.permute.xlu0 %1116  ;;  %v1156_v20 = vpop.permute.xlu1 %1155 }
 0x2ce   :  { %1128 = vst.msk [vmem:[%s2152_s4 + $0x4] sm:$0xf] %vm1126_vm2, %v1117_v18 }
 0x2cf   :  { %1168 = vst.msk [vmem:[%s2152_s4] sm:$0xf] %vm1167_vm3, %v1156_v20 }
 0x2d1   :  { %v1158_v0 = vpop.permute.xlu0 %1157  ;;  %v1197_v4 = vpop.permute.xlu1 %1196 }
 0x2d2   :  { %1169 = vst.msk [vmem:[%s2152_s4 + $0x4] sm:$0xf] %vm1167_vm3, %v1158_v0 }
 0x2d3   :  { %1209 = vst.msk [vmem:[%s2152_s4] sm:$0xf] %vm1208_vm4, %v1197_v4 }
 0x2d5   :  { %v1199_v23 = vpop.permute.xlu0 %1198 }
 0x2d6   :  { %1210 = vst.msk [vmem:[%s2152_s4 + $0x4] sm:$0xf] %vm1208_vm4, %v1199_v23 }
 0x2da   :  { %v1119_v2 = vpop.permute.xlu1 %1118 }
 0x2db   :  { %1129 = vst.msk [vmem:[%s2152_s4 + $0x8] sm:$0xf] %vm1126_vm2, %v1119_v2 }
 0x2de   :  { %v1160_v5 = vpop.permute.xlu1 %1159  ;;  %v1121_v19 = vpop.permute.xlu0 %1120 }
 0x2df   :  { %1170 = vst.msk [vmem:[%s2152_s4 + $0x8] sm:$0xf] %vm1167_vm3, %v1160_v5 }
 0x2e0   :  { %1130 = vst.msk [vmem:[%s2152_s4 + $0xc] sm:$0xf] %vm1126_vm2, %v1121_v19 }
 0x2e2   :  { %v1201_v22 = vpop.permute.xlu1 %1200  ;;  %v1162_v24 = vpop.permute.xlu0 %1161 }
 0x2e3   :  { %1211 = vst.msk [vmem:[%s2152_s4 + $0x8] sm:$0xf] %vm1208_vm4, %v1201_v22 }
 0x2e4   :  { %1171 = vst.msk [vmem:[%s2152_s4 + $0xc] sm:$0xf] %vm1167_vm3, %v1162_v24 }
 0x2e6   :  { %v1203_v3 = vpop.permute.xlu0 %1202 }
 0x2e7   :  { %1212 = vst.msk [vmem:[%s2152_s4 + $0xc] sm:$0xf] %vm1208_vm4, %v1203_v3 }

// kernel: generator_forward.5
= control target key start
LH: loop header
LB: loop body
LE: loop exit
PB: predicated region body
PF: predicated region fallthrough
CT: control target
= control target key end

     0   :  { %vm474_vm0 = vcmask 130048   ;;  %vm1580_vm1 = vcmask 15360   ;;  %vm1853_vm2 = vcmask 11264   ;;  %s5713_s1 = inlined_call_operand.vmem [shape: bf16[16,2], index: 1, kind: input, shape index: {}]   ;;  %s5714_s0 = inlined_call_operand.vmem [shape: bf16[1024,16], index: 0, kind: input, shape index: {}]   ;;  %s5715_s2 = inlined_call_operand.vmem [shape: f32[64,1], index: 2, kind: input, shape index: {}]   ;;  %s5716_s3 = inlined_call_operand.vmem [shape: f32[64,1], index: 3, kind: input, shape index: {}]   ;;  %s5717_s4 = inlined_call_operand.vmem [shape: bf16[1024,2], index: 4, kind: output, shape index: {}]  }
   0x1   :  { %v3411_v0 = vld [vmem:[%s5713_s1] sm:$0xff]   ;;  %v3413_v2 = vld [vmem:[%s5714_s0 + $0x8] sm:$0xff]   ;;  %v3414_v3 = vld [vmem:[%s5714_s0 + $0x10] sm:$0xff]  }
   0x2   :  { %v3412_v1 = vld [vmem:[%s5714_s0] sm:$0xff]   ;;  %3276 = vmatprep.subr.bf16.mxu0 %v3411_v0  ;;  %3406 = vmatprep.subr.bf16.mxu1 %v3411_v0  ;;  %v3417_v5 = vld [vmem:[%s5714_s0 + $0x108] sm:$0xff]   ;;  %v3420_v6 = vld [vmem:[%s5714_s0 + $0x110] sm:$0xff]  }
   0x3   :  { %3277 = vmatpush3.bf16.msra.mxu0 %v3411_v0  ;;  %3278 = vmatprep.mubr.msk.bf16.mxu0 %vm474_vm0, %v3412_v1  ;;  %v3416_v4 = vld [vmem:[%s5714_s0 + $0x100] sm:$0xff]   ;;  %v3415_v7 = vld [vmem:[%s5714_s0 + $0x18] sm:$0xff]   ;;  %v3419_v11 = vld [vmem:[%s5714_s0 + $0x28] sm:$0xff]  }
   0x4   :  { %3407 = vmatpush3.bf16.msra.mxu1 %v3411_v0  ;;  %3342 = vmatprep.mubr.msk.bf16.mxu1 %vm474_vm0, %v3416_v4  ;;  %v3418_v8 = vld [vmem:[%s5714_s0 + $0x20] sm:$0xff]   ;;  %v3421_v9 = vld [vmem:[%s5714_s0 + $0x118] sm:$0xff]   ;;  %v3422_v12 = vld [vmem:[%s5714_s0 + $0x30] sm:$0xff]  }
   0x5   :  { %v3424_v10 = vld [vmem:[%s5714_s0 + $0x120] sm:$0xff]   ;;  %v3425_v13 = vld [vmem:[%s5714_s0 + $0x128] sm:$0xff]   ;;  %v3428_v14 = vld [vmem:[%s5714_s0 + $0x130] sm:$0xff]  }
   0x6   :  { %3279 = vmatmul.mubr.msk.bf16.vlgmr.msra.gmra.mrb[0].mxu0 %vm474_vm0, %v3413_v2  ;;  %v3423_v15 = vld [vmem:[%s5714_s0 + $0x38] sm:$0xff]   ;;  %v3426_v16 = vld [vmem:[%s5714_s0 + $0x40] sm:$0xff]   ;;  %v3427_v19 = vld [vmem:[%s5714_s0 + $0x48] sm:$0xff]  }
   0x7   :  { %3282 = vmatprep.mubr.msk.bf16.mxu0 %vm474_vm0, %v3414_v3  ;;  %3343 = vmatmul.mubr.msk.bf16.vlgmr.msra.gmra.mrb[0].mxu1 %vm474_vm0, %v3417_v5  ;;  %v3429_v17 = vld [vmem:[%s5714_s0 + $0x138] sm:$0xff]   ;;  %v3432_v18 = vld [vmem:[%s5714_s0 + $0x140] sm:$0xff]   ;;  %v3430_v20 = vld [vmem:[%s5714_s0 + $0x50] sm:$0xff]  }
   0x8   :  { %3346 = vmatprep.mubr.msk.bf16.mxu1 %vm474_vm0, %v3420_v6  ;;  %v3433_v21 = vld [vmem:[%s5714_s0 + $0x148] sm:$0xff]   ;;  %v3436_v22 = vld [vmem:[%s5714_s0 + $0x150] sm:$0xff]   ;;  %v3431_v23 = vld [vmem:[%s5714_s0 + $0x58] sm:$0xff]  }
   0x9   :  { %v3434_v24 = vld [vmem:[%s5714_s0 + $0x60] sm:$0xff]   ;;  %v3437_v25 = vld [vmem:[%s5714_s0 + $0x158] sm:$0xff]   ;;  %v3435_v27 = vld [vmem:[%s5714_s0 + $0x68] sm:$0xff]  }
   0xa   :  { %v3440_v26 = vld [vmem:[%s5714_s0 + $0x160] sm:$0xff]   ;;  %v3438_v28 = vld [vmem:[%s5714_s0 + $0x70] sm:$0xff]   ;;  %v3441_v29 = vld [vmem:[%s5714_s0 + $0x168] sm:$0xff]  }
   0xb   :  { %v3444_v30 = vld [vmem:[%s5714_s0 + $0x170] sm:$0xff]   ;;  %v3439_v31 = vld [vmem:[%s5714_s0 + $0x78] sm:$0xff]   ;;  %v3442_v32 = vld [vmem:[%s5714_s0 + $0x80] sm:$0xff]  }
   0xc   :  { %v3445_v33 = vld [vmem:[%s5714_s0 + $0x178] sm:$0xff]   ;;  %v3448_v34 = vld [vmem:[%s5714_s0 + $0x180] sm:$0xff]   ;;  %v3443_v35 = vld [vmem:[%s5714_s0 + $0x88] sm:$0xff]  }
   0xd   :  { %v3446_v36 = vld [vmem:[%s5714_s0 + $0x90] sm:$0xff]   ;;  %v3449_v37 = vld [vmem:[%s5714_s0 + $0x188] sm:$0xff]   ;;  %v3447_v39 = vld [vmem:[%s5714_s0 + $0x98] sm:$0xff]  }
   0xe   :  { %3283 = vmatmul.mubr.msk.bf16.gmra.mrb[4].mxu0 %vm474_vm0, %v3415_v7  ;;  %v3452_v38 = vld [vmem:[%s5714_s0 + $0x190] sm:$0xff]   ;;  %v3450_v40 = vld [vmem:[%s5714_s0 + $0xa0] sm:$0xff]   ;;  %v3453_v41 = vld [vmem:[%s5714_s0 + $0x198] sm:$0xff]  }
   0xf   :  { %3286 = vmatprep.mubr.msk.bf16.mxu0 %vm474_vm0, %v3418_v8  ;;  %3347 = vmatmul.mubr.msk.bf16.gmra.mrb[4].mxu1 %vm474_vm0, %v3421_v9  ;;  %v3456_v42 = vld [vmem:[%s5714_s0 + $0x1a0] sm:$0xff]   ;;  %v3451_v43 = vld [vmem:[%s5714_s0 + $0xa8] sm:$0xff]   ;;  %v3454_v44 = vld [vmem:[%s5714_s0 + $0xb0] sm:$0xff]  }
  0x10   :  { %3350 = vmatprep.mubr.msk.bf16.mxu1 %vm474_vm0, %v3424_v10  ;;  %v3457_v45 = vld [vmem:[%s5714_s0 + $0x1a8] sm:$0xff]   ;;  %v3460_v46 = vld [vmem:[%s5714_s0 + $0x1b0] sm:$0xff]   ;;  %v3455_v47 = vld [vmem:[%s5714_s0 + $0xb8] sm:$0xff]  }
  0x11   :  { %v3458_v48 = vld [vmem:[%s5714_s0 + $0xc0] sm:$0xff]   ;;  %v3461_v49 = vld [vmem:[%s5714_s0 + $0x1b8] sm:$0xff]   ;;  %v3459_v51 = vld [vmem:[%s5714_s0 + $0xc8] sm:$0xff]  }
  0x12   :  { %v3464_v50 = vld [vmem:[%s5714_s0 + $0x1c0] sm:$0xff]   ;;  %v3462_v52 = vld [vmem:[%s5714_s0 + $0xd0] sm:$0xff]   ;;  %v3465_v53 = vld [vmem:[%s5714_s0 + $0x1c8] sm:$0xff]  }
  0x13   :  { %v3468_v54 = vld [vmem:[%s5714_s0 + $0x1d0] sm:$0xff]   ;;  %v3463_v55 = vld [vmem:[%s5714_s0 + $0xd8] sm:$0xff]   ;;  %v3466_v56 = vld [vmem:[%s5714_s0 + $0xe0] sm:$0xff]  }
  0x14   :  { %v3469_v57 = vld [vmem:[%s5714_s0 + $0x1d8] sm:$0xff]   ;;  %v3472_v58 = vld [vmem:[%s5714_s0 + $0x1e0] sm:$0xff]   ;;  %v3467_v59 = vld [vmem:[%s5714_s0 + $0xe8] sm:$0xff]  }
  0x15   :  { %v3470_v60 = vld [vmem:[%s5714_s0 + $0xf0] sm:$0xff]   ;;  %v3473_v61 = vld [vmem:[%s5714_s0 + $0x1e8] sm:$0xff]   ;;  %v3471_v63 = vld [vmem:[%s5714_s0 + $0xf8] sm:$0xff]  }
  0x16   :  { %3287 = vmatmul.mubr.msk.bf16.gmra.mrb[8].mxu0 %vm474_vm0, %v3419_v11  ;;  %v3474_v62 = vld [vmem:[%s5714_s0 + $0x1f0] sm:$0xff]   ;;  %v3475_v0 = vld [vmem:[%s5714_s0 + $0x1f8] sm:$0xff]  }
  0x17   :  { %3290 = vmatprep.mubr.msk.bf16.mxu0 %vm474_vm0, %v3422_v12  ;;  %3351 = vmatmul.mubr.msk.bf16.gmra.mrb[8].mxu1 %vm474_vm0, %v3425_v13 }
  0x18   :  { %3354 = vmatprep.mubr.msk.bf16.mxu1 %vm474_vm0, %v3428_v14 }
  0x1e   :  { %3291 = vmatmul.mubr.msk.bf16.gmra.mrb[12].mxu0 %vm474_vm0, %v3423_v15 }
  0x1f   :  { %3294 = vmatprep.mubr.msk.bf16.mxu0 %vm474_vm0, %v3426_v16  ;;  %3355 = vmatmul.mubr.msk.bf16.gmra.mrb[12].mxu1 %vm474_vm0, %v3429_v17 }
  0x20   :  { %3358 = vmatprep.mubr.msk.bf16.mxu1 %vm474_vm0, %v3432_v18 }
  0x26   :  { %3295 = vmatmul.mubr.msk.bf16.gmra.mrb[16].mxu0 %vm474_vm0, %v3427_v19 }
  0x27   :  { %3298 = vmatprep.mubr.msk.bf16.mxu0 %vm474_vm0, %v3430_v20  ;;  %3359 = vmatmul.mubr.msk.bf16.gmra.mrb[16].mxu1 %vm474_vm0, %v3433_v21 }
  0x28   :  { %3362 = vmatprep.mubr.msk.bf16.mxu1 %vm474_vm0, %v3436_v22 }
  0x2e   :  { %3299 = vmatmul.mubr.msk.bf16.gmra.mrb[20].mxu0 %vm474_vm0, %v3431_v23 }
  0x2f   :  { %3302 = vmatprep.mubr.msk.bf16.mxu0 %vm474_vm0, %v3434_v24  ;;  %3363 = vmatmul.mubr.msk.bf16.gmra.mrb[20].mxu1 %vm474_vm0, %v3437_v25 }
  0x30   :  { %3366 = vmatprep.mubr.msk.bf16.mxu1 %vm474_vm0, %v3440_v26 }
  0x36   :  { %3303 = vmatmul.mubr.msk.bf16.gmra.mrb[24].mxu0 %vm474_vm0, %v3435_v27 }
  0x37   :  { %3306 = vmatprep.mubr.msk.bf16.mxu0 %vm474_vm0, %v3438_v28  ;;  %3367 = vmatmul.mubr.msk.bf16.gmra.mrb[24].mxu1 %vm474_vm0, %v3441_v29 }
  0x38   :  { %3370 = vmatprep.mubr.msk.bf16.mxu1 %vm474_vm0, %v3444_v30 }
  0x3e   :  { %3307 = vmatmul.mubr.msk.bf16.gmra.mrb[28].mxu0 %vm474_vm0, %v3439_v31 }
  0x3f   :  { %3310 = vmatprep.mubr.msk.bf16.mxu0 %vm474_vm0, %v3442_v32  ;;  %3371 = vmatmul.mubr.msk.bf16.gmra.mrb[28].mxu1 %vm474_vm0, %v3445_v33 }
  0x40   :  { %3374 = vmatprep.mubr.msk.bf16.mxu1 %vm474_vm0, %v3448_v34 }
  0x46   :  { %3311 = vmatmul.mubr.msk.bf16.gmra.mrb[32].mxu0 %vm474_vm0, %v3443_v35 }
  0x47   :  { %3314 = vmatprep.mubr.msk.bf16.mxu0 %vm474_vm0, %v3446_v36  ;;  %3375 = vmatmul.mubr.msk.bf16.gmra.mrb[32].mxu1 %vm474_vm0, %v3449_v37 }
  0x48   :  { %3378 = vmatprep.mubr.msk.bf16.mxu1 %vm474_vm0, %v3452_v38 }
  0x4e   :  { %3315 = vmatmul.mubr.msk.bf16.gmra.mrb[36].mxu0 %vm474_vm0, %v3447_v39 }
  0x4f   :  { %3318 = vmatprep.mubr.msk.bf16.mxu0 %vm474_vm0, %v3450_v40  ;;  %3379 = vmatmul.mubr.msk.bf16.gmra.mrb[36].mxu1 %vm474_vm0, %v3453_v41 }
  0x50   :  { %3382 = vmatprep.mubr.msk.bf16.mxu1 %vm474_vm0, %v3456_v42 }
  0x56   :  { %3319 = vmatmul.mubr.msk.bf16.gmra.mrb[40].mxu0 %vm474_vm0, %v3451_v43 }
  0x57   :  { %3322 = vmatprep.mubr.msk.bf16.mxu0 %vm474_vm0, %v3454_v44  ;;  %3383 = vmatmul.mubr.msk.bf16.gmra.mrb[40].mxu1 %vm474_vm0, %v3457_v45 }
  0x58   :  { %3386 = vmatprep.mubr.msk.bf16.mxu1 %vm474_vm0, %v3460_v46 }
  0x5e   :  { %3323 = vmatmul.mubr.msk.bf16.gmra.mrb[44].mxu0 %vm474_vm0, %v3455_v47 }
  0x5f   :  { %3326 = vmatprep.mubr.msk.bf16.mxu0 %vm474_vm0, %v3458_v48  ;;  %3387 = vmatmul.mubr.msk.bf16.gmra.mrb[44].mxu1 %vm474_vm0, %v3461_v49 }
  0x60   :  { %3390 = vmatprep.mubr.msk.bf16.mxu1 %vm474_vm0, %v3464_v50 }
  0x66   :  { %3327 = vmatmul.mubr.msk.bf16.gmra.mrb[48].mxu0 %vm474_vm0, %v3459_v51 }
  0x67   :  { %3330 = vmatprep.mubr.msk.bf16.mxu0 %vm474_vm0, %v3462_v52  ;;  %3391 = vmatmul.mubr.msk.bf16.gmra.mrb[48].mxu1 %vm474_vm0, %v3465_v53 }
  0x68   :  { %3394 = vmatprep.mubr.msk.bf16.mxu1 %vm474_vm0, %v3468_v54 }
  0x6e   :  { %3331 = vmatmul.mubr.msk.bf16.gmra.mrb[52].mxu0 %vm474_vm0, %v3463_v55 }
  0x6f   :  { %3334 = vmatprep.mubr.msk.bf16.mxu0 %vm474_vm0, %v3466_v56  ;;  %3395 = vmatmul.mubr.msk.bf16.gmra.mrb[52].mxu1 %vm474_vm0, %v3469_v57 }
  0x70   :  { %3398 = vmatprep.mubr.msk.bf16.mxu1 %vm474_vm0, %v3472_v58 }
  0x76   :  { %3335 = vmatmul.mubr.msk.bf16.gmra.mrb[56].mxu0 %vm474_vm0, %v3467_v59 }
  0x77   :  { %3338 = vmatprep.mubr.msk.bf16.mxu0 %vm474_vm0, %v3470_v60  ;;  %3399 = vmatmul.mubr.msk.bf16.gmra.mrb[56].mxu1 %vm474_vm0, %v3473_v61 }
  0x78   :  { %3402 = vmatprep.mubr.msk.bf16.mxu1 %vm474_vm0, %v3474_v62 }
  0x7e   :  { %3339 = vmatmul.mubr.msk.bf16.gmra.mrb[60].mxu0 %vm474_vm0, %v3471_v63 }
  0x7f   :  { %3403 = vmatmul.mubr.msk.bf16.gmra.mrb[60].mxu1 %vm474_vm0, %v3475_v0 }
  0xd9   :  { %v3777_v1 = vpop.f32.mrb[0].mxu0 }
  0xda   :  { %5860 = vst [vmem:[#allocation2_spill] sm:$0xff] %v3777_v1  ;;  %v3779_v2 = vpop.f32.mrb[1].mxu0  ;;  %v3783_v4 = vpop.f32.mrb[0].mxu1  ;;  %v1214_v18 = vmul.f32 %v3777_v1, %v3777_v1 }
  0xdb   :  { %5861 = vst [vmem:[#allocation3_spill] sm:$0xff] %v3779_v2  ;;  %v3781_v3 = vpop.f32.mrb[2].mxu0  ;;  %5863 = vst [vmem:[#allocation5_spill] sm:$0xff] %v3783_v4  ;;  %v3787_v6 = vpop.f32.mrb[1].mxu1  ;;  %v1212_v22 = vmul.f32 %v3779_v2, %v3779_v2 }
  0xdc   :  { %5862 = vst [vmem:[#allocation4_spill] sm:$0xff] %v3781_v3  ;;  %v3785_v5 = vpop.f32.mrb[3].mxu0  ;;  %5865 = vst [vmem:[#allocation7_spill] sm:$0xff] %v3787_v6  ;;  %v3789_v7 = vpop.f32.mrb[2].mxu1  ;;  %v1215_v27 = vmul.f32 %v3781_v3, %v3781_v3 }
  0xdd   :  { %5864 = vst [vmem:[#allocation6_spill] sm:$0xff] %v3785_v5  ;;  %v3791_v8 = vpop.f32.mrb[3].mxu1  ;;  %v1213_v33 = vmul.f32 %v3785_v5, %v3785_v5 }
  0xde   :  { %5866 = vst [vmem:[#allocation8_spill] sm:$0xff] %v3791_v8 }
  0xe1   :  { %v3793_v9 = vpop.f32.mrb[4].mxu0 }
  0xe2   :  { %5867 = vst [vmem:[#allocation9_spill] sm:$0xff] %v3793_v9  ;;  %v3795_v10 = vpop.f32.mrb[5].mxu0  ;;  %v3799_v12 = vpop.f32.mrb[4].mxu1  ;;  %v1218_v42 = vmul.f32 %v3793_v9, %v3793_v9 }
  0xe3   :  { %5868 = vst [vmem:[#allocation10_spill] sm:$0xff] %v3795_v10  ;;  %v3797_v11 = vpop.f32.mrb[6].mxu0  ;;  %5870 = vst [vmem:[#allocation12_spill] sm:$0xff] %v3799_v12  ;;  %v3803_v14 = vpop.f32.mrb[5].mxu1  ;;  %v1216_v46 = vmul.f32 %v3795_v10, %v3795_v10 }
  0xe4   :  { %5869 = vst [vmem:[#allocation11_spill] sm:$0xff] %v3797_v11  ;;  %v3801_v13 = vpop.f32.mrb[7].mxu0  ;;  %5872 = vst [vmem:[#allocation14_spill] sm:$0xff] %v3803_v14  ;;  %v3805_v15 = vpop.f32.mrb[6].mxu1  ;;  %v1219_v51 = vmul.f32 %v3797_v11, %v3797_v11 }
  0xe5   :  { %5871 = vst [vmem:[#allocation13_spill] sm:$0xff] %v3801_v13  ;;  %5873 = vst [vmem:[#allocation15_spill] sm:$0xff] %v3805_v15  ;;  %v3807_v16 = vpop.f32.mrb[7].mxu1  ;;  %v1217_v57 = vmul.f32 %v3801_v13, %v3801_v13 }
  0xe6   :  { %5874 = vst [vmem:[#allocation16_spill] sm:$0xff] %v3807_v16 }
  0xe9   :  { %v3809_v17 = vpop.f32.mrb[8].mxu0 }
  0xea   :  { %5875 = vst [vmem:[#allocation17_spill] sm:$0xff] %v3809_v17  ;;  %v1222_v19 = vadd.f32 %v3809_v17, %v3777_v1  ;;  %v1230_v20 = vmul.f32 %v3809_v17, %v3809_v17  ;;  %v3817_v21 = vpop.f32.mrb[9].mxu0  ;;  %v3827_v26 = vpop.f32.mrb[8].mxu1 }
  0xeb   :  { %5876 = vst [vmem:[#allocation18_spill] sm:$0xff] %v3817_v21  ;;  %v1220_v23 = vadd.f32 %v3817_v21, %v3779_v2  ;;  %v1228_v24 = vmul.f32 %v3817_v21, %v3817_v21  ;;  %v3825_v25 = vpop.f32.mrb[10].mxu0  ;;  %v3837_v32 = vpop.f32.mrb[9].mxu1 }
  0xec   :  { %5877 = vst [vmem:[#allocation19_spill] sm:$0xff] %v3825_v25  ;;  %v1238_v28 = vadd.f32 %v1230_v20, %v1214_v18  ;;  %v1223_v29 = vadd.f32 %v3825_v25, %v3781_v3  ;;  %v1231_v30 = vmul.f32 %v3825_v25, %v3825_v25  ;;  %v3835_v31 = vpop.f32.mrb[11].mxu0  ;;  %5879 = vst [vmem:[#allocation21_spill] sm:$0xff] %v3837_v32  ;;  %v3845_v37 = vpop.f32.mrb[10].mxu1 }
  0xed   :  { %5878 = vst [vmem:[#allocation20_spill] sm:$0xff] %v3835_v31  ;;  %v1236_v34 = vadd.f32 %v1228_v24, %v1212_v22  ;;  %v1221_v35 = vadd.f32 %v3835_v31, %v3785_v5  ;;  %v1229_v36 = vmul.f32 %v3835_v31, %v3835_v31  ;;  %5880 = vst [vmem:[#allocation22_spill] sm:$0xff] %v3845_v37  ;;  %v3847_v39 = vpop.f32.mrb[11].mxu1 }
  0xee   :  { %v1239_v38 = vadd.f32 %v1231_v30, %v1215_v27  ;;  %5881 = vst [vmem:[#allocation23_spill] sm:$0xff] %v3847_v39 }
  0xef   :  { %v1237_v40 = vadd.f32 %v1229_v36, %v1213_v33 }
  0xf1   :  { %v3849_v41 = vpop.f32.mrb[12].mxu0 }
  0xf2   :  { %5882 = vst [vmem:[#allocation24_spill] sm:$0xff] %v3849_v41  ;;  %v1226_v43 = vadd.f32 %v3849_v41, %v3793_v9  ;;  %v1234_v44 = vmul.f32 %v3849_v41, %v3849_v41  ;;  %v3857_v45 = vpop.f32.mrb[13].mxu0  ;;  %v3867_v50 = vpop.f32.mrb[12].mxu1 }
  0xf3   :  { %5883 = vst [vmem:[#allocation25_spill] sm:$0xff] %v3857_v45  ;;  %v1224_v47 = vadd.f32 %v3857_v45, %v3795_v10  ;;  %v1232_v48 = vmul.f32 %v3857_v45, %v3857_v45  ;;  %v3865_v49 = vpop.f32.mrb[14].mxu0  ;;  %5885 = vst [vmem:[#allocation27_spill] sm:$0xff] %v3867_v50  ;;  %v3877_v56 = vpop.f32.mrb[13].mxu1 }
  0xf4   :  { %5884 = vst [vmem:[#allocation26_spill] sm:$0xff] %v3865_v49  ;;  %v1242_v52 = vadd.f32 %v1234_v44, %v1218_v42  ;;  %v1227_v53 = vadd.f32 %v3865_v49, %v3797_v11  ;;  %v1235_v54 = vmul.f32 %v3865_v49, %v3865_v49  ;;  %v3875_v55 = vpop.f32.mrb[15].mxu0  ;;  %5887 = vst [vmem:[#allocation29_spill] sm:$0xff] %v3877_v56  ;;  %v3885_v61 = vpop.f32.mrb[14].mxu1 }
  0xf5   :  { %5886 = vst [vmem:[#allocation28_spill] sm:$0xff] %v3875_v55  ;;  %v1240_v58 = vadd.f32 %v1232_v48, %v1216_v46  ;;  %v1225_v59 = vadd.f32 %v3875_v55, %v3801_v13  ;;  %v1233_v60 = vmul.f32 %v3875_v55, %v3875_v55  ;;  %5888 = vst [vmem:[#allocation30_spill] sm:$0xff] %v3885_v61  ;;  %v3887_v63 = vpop.f32.mrb[15].mxu1 }
  0xf6   :  { %v1243_v62 = vadd.f32 %v1235_v54, %v1219_v51  ;;  %5889 = vst [vmem:[#allocation31_spill] sm:$0xff] %v3887_v63 }
  0xf7   :  { %v1241_v0 = vadd.f32 %v1233_v60, %v1217_v57 }
  0xf9   :  { %v3889_v18 = vpop.f32.mrb[16].mxu0 }
  0xfa   :  { %5890 = vst [vmem:[#allocation32_spill] sm:$0xff] %v3889_v18  ;;  %v1246_v20 = vadd.f32 %v3889_v18, %v1222_v19  ;;  %v1254_v22 = vmul.f32 %v3889_v18, %v3889_v18  ;;  %v3894_v24 = vpop.f32.mrb[17].mxu0  ;;  %v3901_v36 = vpop.f32.mrb[16].mxu1 }
  0xfb   :  { %5891 = vst [vmem:[#allocation33_spill] sm:$0xff] %v3894_v24  ;;  %v1244_v27 = vadd.f32 %v1220_v23, %v3894_v24  ;;  %v1252_v30 = vmul.f32 %v3894_v24, %v3894_v24  ;;  %v3899_v33 = vpop.f32.mrb[18].mxu0  ;;  %v3908_v48 = vpop.f32.mrb[17].mxu1 }
  0xfc   :  { %5892 = vst [vmem:[#allocation34_spill] sm:$0xff] %v3899_v33  ;;  %v1262_v42 = vadd.f32 %v1254_v22, %v1238_v28  ;;  %v1247_v44 = vadd.f32 %v3899_v33, %v1223_v29  ;;  %v1255_v19 = vmul.f32 %v3899_v33, %v3899_v33  ;;  %v3906_v46 = vpop.f32.mrb[19].mxu0  ;;  %5894 = vst [vmem:[#allocation36_spill] sm:$0xff] %v3908_v48  ;;  %v3913_v57 = vpop.f32.mrb[18].mxu1 }
  0xfd   :  { %5893 = vst [vmem:[#allocation35_spill] sm:$0xff] %v3906_v46  ;;  %v1260_v51 = vadd.f32 %v1252_v30, %v1236_v34  ;;  %v1245_v23 = vadd.f32 %v1221_v35, %v3906_v46  ;;  %v1253_v54 = vmul.f32 %v3906_v46, %v3906_v46  ;;  %5895 = vst [vmem:[#allocation37_spill] sm:$0xff] %v3913_v57  ;;  %v3915_v41 = vpop.f32.mrb[19].mxu1 }
  0xfe   :  { %v1263_v60 = vadd.f32 %v1255_v19, %v1239_v38  ;;  %5896 = vst [vmem:[#allocation38_spill] sm:$0xff] %v3915_v41 }
  0xff   :  { %v1261_v28 = vadd.f32 %v1253_v54, %v1237_v40 }
 0x101   :  { %v3917_v29 = vpop.f32.mrb[20].mxu0 }
 0x102   :  { %5897 = vst [vmem:[#allocation39_spill] sm:$0xff] %v3917_v29  ;;  %v1250_v22 = vadd.f32 %v3917_v29, %v1226_v43  ;;  %v1258_v9 = vmul.f32 %v3917_v29, %v3917_v29  ;;  %v3922_v55 = vpop.f32.mrb[21].mxu0  ;;  %v3929_v38 = vpop.f32.mrb[20].mxu1 }
 0x103   :  { %5898 = vst [vmem:[#allocation40_spill] sm:$0xff] %v3922_v55  ;;  %v1248_v34 = vadd.f32 %v1224_v47, %v3922_v55  ;;  %v1256_v35 = vmul.f32 %v3922_v55, %v3922_v55  ;;  %v3927_v30 = vpop.f32.mrb[22].mxu0  ;;  %5900 = vst [vmem:[#allocation42_spill] sm:$0xff] %v3929_v38  ;;  %v3936_v29 = vpop.f32.mrb[21].mxu1 }
 0x104   :  { %5899 = vst [vmem:[#allocation41_spill] sm:$0xff] %v3927_v30  ;;  %v1266_v19 = vadd.f32 %v1258_v9, %v1242_v52  ;;  %v1251_v40 = vadd.f32 %v3927_v30, %v1227_v53  ;;  %v1259_v43 = vmul.f32 %v3927_v30, %v3927_v30  ;;  %v3934_v54 = vpop.f32.mrb[23].mxu0  ;;  %5902 = vst [vmem:[#allocation44_spill] sm:$0xff] %v3936_v29  ;;  %v3941_v11 = vpop.f32.mrb[22].mxu1 }
 0x105   :  { %5901 = vst [vmem:[#allocation43_spill] sm:$0xff] %v3934_v54  ;;  %v1264_v13 = vadd.f32 %v1256_v35, %v1240_v58  ;;  %v1249_v47 = vadd.f32 %v1225_v59, %v3934_v54  ;;  %v1257_v49 = vmul.f32 %v3934_v54, %v3934_v54  ;;  %5903 = vst [vmem:[#allocation45_spill] sm:$0xff] %v3941_v11  ;;  %v3943_v45 = vpop.f32.mrb[23].mxu1 }
 0x106   :  { %v1267_v55 = vadd.f32 %v1259_v43, %v1243_v62  ;;  %5904 = vst [vmem:[#allocation46_spill] sm:$0xff] %v3943_v45 }
 0x107   :  { %v1265_v9 = vadd.f32 %v1257_v49, %v1241_v0 }
 0x109   :  { %v3945_v52 = vpop.f32.mrb[24].mxu0 }
 0x10a   :  { %5905 = vst [vmem:[#allocation47_spill] sm:$0xff] %v3945_v52  ;;  %v1270_v53 = vadd.f32 %v3945_v52, %v1246_v20  ;;  %v1278_v30 = vmul.f32 %v3945_v52, %v3945_v52  ;;  %v3950_v10 = vpop.f32.mrb[25].mxu0  ;;  %v3957_v62 = vpop.f32.mrb[24].mxu1 }
 0x10b   :  { %5906 = vst [vmem:[#allocation48_spill] sm:$0xff] %v3950_v10  ;;  %v1268_v58 = vadd.f32 %v1244_v27, %v3950_v10  ;;  %v1276_v59 = vmul.f32 %v3950_v10, %v3950_v10  ;;  %v3955_v35 = vpop.f32.mrb[26].mxu0  ;;  %5908 = vst [vmem:[#allocation50_spill] sm:$0xff] %v3957_v62  ;;  %v3964_v54 = vpop.f32.mrb[25].mxu1 }
 0x10c   :  { %5907 = vst [vmem:[#allocation49_spill] sm:$0xff] %v3955_v35  ;;  %v1286_v43 = vadd.f32 %v1278_v30, %v1262_v42  ;;  %v1271_v49 = vadd.f32 %v3955_v35, %v1247_v44  ;;  %v1279_v0 = vmul.f32 %v3955_v35, %v3955_v35  ;;  %v3962_v20 = vpop.f32.mrb[27].mxu0  ;;  %5910 = vst [vmem:[#allocation52_spill] sm:$0xff] %v3964_v54  ;;  %v3969_v5 = vpop.f32.mrb[26].mxu1 }
 0x10d   :  { %5909 = vst [vmem:[#allocation51_spill] sm:$0xff] %v3962_v20  ;;  %v1284_v46 = vadd.f32 %v1276_v59, %v1260_v51  ;;  %v1269_v27 = vadd.f32 %v1245_v23, %v3962_v20  ;;  %v1277_v31 = vmul.f32 %v3962_v20, %v3962_v20  ;;  %5911 = vst [vmem:[#allocation53_spill] sm:$0xff] %v3969_v5  ;;  %v3971_v24 = vpop.f32.mrb[27].mxu1 }
 0x10e   :  { %v1287_v10 = vadd.f32 %v1279_v0, %v1263_v60  ;;  %5912 = vst [vmem:[#allocation54_spill] sm:$0xff] %v3971_v24 }
 0x10f   :  { %v1285_v42 = vadd.f32 %v1277_v31, %v1261_v28 }
 0x111   :  { %v3973_v44 = vpop.f32.mrb[28].mxu0 }
 0x112   :  { %5913 = vst [vmem:[#allocation55_spill] sm:$0xff] %v3973_v44  ;;  %v1274_v30 = vadd.f32 %v3973_v44, %v1250_v22  ;;  %v1282_v21 = vmul.f32 %v3973_v44, %v3973_v44  ;;  %v3978_v2 = vpop.f32.mrb[29].mxu0  ;;  %v3985_v60 = vpop.f32.mrb[28].mxu1 }
 0x113   :  { %5914 = vst [vmem:[#allocation56_spill] sm:$0xff] %v3978_v2  ;;  %v1272_v51 = vadd.f32 %v1248_v34, %v3978_v2  ;;  %v1280_v23 = vmul.f32 %v3978_v2, %v3978_v2  ;;  %v3983_v59 = vpop.f32.mrb[30].mxu0  ;;  %5916 = vst [vmem:[#allocation58_spill] sm:$0xff] %v3985_v60  ;;  %v3992_v44 = vpop.f32.mrb[29].mxu1 }
 0x114   :  { %5915 = vst [vmem:[#allocation57_spill] sm:$0xff] %v3983_v59  ;;  %v1290_v0 = vadd.f32 %v1282_v21, %v1266_v19  ;;  %v1275_v31 = vadd.f32 %v3983_v59, %v1251_v40  ;;  %v1283_v28 = vmul.f32 %v3983_v59, %v3983_v59  ;;  %v3990_v22 = vpop.f32.mrb[31].mxu0  ;;  %5918 = vst [vmem:[#allocation60_spill] sm:$0xff] %v3992_v44  ;;  %v3997_v35 = vpop.f32.mrb[30].mxu1 }
 0x115   :  { %5917 = vst [vmem:[#allocation59_spill] sm:$0xff] %v3990_v22  ;;  %v1288_v20 = vadd.f32 %v1280_v23, %v1264_v13  ;;  %v1273_v34 = vadd.f32 %v1249_v47, %v3990_v22  ;;  %v1281_v2 = vmul.f32 %v3990_v22, %v3990_v22  ;;  %5919 = vst [vmem:[#allocation61_spill] sm:$0xff] %v3997_v35  ;;  %v3999_v25 = vpop.f32.mrb[31].mxu1 }
 0x116   :  { %v1291_v33 = vadd.f32 %v1283_v28, %v1267_v55  ;;  %5920 = vst [vmem:[#allocation62_spill] sm:$0xff] %v3999_v25 }
 0x117   :  { %v1289_v21 = vadd.f32 %v1281_v2, %v1265_v9 }
 0x119   :  { %v4001_v19 = vpop.f32.mrb[32].mxu0 }
 0x11a   :  { %5921 = vst [vmem:[#allocation63_spill] sm:$0xff] %v4001_v19  ;;  %v1294_v40 = vadd.f32 %v4001_v19, %v1270_v53  ;;  %v1302_v59 = vmul.f32 %v4001_v19, %v4001_v19  ;;  %v4006_v3 = vpop.f32.mrb[33].mxu0  ;;  %v4013_v55 = vpop.f32.mrb[32].mxu1 }
 0x11b   :  { %5922 = vst [vmem:[#allocation64_spill] sm:$0xff] %v4006_v3  ;;  %v1292_v13 = vadd.f32 %v1268_v58, %v4006_v3  ;;  %v1300_v47 = vmul.f32 %v4006_v3, %v4006_v3  ;;  %v4011_v23 = vpop.f32.mrb[34].mxu0  ;;  %5924 = vst [vmem:[#allocation66_spill] sm:$0xff] %v4013_v55  ;;  %v4020_v22 = vpop.f32.mrb[33].mxu1 }
 0x11c   :  { %5923 = vst [vmem:[#allocation65_spill] sm:$0xff] %v4011_v23  ;;  %v1310_v28 = vadd.f32 %v1302_v59, %v1286_v43  ;;  %v1295_v2 = vadd.f32 %v4011_v23, %v1271_v49  ;;  %v1303_v9 = vmul.f32 %v4011_v23, %v4011_v23  ;;  %v4018_v53 = vpop.f32.mrb[35].mxu0  ;;  %5926 = vst [vmem:[#allocation68_spill] sm:$0xff] %v4020_v22  ;;  %v4025_v52 = vpop.f32.mrb[34].mxu1 }
 0x11d   :  { %5925 = vst [vmem:[#allocation67_spill] sm:$0xff] %v4018_v53  ;;  %v1308_v19 = vadd.f32 %v1300_v47, %v1284_v46  ;;  %v1293_v58 = vadd.f32 %v1269_v27, %v4018_v53  ;;  %v1301_v3 = vmul.f32 %v4018_v53, %v4018_v53  ;;  %5927 = vst [vmem:[#allocation69_spill] sm:$0xff] %v4025_v52  ;;  %v4027_v17 = vpop.f32.mrb[35].mxu1 }
 0x11e   :  { %v1311_v18 = vadd.f32 %v1303_v9, %v1287_v10  ;;  %5928 = vst [vmem:[#allocation70_spill] sm:$0xff] %v4027_v17 }
 0x11f   :  { %v1309_v43 = vadd.f32 %v1301_v3, %v1285_v42 }
 0x121   :  { %v4029_v49 = vpop.f32.mrb[36].mxu0 }
 0x122   :  { %5929 = vst [vmem:[#allocation71_spill] sm:$0xff] %v4029_v49  ;;  %v1298_v59 = vadd.f32 %v4029_v49, %v1274_v30  ;;  %v1306_v23 = vmul.f32 %v4029_v49, %v4029_v49  ;;  %v4034_v1 = vpop.f32.mrb[37].mxu0  ;;  %v4041_v10 = vpop.f32.mrb[36].mxu1 }
 0x123   :  { %5930 = vst [vmem:[#allocation72_spill] sm:$0xff] %v4034_v1  ;;  %v1296_v46 = vadd.f32 %v1272_v51, %v4034_v1  ;;  %v1304_v27 = vmul.f32 %v4034_v1, %v4034_v1  ;;  %v4039_v47 = vpop.f32.mrb[38].mxu0  ;;  %5932 = vst [vmem:[#allocation74_spill] sm:$0xff] %v4041_v10  ;;  %v4048_v49 = vpop.f32.mrb[37].mxu1 }
 0x124   :  { %5931 = vst [vmem:[#allocation73_spill] sm:$0xff] %v4039_v47  ;;  %v1314_v9 = vadd.f32 %v1306_v23, %v1290_v0  ;;  %v1299_v3 = vadd.f32 %v4039_v47, %v1275_v31  ;;  %v1307_v42 = vmul.f32 %v4039_v47, %v4039_v47  ;;  %v4046_v30 = vpop.f32.mrb[39].mxu0  ;;  %5934 = vst [vmem:[#allocation76_spill] sm:$0xff] %v4048_v49  ;;  %v4053_v17 = vpop.f32.mrb[38].mxu1 }
 0x125   :  { %5933 = vst [vmem:[#allocation75_spill] sm:$0xff] %v4046_v30  ;;  %v1312_v53 = vadd.f32 %v1304_v27, %v1288_v20  ;;  %v1297_v51 = vadd.f32 %v1273_v34, %v4046_v30  ;;  %v1305_v1 = vmul.f32 %v4046_v30, %v4046_v30  ;;  %5935 = vst [vmem:[#allocation77_spill] sm:$0xff] %v4053_v17  ;;  %v4055_v10 = vpop.f32.mrb[39].mxu1 }
 0x126   :  { %v1315_v52 = vadd.f32 %v1307_v42, %v1291_v33  ;;  %5936 = vst [vmem:[#allocation78_spill] sm:$0xff] %v4055_v10 }
 0x127   :  { %v1313_v0 = vadd.f32 %v1305_v1, %v1289_v21 }
 0x129   :  { %v4057_v31 = vpop.f32.mrb[40].mxu0 }
 0x12a   :  { %5937 = vst [vmem:[#allocation79_spill] sm:$0xff] %v4057_v31  ;;  %v1318_v23 = vadd.f32 %v4057_v31, %v1294_v40  ;;  %v1326_v47 = vmul.f32 %v4057_v31, %v4057_v31  ;;  %v4062_v49 = vpop.f32.mrb[41].mxu0  ;;  %v4069_v33 = vpop.f32.mrb[40].mxu1 }
 0x12b   :  { %5938 = vst [vmem:[#allocation80_spill] sm:$0xff] %v4062_v49  ;;  %v1316_v20 = vadd.f32 %v1292_v13, %v4062_v49  ;;  %v1324_v34 = vmul.f32 %v4062_v49, %v4062_v49  ;;  %v4067_v27 = vpop.f32.mrb[42].mxu0  ;;  %5940 = vst [vmem:[#allocation82_spill] sm:$0xff] %v4069_v33  ;;  %v4076_v30 = vpop.f32.mrb[41].mxu1 }
 0x12c   :  { %5939 = vst [vmem:[#allocation81_spill] sm:$0xff] %v4067_v27  ;;  %v1334_v42 = vadd.f32 %v1326_v47, %v1310_v28  ;;  %v1319_v1 = vadd.f32 %v4067_v27, %v1295_v2  ;;  %v1327_v21 = vmul.f32 %v4067_v27, %v4067_v27  ;;  %v4074_v40 = vpop.f32.mrb[43].mxu0  ;;  %v4081_v10 = vpop.f32.mrb[42].mxu1 }
 0x12d   :  { %5941 = vst [vmem:[#allocation83_spill] sm:$0xff] %v4074_v40  ;;  %v1332_v31 = vadd.f32 %v1324_v34, %v1308_v19  ;;  %v1317_v13 = vadd.f32 %v1293_v58, %v4074_v40  ;;  %v1325_v49 = vmul.f32 %v4074_v40, %v4074_v40  ;;  %v4083_v33 = vpop.f32.mrb[43].mxu1 }
 0x12e   :  { %v1335_v17 = vadd.f32 %v1327_v21, %v1311_v18  ;;  %5942 = vst [vmem:[#allocation84_spill] sm:$0xff] %v4083_v33 }
 0x12f   :  { %v1333_v28 = vadd.f32 %v1325_v49, %v1309_v43 }
 0x131   :  { %v4085_v2 = vpop.f32.mrb[44].mxu0 }
 0x132   :  { %5943 = vst [vmem:[#allocation85_spill] sm:$0xff] %v4085_v2  ;;  %v4088_v47 = vadd.f32 %v4085_v2, %v1298_v59  ;;  %v1330_v27 = vmul.f32 %v4085_v2, %v4085_v2  ;;  %v4092_v19 = vpop.f32.mrb[45].mxu0  ;;  %v4101_v21 = vpop.f32.mrb[44].mxu1 }
 0x133   :  { %5944 = vst [vmem:[#allocation86_spill] sm:$0xff] %v4092_v19  ;;  %v4095_v58 = vadd.f32 %v1296_v46, %v4092_v19  ;;  %v1328_v34 = vmul.f32 %v4092_v19, %v4092_v19  ;;  %v4099_v18 = vpop.f32.mrb[46].mxu0  ;;  %5946 = vst [vmem:[#allocation88_spill] sm:$0xff] %v4101_v21  ;;  %v4112_v40 = vpop.f32.mrb[45].mxu1 }
 0x134   :  { %5945 = vst [vmem:[#allocation87_spill] sm:$0xff] %v4099_v18  ;;  %v4103_v43 = vadd.f32 %v1330_v27, %v1314_v9  ;;  %v4106_v49 = vadd.f32 %v4099_v18, %v1299_v3  ;;  %v1331_v59 = vmul.f32 %v4099_v18, %v4099_v18  ;;  %v4110_v2 = vpop.f32.mrb[47].mxu0  ;;  %5948 = vst [vmem:[#allocation90_spill] sm:$0xff] %v4112_v40  ;;  %v4121_v9 = vpop.f32.mrb[46].mxu1 }
 0x135   :  { %5947 = vst [vmem:[#allocation89_spill] sm:$0xff] %v4110_v2  ;;  %v4114_v46 = vadd.f32 %v1328_v34, %v1312_v53  ;;  %v4117_v19 = vadd.f32 %v1297_v51, %v4110_v2  ;;  %v1329_v21 = vmul.f32 %v4110_v2, %v4110_v2  ;;  %5949 = vst [vmem:[#allocation91_spill] sm:$0xff] %v4121_v9  ;;  %v4125_v3 = vpop.f32.mrb[47].mxu1 }
 0x136   :  { %v4123_v27 = vadd.f32 %v1331_v59, %v1315_v52  ;;  %5950 = vst [vmem:[#allocation92_spill] sm:$0xff] %v4125_v3  ;;  %v4129_v18 = vmul.f32 %v3783_v4, %v3783_v4  ;;  %v4133_v53 = vmul.f32 %v3787_v6, %v3787_v6  ;;  %v4139_v51 = vmul.f32 %v3789_v7, %v3789_v7 }
 0x137   :  { %v4135_v34 = vadd.f32 %v1329_v21, %v1313_v0  ;;  %v4143_v52 = vmul.f32 %v3791_v8, %v3791_v8  ;;  %v4147_v59 = vmul.f32 %v3799_v12, %v3799_v12  ;;  %v4151_v2 = vmul.f32 %v3803_v14, %v3803_v14 }
 0x138   :  { %5951 = vst [vmem:[#allocation93_spill] sm:$0xff] %v4139_v51  ;;  %v4155_v0 = vmul.f32 %v3805_v15, %v3805_v15  ;;  %v4159_v21 = vmul.f32 %v3807_v16, %v3807_v16  ;;  %v4163_v51 = vmul.f32 %v3827_v26, %v3827_v26  ;;  %v4167_v12 = vmul.f32 %v3837_v32, %v3837_v32 }
 0x139   :  { %5952 = vst [vmem:[#allocation94_spill] sm:$0xff] %v4143_v52  ;;  %5953 = vst [vmem:[#allocation95_spill] sm:$0xff] %v4147_v59  ;;  %v4169_v59 = vpop.f32.mrb[48].mxu0  ;;  %v4188_v14 = vmul.f32 %v3867_v50, %v3867_v50  ;;  %v4192_v52 = vmul.f32 %v3877_v56, %v3877_v56 }
 0x13a   :  { %5954 = vst [vmem:[#allocation96_spill] sm:$0xff] %v4151_v2  ;;  %5955 = vst [vmem:[#allocation97_spill] sm:$0xff] %v4155_v0  ;;  %v4173_v2 = vmul.f32 %v3845_v37, %v3845_v37  ;;  %v4177_v0 = vmul.f32 %v3847_v39, %v3847_v39  ;;  %v1350_v16 = vmul.f32 %v4169_v59, %v4169_v59  ;;  %v4184_v15 = vpop.f32.mrb[49].mxu0  ;;  %v4201_v39 = vpop.f32.mrb[48].mxu1 }
 0x13b   :  { %5956 = vst [vmem:[#allocation98_spill] sm:$0xff] %v4159_v21  ;;  %5957 = vst [vmem:[#allocation99_spill] sm:$0xff] %v4167_v12  ;;  %v4180_v21 = vadd.f32 %v4169_v59, %v1318_v23  ;;  %v1348_v23 = vmul.f32 %v4184_v15, %v4184_v15  ;;  %v4216_v56 = vpop.f32.mrb[49].mxu1 }
 0x13c   :  { %5958 = vst [vmem:[#allocation100_spill] sm:$0xff] %v4169_v59  ;;  %5959 = vst [vmem:[#allocation101_spill] sm:$0xff] %v4173_v2  ;;  %v4195_v2 = vadd.f32 %v1316_v20, %v4184_v15  ;;  %v4205_v59 = vmul.f32 %v3885_v61, %v3885_v61  ;;  %v4207_v50 = vadd.f32 %v1350_v16, %v1334_v42  ;;  %v4229_v42 = vpop.f32.mrb[50].mxu1 }
 0x13d   :  { %5960 = vst [vmem:[#allocation102_spill] sm:$0xff] %v4177_v0  ;;  %5961 = vst [vmem:[#allocation103_spill] sm:$0xff] %v4184_v15  ;;  %v4199_v0 = vpop.f32.mrb[50].mxu0  ;;  %v4220_v15 = vmul.f32 %v3887_v63, %v3887_v63  ;;  %v4222_v12 = vadd.f32 %v1348_v23, %v1332_v31  ;;  %v4241_v31 = vmul.f32 %v3913_v57, %v3913_v57 }
 0x13e   :  { %5962 = vst [vmem:[#allocation104_spill] sm:$0xff] %v4188_v14  ;;  %5963 = vst [vmem:[#allocation105_spill] sm:$0xff] %v4192_v52  ;;  %v4210_v14 = vadd.f32 %v4199_v0, %v1319_v1  ;;  %v1351_v20 = vmul.f32 %v4199_v0, %v4199_v0  ;;  %v4214_v52 = vpop.f32.mrb[51].mxu0  ;;  %v4233_v1 = vmul.f32 %v3901_v36, %v3901_v36 }
 0x13f   :  { %5964 = vst [vmem:[#allocation106_spill] sm:$0xff] %v4199_v0  ;;  %5965 = vst [vmem:[#allocation107_spill] sm:$0xff] %v4205_v59  ;;  %v4225_v59 = vadd.f32 %v1317_v13, %v4214_v52  ;;  %v1349_v16 = vmul.f32 %v4214_v52, %v4214_v52  ;;  %v4237_v0 = vmul.f32 %v3908_v48, %v3908_v48  ;;  %v4245_v13 = vpop.f32.mrb[51].mxu1 }
 0x140   :  { %5966 = vst [vmem:[#allocation108_spill] sm:$0xff] %v4214_v52  ;;  %5967 = vst [vmem:[#allocation109_spill] sm:$0xff] %v4220_v15  ;;  %v4243_v23 = vadd.f32 %v1351_v20, %v1335_v17  ;;  %v4249_v52 = vmul.f32 %v3915_v41, %v3915_v41  ;;  %v4253_v15 = vmul.f32 %v3929_v38, %v3929_v38 }
 0x141   :  { %5968 = vst [vmem:[#allocation110_spill] sm:$0xff] %v4245_v13  ;;  %v4257_v63 = vmul.f32 %v3936_v29, %v3936_v29  ;;  %v4259_v61 = vadd.f32 %v1349_v16, %v1333_v28  ;;  %v4263_v17 = vmul.f32 %v3941_v11, %v3941_v11  ;;  %v4267_v20 = vmul.f32 %v3943_v45, %v3943_v45 }
 0x142   :  { %5969 = vst [vmem:[#allocation111_spill] sm:$0xff] %v4249_v52  ;;  %5970 = vst [vmem:[#allocation112_spill] sm:$0xff] %v4253_v15  ;;  %v4271_v52 = vmul.f32 %v3957_v62, %v3957_v62  ;;  %v4275_v15 = vmul.f32 %v3964_v54, %v3964_v54  ;;  %v4279_v28 = vmul.f32 %v3969_v5, %v3969_v5  ;;  %v5996_v5 = vld [vmem:[#allocation76_spill] sm:$0xff]  ;;  %v6003_v62 = vld [vmem:[#allocation82_spill] sm:$0xff] }
 0x143   :  { %5971 = vst [vmem:[#allocation113_spill] sm:$0xff] %v4263_v17  ;;  %5972 = vst [vmem:[#allocation114_spill] sm:$0xff] %v4267_v20  ;;  %v4283_v16 = vmul.f32 %v3971_v24, %v3971_v24  ;;  %v4287_v17 = vmul.f32 %v3985_v60, %v3985_v60  ;;  %v4291_v20 = vmul.f32 %v3992_v44, %v3992_v44 }
 0x144   :  { %5973 = vst [vmem:[#allocation115_spill] sm:$0xff] %v4271_v52  ;;  %5974 = vst [vmem:[#allocation116_spill] sm:$0xff] %v4275_v15  ;;  %v4293_v52 = vpop.f32.mrb[52].mxu0  ;;  %v4297_v15 = vmul.f32 %v3997_v35, %v3997_v35  ;;  %v5987_v35 = vld [vmem:[#allocation69_spill] sm:$0xff] }
 0x145   :  { %5975 = vst [vmem:[#allocation117_spill] sm:$0xff] %v4279_v28  ;;  %5976 = vst [vmem:[#allocation118_spill] sm:$0xff] %v4283_v16  ;;  %v4301_v28 = vmul.f32 %v3999_v25, %v3999_v25  ;;  %v4305_v16 = vadd.f32 %v4293_v52, %v4088_v47  ;;  %v4309_v60 = vpop.f32.mrb[53].mxu0  ;;  %v4331_v24 = vmul.f32 %v5987_v35, %v5987_v35 }
 0x146   :  { %5977 = vst [vmem:[#allocation119_spill] sm:$0xff] %v4287_v17  ;;  %5978 = vst [vmem:[#allocation120_spill] sm:$0xff] %v4291_v20  ;;  %v1354_v17 = vmul.f32 %v4293_v52, %v4293_v52  ;;  %v4313_v20 = vmul.f32 %v4013_v55, %v4013_v55  ;;  %v1352_v47 = vmul.f32 %v4309_v60, %v4309_v60  ;;  %v4325_v44 = vpop.f32.mrb[54].mxu0 }
 0x147   :  { %5979 = vst [vmem:[#allocation121_spill] sm:$0xff] %v4293_v52  ;;  %5980 = vst [vmem:[#allocation122_spill] sm:$0xff] %v4297_v15  ;;  %v4317_v15 = vmul.f32 %v4020_v22, %v4020_v22  ;;  %v4327_v52 = vpop.f32.mrb[52].mxu1  ;;  %v4342_v25 = vpop.f32.mrb[55].mxu0  ;;  %v5991_v22 = vld [vmem:[#allocation70_spill] sm:$0xff] }
 0x148   :  { %5981 = vst [vmem:[#allocation123_spill] sm:$0xff] %v4301_v28  ;;  %5982 = vst [vmem:[#allocation124_spill] sm:$0xff] %v4309_v60  ;;  %v4321_v28 = vadd.f32 %v4095_v58, %v4309_v60  ;;  %v1355_v58 = vmul.f32 %v4325_v44, %v4325_v44  ;;  %v4344_v60 = vpop.f32.mrb[53].mxu1  ;;  %v4348_v55 = vmul.f32 %v5991_v22, %v5991_v22 }
 0x149   :  { %5983 = vst [vmem:[#allocation125_spill] sm:$0xff] %v4313_v20  ;;  %5984 = vst [vmem:[#allocation126_spill] sm:$0xff] %v4317_v15  ;;  %v4334_v20 = vadd.f32 %v1354_v17, %v4103_v43  ;;  %v4338_v15 = vadd.f32 %v4325_v44, %v4106_v49  ;;  %v4355_v43 = vadd.f32 %v4117_v19, %v4342_v25  ;;  %v4359_v17 = vpop.f32.mrb[54].mxu1 }
 0x14a   :  { %5985 = vst [vmem:[#allocation127_spill] sm:$0xff] %v4325_v44  ;;  %5986 = vst [vmem:[#allocation128_spill] sm:$0xff] %v4327_v52  ;;  %v1353_v49 = vmul.f32 %v4342_v25, %v4342_v25  ;;  %v5994_v44 = vld [vmem:[#allocation74_spill] sm:$0xff]  ;;  %v4367_v22 = vmul.f32 %v5996_v5, %v5996_v5  ;;  %v4374_v19 = vadd.f32 %v1355_v58, %v4123_v27 }
 0x14b   :  { %5988 = vst [vmem:[#allocation129_spill] sm:$0xff] %v4331_v24  ;;  %5989 = vst [vmem:[#allocation130_spill] sm:$0xff] %v4342_v25  ;;  %v4351_v24 = vadd.f32 %v1352_v47, %v4114_v46  ;;  %v4363_v35 = vmul.f32 %v5994_v44, %v5994_v44  ;;  %v4376_v47 = vpop.f32.mrb[55].mxu1  ;;  %v6001_v25 = vld [vmem:[#allocation78_spill] sm:$0xff]  ;;  %v4395_v27 = vmul.f32 %v4081_v10, %v4081_v10 }
 0x14c   :  { %5990 = vst [vmem:[#allocation131_spill] sm:$0xff] %v4344_v60  ;;  %5992 = vst [vmem:[#allocation132_spill] sm:$0xff] %v4348_v55  ;;  %v5998_v55 = vld [vmem:[#allocation77_spill] sm:$0xff]  ;;  %v4380_v54 = vmul.f32 %v6001_v25, %v6001_v25  ;;  %v4391_v5 = vadd.f32 %v1353_v49, %v4135_v34  ;;  %v4399_v58 = vmul.f32 %v4083_v33, %v4083_v33 }
 0x14d   :  { %5993 = vst [vmem:[#allocation133_spill] sm:$0xff] %v4359_v17  ;;  %5995 = vst [vmem:[#allocation134_spill] sm:$0xff] %v4363_v35  ;;  %v4371_v46 = vmul.f32 %v5998_v55, %v5998_v55  ;;  %v4384_v35 = vmul.f32 %v6003_v62, %v6003_v62  ;;  %v4407_v44 = vmul.f32 %v4112_v40, %v4112_v40 }
 0x14e   :  { %5997 = vst [vmem:[#allocation135_spill] sm:$0xff] %v4367_v22  ;;  %6000 = vst [vmem:[#allocation137_spill] sm:$0xff] %v4376_v47  ;;  %v4388_v22 = vmul.f32 %v4076_v30, %v4076_v30  ;;  %v4411_v34 = vmul.f32 %v4121_v9, %v4121_v9  ;;  %v4415_v49 = vmul.f32 %v4125_v3, %v4125_v3 }
 0x14f   :  { %5999 = vst [vmem:[#allocation136_spill] sm:$0xff] %v4371_v46  ;;  %6002 = vst [vmem:[#allocation138_spill] sm:$0xff] %v4380_v54  ;;  %v6007_v46 = vld [vmem:[#allocation88_spill] sm:$0xff]  ;;  %v4437_v40 = vmul.f32 %v4245_v13, %v4245_v13  ;;  %v4455_v13 = vpop.f32.mrb[56].mxu1 }
 0x150   :  { %6004 = vst [vmem:[#allocation82_spill] sm:$0xff] %v4388_v22  ;;  %6005 = vst [vmem:[#allocation139_spill] sm:$0xff] %v4395_v27  ;;  %v4403_v54 = vmul.f32 %v6007_v46, %v6007_v46  ;;  %v4419_v22 = vmul.f32 %v4201_v39, %v4201_v39  ;;  %v4423_v46 = vmul.f32 %v4216_v56, %v4216_v56 }
 0x151   :  { %6006 = vst [vmem:[#allocation140_spill] sm:$0xff] %v4399_v58  ;;  %6009 = vst [vmem:[#allocation142_spill] sm:$0xff] %v4407_v44  ;;  %v4429_v44 = vmul.f32 %v4229_v42, %v4229_v42 }
 0x152   :  { %6008 = vst [vmem:[#allocation141_spill] sm:$0xff] %v4403_v54  ;;  %6010 = vst [vmem:[#allocation143_spill] sm:$0xff] %v4411_v34  ;;  %v4425_v54 = vpop.f32.mrb[56].mxu0 }
 0x153   :  { %6011 = vst [vmem:[#allocation144_spill] sm:$0xff] %v4415_v49  ;;  %6012 = vst [vmem:[#allocation145_spill] sm:$0xff] %v4423_v46  ;;  %v1366_v34 = vadd.f32 %v4425_v54, %v4180_v21  ;;  %v1374_v49 = vmul.f32 %v4425_v54, %v4425_v54  ;;  %v4439_v9 = vpop.f32.mrb[57].mxu0  ;;  %v4449_v21 = vmul.f32 %v4327_v52, %v4327_v52  ;;  %v4465_v52 = vpop.f32.mrb[57].mxu1 }
 0x154   :  { %6013 = vst [vmem:[#allocation146_spill] sm:$0xff] %v4425_v54  ;;  %6014 = vst [vmem:[#allocation147_spill] sm:$0xff] %v4429_v44  ;;  %v1364_v46 = vadd.f32 %v4195_v2, %v4439_v9  ;;  %v1372_v55 = vmul.f32 %v4439_v9, %v4439_v9  ;;  %v4445_v58 = vpop.f32.mrb[58].mxu0  ;;  %v4453_v54 = vmul.f32 %v4344_v60, %v4344_v60 }
 0x155   :  { %6015 = vst [vmem:[#allocation148_spill] sm:$0xff] %v4437_v40  ;;  %6016 = vst [vmem:[#allocation149_spill] sm:$0xff] %v4439_v9  ;;  %v1382_v40 = vadd.f32 %v1374_v49, %v4207_v50  ;;  %v1390_v44 = vadd.f32 %v3783_v4, %v1366_v34  ;;  %v1367_v2 = vadd.f32 %v4445_v58, %v4210_v14  ;;  %v4463_v33 = vpop.f32.mrb[59].mxu0  ;;  %v4473_v34 = vpop.f32.mrb[58].mxu1 }
 0x156   :  { %6017 = vst [vmem:[#allocation150_spill] sm:$0xff] %v4445_v58  ;;  %6018 = vst [vmem:[#allocation151_spill] sm:$0xff] %v4449_v21  ;;  %v1375_v9 = vmul.f32 %v4445_v58, %v4445_v58  ;;  %v1380_v21 = vadd.f32 %v1372_v55, %v4222_v12  ;;  %v1365_v60 = vadd.f32 %v4225_v59, %v4463_v33  ;;  %v4479_v27 = vpop.f32.mrb[59].mxu1 }
 0x157   :  { %6019 = vst [vmem:[#allocation152_spill] sm:$0xff] %v4453_v54  ;;  %6020 = vst [vmem:[#allocation153_spill] sm:$0xff] %v4463_v33  ;;  %v1388_v54 = vadd.f32 %v1364_v46, %v3787_v6  ;;  %v1373_v50 = vmul.f32 %v4463_v33, %v4463_v33  ;;  %v1406_v14 = vadd.f32 %v4129_v18, %v1382_v40 }
 0x158   :  { %v1414_v49 = vadd.f32 %v3827_v26, %v1390_v44  ;;  %v1383_v58 = vadd.f32 %v1375_v9, %v4243_v23  ;;  %v1391_v4 = vadd.f32 %v3789_v7, %v1367_v2  ;;  %v1404_v12 = vadd.f32 %v4133_v53, %v1380_v21  ;;  %v6021_v44 = vld [vmem:[#allocation93_spill] sm:$0xff]  ;;  %v6022_v23 = vld [vmem:[#allocation99_spill] sm:$0xff]  ;;  %v6023_v53 = vld [vmem:[#allocation94_spill] sm:$0xff] }
 0x159   :  { %v1412_v55 = vadd.f32 %v1388_v54, %v3837_v32  ;;  %v1381_v59 = vadd.f32 %v1373_v50, %v4259_v61  ;;  %v1389_v46 = vadd.f32 %v1365_v60, %v3791_v8  ;;  %v1430_v33 = vadd.f32 %v4163_v51, %v1406_v14  ;;  %v6024_v54 = vld [vmem:[#allocation23_spill] sm:$0xff]  ;;  %v4495_v61 = vpop.f32.mrb[60].mxu0  ;;  %v6026_v51 = vld [vmem:[#allocation101_spill] sm:$0xff] }
 0x15a   :  { %v4487_v40 = vadd.f32 %v3901_v36, %v1414_v49  ;;  %v1407_v18 = vadd.f32 %v6021_v44, %v1383_v58  ;;  %v1415_v9 = vadd.f32 %v3845_v37, %v1391_v4  ;;  %v1428_v2 = vadd.f32 %v6022_v23, %v1404_v12  ;;  %6025 = vst [vmem:[#allocation93_spill] sm:$0xff] %v4495_v61  ;;  %v4504_v58 = vpop.f32.mrb[61].mxu0  ;;  %v6028_v12 = vld [vmem:[#allocation102_spill] sm:$0xff] }
 0x15b   :  { %v1436_v6 = vadd.f32 %v1412_v55, %v3908_v48  ;;  %v1405_v21 = vadd.f32 %v6023_v53, %v1381_v59  ;;  %v1413_v32 = vadd.f32 %v1389_v46, %v6024_v54  ;;  %v4498_v60 = vadd.f32 %v4233_v1, %v1430_v33  ;;  %6027 = vst [vmem:[#allocation99_spill] sm:$0xff] %v4504_v58  ;;  %v4515_v1 = vpop.f32.mrb[62].mxu0  ;;  %v4517_v46 = vpop.f32.mrb[60].mxu1  ;;  %v6044_v54 = vld [vmem:[#allocation104_spill] sm:$0xff]  ;;  %v6045_v48 = vld [vmem:[#allocation97_spill] sm:$0xff] }
 0x15c   :  { %v1431_v50 = vadd.f32 %v6026_v51, %v1407_v18  ;;  %v1439_v14 = vadd.f32 %v3913_v57, %v1415_v9  ;;  %v1370_v4 = vadd.f32 %v4495_v61, %v4305_v16  ;;  %v4507_v49 = vadd.f32 %v4237_v0, %v1428_v2  ;;  %6029 = vst [vmem:[#allocation94_spill] sm:$0xff] %v4515_v1  ;;  %v6031_v16 = vld [vmem:[#allocation12_spill] sm:$0xff]  ;;  %v4525_v23 = vpop.f32.mrb[63].mxu0  ;;  %v6034_v2 = vld [vmem:[#allocation111_spill] sm:$0xff]  ;;  %v6065_v57 = vld [vmem:[#allocation54_spill] sm:$0xff] }
 0x15d   :  { %v1429_v55 = vadd.f32 %v6028_v12, %v1405_v21  ;;  %v4511_v59 = vadd.f32 %v1413_v32, %v3915_v41  ;;  %v1378_v33 = vmul.f32 %v4495_v61, %v4495_v61  ;;  %6030 = vst [vmem:[#allocation101_spill] sm:$0xff] %v4517_v46  ;;  %v1368_v0 = vadd.f32 %v4321_v28, %v4504_v58  ;;  %v4527_v32 = vpop.f32.mrb[61].mxu1  ;;  %v6036_v28 = vld [vmem:[#allocation27_spill] sm:$0xff] }
 0x15e   :  { %v1455_v44 = vadd.f32 %v4241_v31, %v1431_v50  ;;  %v1394_v18 = vadd.f32 %v6031_v16, %v1370_v4  ;;  %v1376_v9 = vmul.f32 %v4504_v58, %v4504_v58  ;;  %6032 = vst [vmem:[#allocation102_spill] sm:$0xff] %v4525_v23  ;;  %6033 = vst [vmem:[#allocation154_spill] sm:$0xff] %v4527_v32  ;;  %v4535_v50 = vpop.f32.mrb[62].mxu1  ;;  %v6037_v16 = vld [vmem:[#allocation14_spill] sm:$0xff] }
 0x15f   :  { %v1453_v53 = vadd.f32 %v6034_v2, %v1429_v55  ;;  %v1386_v21 = vadd.f32 %v1378_v33, %v4334_v20  ;;  %v1371_v51 = vadd.f32 %v4515_v1, %v4338_v15  ;;  %v1379_v31 = vmul.f32 %v4515_v1, %v4515_v1  ;;  %6035 = vst [vmem:[#allocation111_spill] sm:$0xff] %v4535_v50  ;;  %v4542_v55 = vpop.f32.mrb[63].mxu1  ;;  %v6039_v20 = vld [vmem:[#allocation95_spill] sm:$0xff] }
 0x160   :  { %v1418_v4 = vadd.f32 %v6036_v28, %v1394_v18  ;;  %v1384_v12 = vadd.f32 %v1376_v9, %v4351_v24  ;;  %v1392_v61 = vadd.f32 %v1368_v0, %v6037_v16  ;;  %v1369_v58 = vadd.f32 %v4355_v43, %v4525_v23  ;;  %6038 = vst [vmem:[#allocation155_spill] sm:$0xff] %v4542_v55  ;;  %v6040_v2 = vld [vmem:[#allocation15_spill] sm:$0xff]  ;;  %v6041_v24 = vld [vmem:[#allocation96_spill] sm:$0xff]  ;;  %v6042_v0 = vld [vmem:[#allocation29_spill] sm:$0xff] }
 0x161   :  { %v1410_v33 = vadd.f32 %v6039_v20, %v1386_v21  ;;  %v1387_v15 = vadd.f32 %v1379_v31, %v4374_v19  ;;  %v1395_v41 = vadd.f32 %v6040_v2, %v1371_v51  ;;  %v1377_v1 = vmul.f32 %v4525_v23, %v4525_v23  ;;  %v6043_v16 = vld [vmem:[#allocation16_spill] sm:$0xff]  ;;  %v6046_v20 = vld [vmem:[#allocation30_spill] sm:$0xff]  ;;  %v6061_v2 = vld [vmem:[#allocation69_spill] sm:$0xff] }
 0x162   :  { %v4550_v18 = vadd.f32 %v3929_v38, %v1418_v4  ;;  %v1408_v9 = vadd.f32 %v6041_v24, %v1384_v12  ;;  %v1416_v28 = vadd.f32 %v1392_v61, %v6042_v0  ;;  %v1393_v43 = vadd.f32 %v1369_v58, %v6043_v16  ;;  %v6047_v4 = vld [vmem:[#allocation105_spill] sm:$0xff]  ;;  %v6048_v61 = vld [vmem:[#allocation31_spill] sm:$0xff]  ;;  %v6049_v58 = vld [vmem:[#allocation112_spill] sm:$0xff] }
 0x163   :  { %v1434_v8 = vadd.f32 %v6044_v54, %v1410_v33  ;;  %v1411_v21 = vadd.f32 %v6045_v48, %v1387_v15  ;;  %v1419_v19 = vadd.f32 %v6046_v20, %v1395_v41  ;;  %v1385_v51 = vadd.f32 %v1377_v1, %v4391_v5  ;;  %v6050_v54 = vld [vmem:[#allocation107_spill] sm:$0xff]  ;;  %v6051_v5 = vld [vmem:[#allocation98_spill] sm:$0xff] }
 0x164   :  { %v4561_v31 = vmul.f32 %v4359_v17, %v4359_v17  ;;  %v1432_v38 = vadd.f32 %v6047_v4, %v1408_v9  ;;  %v4565_v12 = vadd.f32 %v1416_v28, %v3936_v29  ;;  %v1417_v24 = vadd.f32 %v1393_v43, %v6048_v61  ;;  %v6052_v9 = vld [vmem:[#allocation113_spill] sm:$0xff]  ;;  %v6054_v4 = vld [vmem:[#allocation50_spill] sm:$0xff] }
 0x165   :  { %v4569_v16 = vadd.f32 %v6049_v58, %v1434_v8  ;;  %v1435_v48 = vadd.f32 %v6050_v54, %v1411_v21  ;;  %v4573_v41 = vadd.f32 %v3941_v11, %v1419_v19  ;;  %v1409_v1 = vadd.f32 %v6051_v5, %v1385_v51  ;;  %v6053_v21 = vld [vmem:[#allocation109_spill] sm:$0xff]  ;;  %v6060_v11 = vld [vmem:[#allocation68_spill] sm:$0xff] }
 0x166   :  { %v4578_v33 = vmul.f32 %v4376_v47, %v4376_v47  ;;  %v4581_v15 = vadd.f32 %v4257_v63, %v1432_v38  ;;  %v1441_v28 = vadd.f32 %v1417_v24, %v3943_v45  ;;  %v1566_v8 = vmul.f32 %v4455_v13, %v4455_v13  ;;  %v6055_v24 = vld [vmem:[#allocation52_spill] sm:$0xff]  ;;  %v6056_v5 = vld [vmem:[#allocation53_spill] sm:$0xff] }
 0x167   :  { %v4587_v43 = vadd.f32 %v6052_v9, %v1435_v48  ;;  %v1433_v19 = vadd.f32 %v6053_v21, %v1409_v1  ;;  %v4592_v51 = vmul.f32 %v4465_v52, %v4465_v52  ;;  %v1462_v58 = vadd.f32 %v6054_v4, %v4487_v40  ;;  %v6057_v9 = vld [vmem:[#allocation114_spill] sm:$0xff]  ;;  %v6059_v40 = vld [vmem:[#allocation115_spill] sm:$0xff] }
 0x168   :  { %v1567_v63 = vmul.f32 %v4473_v34, %v4473_v34  ;;  %v1565_v38 = vmul.f32 %v4479_v27, %v4479_v27  ;;  %v1460_v54 = vadd.f32 %v1436_v6, %v6055_v24  ;;  %v1463_v48 = vadd.f32 %v6056_v5, %v1439_v14  ;;  %v6058_v1 = vld [vmem:[#allocation66_spill] sm:$0xff]  ;;  %v6064_v24 = vld [vmem:[#allocation117_spill] sm:$0xff] }
 0x169   :  { %v1457_v45 = vadd.f32 %v6057_v9, %v1433_v19  ;;  %v1486_v21 = vadd.f32 %v6058_v1, %v1462_v58  ;;  %v4606_v61 = vmul.f32 %v4517_v46, %v4517_v46  ;;  %v1478_v23 = vadd.f32 %v6059_v40, %v4498_v60  ;;  %v6062_v14 = vld [vmem:[#allocation62_spill] sm:$0xff]  ;;  %v6063_v58 = vld [vmem:[#allocation125_spill] sm:$0xff] }
 0x16a   :  { %v1484_v20 = vadd.f32 %v1460_v54, %v6060_v11  ;;  %v1487_v29 = vadd.f32 %v6061_v2, %v1463_v48  ;;  %v4614_v6 = vmul.f32 %v4527_v32, %v4527_v32  ;;  %v1465_v0 = vadd.f32 %v1441_v28, %v6062_v14  ;;  %v6066_v40 = vld [vmem:[#allocation118_spill] sm:$0xff] }
 0x16b   :  { %v1510_v19 = vadd.f32 %v6003_v62, %v1486_v21  ;;  %v1502_v9 = vadd.f32 %v6063_v58, %v1478_v23  ;;  %v1479_v5 = vadd.f32 %v6064_v24, %v1455_v44  ;;  %v1461_v37 = vadd.f32 %v4511_v59, %v6065_v57  ;;  %v6067_v21 = vld [vmem:[#allocation129_spill] sm:$0xff]  ;;  %v6068_v23 = vld [vmem:[#allocation70_spill] sm:$0xff]  ;;  %v6069_v24 = vld [vmem:[#allocation132_spill] sm:$0xff] }
 0x16c   :  { %v1508_v60 = vadd.f32 %v1484_v20, %v4076_v30  ;;  %v1511_v54 = vadd.f32 %v4081_v10, %v1487_v29  ;;  %v1489_v48 = vadd.f32 %v1465_v0, %v6001_v25  ;;  %v1477_v11 = vadd.f32 %v6066_v40, %v1453_v53  ;;  %v6070_v40 = vld [vmem:[#allocation139_spill] sm:$0xff]  ;;  %v6071_v25 = vld [vmem:[#allocation84_spill] sm:$0xff] }
 0x16d   :  { %v1534_v2 = vadd.f32 %v4201_v39, %v1510_v19  ;;  %v1526_v28 = vadd.f32 %v4384_v35, %v1502_v9  ;;  %v1503_v14 = vadd.f32 %v6067_v21, %v1479_v5  ;;  %v1485_v58 = vadd.f32 %v1461_v37, %v6068_v23 }
 0x16e   :  { %v1532_v44 = vadd.f32 %v1508_v60, %v4216_v56  ;;  %v1535_v59 = vadd.f32 %v4229_v42, %v1511_v54  ;;  %v1513_v20 = vadd.f32 %v1489_v48, %v4125_v3  ;;  %v1501_v29 = vadd.f32 %v6069_v24, %v1477_v11  ;;  %v6072_v60 = vld [vmem:[#allocation140_spill] sm:$0xff]  ;;  %v6073_v11 = vld [vmem:[#allocation147_spill] sm:$0xff] }
 0x16f   :  { %v1558_v0 = vadd.f32 %v4455_v13, %v1534_v2  ;;  %v1550_v53 = vadd.f32 %v4419_v22, %v1526_v28  ;;  %v1527_v19 = vadd.f32 %v6070_v40, %v1503_v14  ;;  %v1509_v35 = vadd.f32 %v1485_v58, %v6071_v25  ;;  %v6074_v2 = vld [vmem:[#allocation110_spill] sm:$0xff]  ;;  %v6075_v58 = vld [vmem:[#allocation148_spill] sm:$0xff] }
 0x170   :  { %v1556_v5 = vadd.f32 %v1532_v44, %v4465_v52  ;;  %v1559_v37 = vadd.f32 %v4473_v34, %v1535_v59  ;;  %v1537_v9 = vadd.f32 %v1513_v20, %v4376_v47  ;;  %v1525_v54 = vadd.f32 %v6072_v60, %v1501_v29  ;;  %v6076_v29 = vld [vmem:[#allocation116_spill] sm:$0xff] }
 0x171   :  { %v1587_v48 = vsel %vm1580_vm1, %v1558_v0, 0.0  ;;  %v1574_v21 = vadd.f32 %v1566_v8, %v1550_v53  ;;  %v1551_v24 = vadd.f32 %v6073_v11, %v1527_v19  ;;  %v1533_v3 = vadd.f32 %v1509_v35, %v6074_v2  ;;  %v6077_v19 = vld [vmem:[#allocation61_spill] sm:$0xff]  ;;  %v6080_v11 = vld [vmem:[#allocation60_spill] sm:$0xff] }
 0x172   :  { %1588 = vadd.xlane.f32.xlu1 %v1587_v48  ;;  %v1581_v22 = vsel %vm1580_vm1, %v1556_v5, 0.0  ;;  %v1571_v14 = vmul.f32 %v4535_v50, %v4535_v50  ;;  %v4649_v28 = vadd.f32 %v1537_v9, %v4542_v55  ;;  %v1549_v44 = vadd.f32 %v6075_v58, %v1525_v54  ;;  %v6078_v5 = vld [vmem:[#allocation58_spill] sm:$0xff] }
 0x173   :  { %1582 = vadd.xlane.f32.xlu0 %v1581_v22  ;;  %v1569_v59 = vmul.f32 %v4542_v55, %v4542_v55  ;;  %v1575_v8 = vadd.f32 %v1567_v63, %v1551_v24  ;;  %v1557_v20 = vadd.f32 %v1533_v3, %v4479_v27  ;;  %v1476_v0 = vadd.f32 %v6076_v29, %v4507_v49  ;;  %v6079_v48 = vld [vmem:[#allocation126_spill] sm:$0xff] }
 0x174   :  { %v1590_v53 = vsel %vm1580_vm1, %v1559_v37, 0.0  ;;  %v1573_v40 = vadd.f32 %v1565_v38, %v1549_v44  ;;  %v1467_v35 = vadd.f32 %v6077_v19, %v4573_v41  ;;  %v1466_v9 = vadd.f32 %v6078_v5, %v4550_v18  ;;  %v6081_v37 = vld [vmem:[#allocation77_spill] sm:$0xff]  ;;  %v6082_v24 = vld [vmem:[#allocation74_spill] sm:$0xff]  ;;  %v6083_v41 = vld [vmem:[#allocation123_spill] sm:$0xff] }
 0x175   :  { %v1619_v60 = vsel %vm1580_vm1, %v1574_v21, 0.0  ;;  %v1622_v54 = vsel %vm1580_vm1, %v1575_v8, 0.0  ;;  %v1500_v63 = vadd.f32 %v6079_v48, %v1476_v0  ;;  %v1464_v3 = vadd.f32 %v4565_v12, %v6080_v11  ;;  %v6084_v18 = vld [vmem:[#allocation82_spill] sm:$0xff]  ;;  %v6085_v21 = vld [vmem:[#allocation76_spill] sm:$0xff] }
 0x176   :  { %1591 = vadd.xlane.f32.xlu1 %v1590_v53  ;;  %v1584_v49 = vsel %vm1580_vm1, %v1557_v20, 0.0  ;;  %v1491_v38 = vadd.f32 %v6081_v37, %v1467_v35  ;;  %v1490_v22 = vadd.f32 %v6082_v24, %v1466_v9  ;;  %v1481_v58 = vadd.f32 %v6083_v41, %v1457_v45  ;;  %v6086_v8 = vld [vmem:[#allocation120_spill] sm:$0xff]  ;;  %v6087_v48 = vld [vmem:[#allocation122_spill] sm:$0xff]  ;;  %v6088_v53 = vld [vmem:[#allocation91_spill] sm:$0xff] }
 0x177   :  { %1620 = vadd.xlane.f32.xlu0 %v1619_v60  ;;  %v1524_v44 = vadd.f32 %v6084_v18, %v1500_v63  ;;  %v1488_v29 = vadd.f32 %v1464_v3, %v6085_v21  ;;  %v1480_v0 = vadd.f32 %v6086_v8, %v4581_v15  ;;  %v1483_v12 = vadd.f32 %v6087_v48, %v4587_v43  ;;  %v6089_v20 = vld [vmem:[#allocation88_spill] sm:$0xff]  ;;  %v6090_v35 = vld [vmem:[#allocation138_spill] sm:$0xff]  ;;  %v6091_v9 = vld [vmem:[#allocation119_spill] sm:$0xff] }
 0x178   :  { %v1515_v5 = vadd.f32 %v6088_v53, %v1491_v38  ;;  %v1514_v55 = vadd.f32 %v6089_v20, %v1490_v22  ;;  %v1505_v47 = vadd.f32 %v6090_v35, %v1481_v58  ;;  %v1482_v45 = vadd.f32 %v6091_v9, %v4569_v16  ;;  %v6092_v60 = vld [vmem:[#allocation145_spill] sm:$0xff]  ;;  %v6093_v63 = vld [vmem:[#allocation90_spill] sm:$0xff]  ;;  %v6094_v3 = vld [vmem:[#allocation135_spill] sm:$0xff] }
 0x179   :  { %v1548_v41 = vadd.f32 %v6092_v60, %v1524_v44  ;;  %v1512_v18 = vadd.f32 %v1488_v29, %v6093_v63  ;;  %v1504_v24 = vadd.f32 %v6094_v3, %v1480_v0  ;;  %v6095_v37 = vld [vmem:[#allocation136_spill] sm:$0xff]  ;;  %v6098_v20 = vld [vmem:[#allocation134_spill] sm:$0xff]  ;;  %v6099_v35 = vld [vmem:[#allocation131_spill] sm:$0xff] }
 0x17a   :  { %v1507_v15 = vadd.f32 %v6095_v37, %v1483_v12  ;;  %1623 = vadd.xlane.f32.xlu1 %v1622_v54  ;;  %v1539_v43 = vadd.f32 %v4359_v17, %v1515_v5  ;;  %v6096_v8 = vld [vmem:[#allocation128_spill] sm:$0xff]  ;;  %v1506_v58 = vadd.f32 %v6098_v20, %v1482_v45  ;;  %v6100_v9 = vld [vmem:[#allocation142_spill] sm:$0xff]  ;;  %v6101_v60 = vld [vmem:[#allocation143_spill] sm:$0xff] }
 0x17b   :  { %v1538_v38 = vadd.f32 %v6096_v8, %v1514_v55  ;;  %v6097_v48 = vld [vmem:[#allocation144_spill] sm:$0xff]  ;;  %1585 = vadd.xlane.f32.xlu0 %v1584_v49  ;;  %v1572_v16 = vadd.f32 %v4592_v51, %v1548_v41  ;;  %v1536_v44 = vadd.f32 %v1512_v18, %v6099_v35  ;;  %v1528_v29 = vadd.f32 %v6100_v9, %v1504_v24  ;;  %v6102_v55 = vld [vmem:[#allocation141_spill] sm:$0xff]  ;;  %v6104_v18 = vld [vmem:[#allocation151_spill] sm:$0xff] }
 0x17c   :  { %v1529_v22 = vadd.f32 %v6097_v48, %v1505_v47  ;;  %v1531_v0 = vadd.f32 %v6101_v60, %v1507_v15  ;;  %v1563_v37 = vadd.f32 %v4535_v50, %v1539_v43  ;;  %v1530_v12 = vadd.f32 %v6102_v55, %v1506_v58  ;;  %v6103_v20 = vld [vmem:[#allocation152_spill] sm:$0xff]  ;;  %v6142_v17 = vld [vmem:[#allocation7_spill] sm:$0xff] }
 0x17d   :  { %v1562_v54 = vadd.f32 %v4517_v46, %v1538_v38  ;;  %v1616_v47 = vsel %vm1580_vm1, %v1573_v40, 0.0  ;;  %v1560_v49 = vadd.f32 %v1536_v44, %v4527_v32  ;;  %v1552_v51 = vadd.f32 %v6103_v20, %v1528_v29 }
 0x17e   :  { %v1553_v5 = vadd.f32 %v4578_v33, %v1529_v22  ;;  %v1555_v45 = vadd.f32 %v4561_v31, %v1531_v0  ;;  %1617 = vadd.xlane.f32.xlu1 %v1616_v47  ;;  %v1613_v24 = vsel %vm1580_vm1, %v1572_v16, 0.0  ;;  %v1554_v3 = vadd.f32 %v6104_v18, %v1530_v12 }
 0x17f   :  { %1614 = vadd.xlane.f32.xlu0 %v1613_v24  ;;  %v1576_v15 = vadd.f32 %v4614_v6, %v1552_v51  ;;  %v1602_v40 = vsel %vm1580_vm1, %v1563_v37, 0.0  ;;  %v1599_v38 = vsel %vm1580_vm1, %v1562_v54, 0.0  ;;  %v1596_v31 = vsel %vm1580_vm1, %v4649_v28, 0.0 }
 0x180   :  { %v1577_v41 = vadd.f32 %v1569_v59, %v1553_v5  ;;  %v1579_v33 = vadd.f32 %v1571_v14, %v1555_v45  ;;  %v1578_v43 = vadd.f32 %v4606_v61, %v1554_v3  ;;  %v1593_v59 = vsel %vm1580_vm1, %v1560_v49, 0.0 }
 0x181   :  { %v1625_v6 = vsel %vm1580_vm1, %v1576_v15, 0.0  ;;  %v3492_v22 = vmov 0  }
 0x182   :  { %1603 = vadd.xlane.f32.xlu1 %v1602_v40  ;;  %v1628_v48 = vsel %vm1580_vm1, %v1577_v41, 0.0  ;;  %v1634_v61 = vsel %vm1580_vm1, %v1579_v33, 0.0  ;;  %v1631_v14 = vsel %vm1580_vm1, %v1578_v43, 0.0  ;;  %3410 = vset.pattern.permute.xlu0 %v3492_v22 }
 0x183   :  { %1600 = vadd.xlane.f32.xlu0 %v1599_v38  ;;  %3409 = vset.pattern.permute.xlu1 %v3492_v22 }
 0x186   :  { %1597 = vadd.xlane.f32.xlu1 %v1596_v31 }
 0x187   :  { %1594 = vadd.xlane.f32.xlu0 %v1593_v59 }
 0x18a   :  { %1629 = vadd.xlane.f32.xlu1 %v1628_v48 }
 0x18b   :  { %1626 = vadd.xlane.f32.xlu0 %v1625_v6 }
 0x18e   :  { %1635 = vadd.xlane.f32.xlu1 %v1634_v61  ;;  %v1663_v61 = vld [vmem:[%s5715_s2 + $0x10] sm:$0xff] }
 0x18f   :  { %1632 = vadd.xlane.f32.xlu0 %v1631_v14 }
 0x1ff   :  { %v1589_v28 = vpop.xlane.xlu1 %1588 }
 0x200   :  { %v1583_v58 = vpop.xlane.xlu0 %1582  ;;  %v4715_v16 = vmul.f32 0.03125, %v1589_v28 }
 0x201   :  { %v4723_v47 = vmul.f32 0.03125, %v1583_v58 }
 0x202   :  { %v1647_v60 = vmul.f32 %v4715_v16, %v4715_v16 }
 0x203   :  { %v1592_v44 = vpop.xlane.xlu1 %1591  ;;  %v1645_v15 = vmul.f32 %v4723_v47, %v4723_v47 }
 0x204   :  { %v4717_v9 = vmul.f32 0.03125, %v1592_v44  ;;  %v1621_v29 = vpop.xlane.xlu0 %1620  ;;  %v1664_v44 = vld [vmem:[%s5715_s2 + $0x18] sm:$0xff] }
 0x205   :  { %v1639_v0 = vmul.f32 0.03125, %v1621_v29 }
 0x206   :  { %v1648_v5 = vmul.f32 %v4717_v9, %v4717_v9 }
 0x207   :  { %v1655_v37 = vsub.f32 %v1639_v0, %v1647_v60  ;;  %v1624_v54 = vpop.xlane.xlu1 %1623 }
 0x208   :  { %v1640_v55 = vmul.f32 0.03125, %v1624_v54  ;;  %v1586_v12 = vpop.xlane.xlu0 %1585 }
 0x209   :  { %v1671_v49 = vadd.f32 1e-05, %v1655_v37  ;;  %v4725_v20 = vmul.f32 0.03125, %v1586_v12 }
 0x20a   :  { %v1656_v51 = vsub.f32 %v1640_v55, %v1648_v5 }
 0x20b   :  { %3476 = vrsqrt.f32 %v1671_v49  ;;  %v1646_v45 = vmul.f32 %v4725_v20, %v4725_v20  ;;  %v1618_v24 = vpop.xlane.xlu1 %1617 }
 0x20c   :  { %v1672_v41 = vadd.f32 1e-05, %v1656_v51  ;;  %v1638_v18 = vmul.f32 0.03125, %v1618_v24  ;;  %v1615_v3 = vpop.xlane.xlu0 %1614  ;;  %v1662_v24 = vld [vmem:[%s5715_s2 + $0x8] sm:$0xff] }
 0x20d   :  { %v1637_v33 = vmul.f32 0.03125, %v1615_v3  ;;  %v1661_v3 = vld [vmem:[%s5715_s2] sm:$0xff] }
 0x20e   :  { %3478 = vrsqrt.f32 %v1672_v41  ;;  %v1654_v43 = vsub.f32 %v1638_v18, %v1646_v45 }
 0x20f   :  { %v1653_v40 = vsub.f32 %v1637_v33, %v1645_v15  ;;  %v1604_v38 = vpop.xlane.xlu1 %1603 }
 0x210   :  { %v1670_v31 = vadd.f32 1e-05, %v1654_v43  ;;  %v1601_v59 = vpop.xlane.xlu0 %1600  ;;  %v4741_v37 = vmul.f32 0.03125, %v1604_v38 }
 0x211   :  { %v1669_v48 = vadd.f32 1e-05, %v1653_v40  ;;  %v4743_v54 = vmul.f32 0.03125, %v1601_v59 }
 0x212   :  { %3480 = vrsqrt.f32 %v1670_v31  ;;  %v1652_v33 = vmul.f32 %v4741_v37, %v4741_v37 }
 0x213   :  { %3482 = vrsqrt.f32 %v1669_v48  ;;  %v1598_v6 = vpop.xlane.xlu1 %1597  ;;  %v1651_v43 = vmul.f32 %v4743_v54, %v4743_v54 }
 0x214   :  { %v4734_v14 = vmul.f32 0.03125, %v1598_v6  ;;  %v1595_v22 = vpop.xlane.xlu0 %1594 }
 0x215   :  { %v3477_v28 = vpop.eup %3476  ;;  %v4739_v29 = vmul.f32 0.03125, %v1595_v22 }
 0x216   :  { %v1687_v58 = vmul.f32 %v3477_v28, %v1663_v61  ;;  %v1650_v5 = vmul.f32 %v4734_v14, %v4734_v14 }
 0x217   :  { %v1630_v60 = vpop.xlane.xlu1 %1629  ;;  %v1649_v41 = vmul.f32 %v4739_v29, %v4739_v29 }
 0x218   :  { %v3479_v0 = vpop.eup %3478  ;;  %v1642_v55 = vmul.f32 0.03125, %v1630_v60  ;;  %v1627_v12 = vpop.xlane.xlu0 %1626  ;;  %1729 = vperm.xlu1 %3409, %v1687_v58   ;;  %v1703_v22 = vmul.f32 %v1687_v58, %v4715_v16 }
 0x219   :  { %v1641_v49 = vmul.f32 0.03125, %v1627_v12  ;;  %v1688_v51 = vmul.f32 %v3479_v0, %v1664_v44  ;;  %v1695_v0 = vld [vmem:[%s5716_s3 + $0x10] sm:$0xff] }
 0x21a   :  { %v1658_v45 = vsub.f32 %v1642_v55, %v1650_v5  ;;  %v1696_v55 = vld [vmem:[%s5716_s3 + $0x18] sm:$0xff]  ;;  %v1711_v16 = vsub.f32 %v1695_v0, %v1703_v22 }
 0x21b   :  { %v1636_v18 = vpop.xlane.xlu1 %1635  ;;  %v1657_v48 = vsub.f32 %v1641_v49, %v1649_v41  ;;  %v1704_v60 = vmul.f32 %v1688_v51, %v4717_v9  ;;  %v1693_v41 = vld [vmem:[%s5716_s3] sm:$0xff]  ;;  %v1700_v22 = vld [vmem:[%s5716_s3 + $0x38] sm:$0xff] }
 0x21c   :  { %v3481_v15 = vpop.eup %3480  ;;  %v1674_v40 = vadd.f32 1e-05, %v1658_v45  ;;  %v1644_v38 = vmul.f32 0.03125, %v1636_v18  ;;  %v1633_v31 = vpop.xlane.xlu0 %1632  ;;  %1734 = vperm.xlu1 %3409, %v1688_v51   ;;  %v1694_v51 = vld [vmem:[%s5716_s3 + $0x8] sm:$0xff] }
 0x21d   :  { %v3483_v59 = vpop.eup %3482  ;;  %v1643_v6 = vmul.f32 0.03125, %v1633_v31  ;;  %v1686_v61 = vmul.f32 %v3481_v15, %v1662_v24  ;;  %v1673_v49 = vadd.f32 1e-05, %v1657_v48  ;;  %v1712_v58 = vsub.f32 %v1696_v55, %v1704_v60  ;;  %v1697_v55 = vld [vmem:[%s5716_s3 + $0x20] sm:$0xff] }
 0x21e   :  { %3484 = vrsqrt.f32 %v1674_v40  ;;  %v1660_v28 = vsub.f32 %v1644_v38, %v1652_v33  ;;  %v1685_v44 = vmul.f32 %v3483_v59, %v1661_v3  ;;  %v1698_v33 = vld [vmem:[%s5716_s3 + $0x28] sm:$0xff]  ;;  %v1667_v38 = vld [vmem:[%s5715_s2 + $0x30] sm:$0xff] }
 0x21f   :  { %v1659_v5 = vsub.f32 %v1643_v6, %v1651_v43  ;;  %v1702_v24 = vmul.f32 %v1686_v61, %v4725_v20  ;;  %v1666_v20 = vld [vmem:[%s5715_s2 + $0x28] sm:$0xff]  ;;  %v1668_v43 = vld [vmem:[%s5715_s2 + $0x38] sm:$0xff] }
 0x220   :  { %v1676_v12 = vadd.f32 1e-05, %v1660_v28  ;;  %1719 = vperm.xlu0 %3410, %v1685_v44   ;;  %1724 = vperm.xlu1 %3409, %v1686_v61   ;;  %v1701_v9 = vmul.f32 %v1685_v44, %v4723_v47 }
 0x221   :  { %v1675_v45 = vadd.f32 1e-05, %v1659_v5  ;;  %v1710_v18 = vsub.f32 %v1694_v51, %v1702_v24  ;;  %v6107_v51 = vld [vmem:[#allocation32_spill] sm:$0xff] }
 0x222   :  { %3486 = vrsqrt.f32 %v1676_v12  ;;  %v1709_v3 = vsub.f32 %v1693_v41, %v1701_v9 }
 0x223   :  { %3488 = vrsqrt.f32 %v1675_v45 }
 0x224   :  { %1782 = vperm.xlu0 %3410, %v1712_v58   ;;  %1777 = vperm.xlu1 %3409, %v1711_v16   ;;  %3490 = vrsqrt.f32 %v1673_v49  ;;  %v1699_v49 = vld [vmem:[%s5716_s3 + $0x30] sm:$0xff]  ;;  %v6105_v58 = vld [vmem:[#allocation2_spill] sm:$0xff] }
 0x228   :  { %v3485_v15 = vpop.eup %3484  ;;  %1772 = vperm.xlu0 %3410, %v1710_v18   ;;  %1767 = vperm.xlu1 %3409, %v1709_v3   ;;  %v6108_v18 = vld [vmem:[#allocation47_spill] sm:$0xff] }
 0x229   :  { %v1690_v47 = vmul.f32 %v3485_v15, %v1666_v20  ;;  %v6110_v15 = vld [vmem:[#allocation79_spill] sm:$0xff] }
 0x22b   :  { %v1706_v40 = vmul.f32 %v1690_v47, %v4734_v14  ;;  %v1665_v14 = vld [vmem:[%s5715_s2 + $0x20] sm:$0xff] }
 0x22c   :  { %v3487_v31 = vpop.eup %3486 }
 0x22d   :  { %v3489_v59 = vpop.eup %3488  ;;  %v1714_v48 = vsub.f32 %v1698_v33, %v1706_v40  ;;  %v1692_v6 = vmul.f32 %v3487_v31, %v1668_v43  ;;  %v6111_v33 = vld [vmem:[#allocation100_spill] sm:$0xff]  ;;  %v6112_v40 = vld [vmem:[#allocation146_spill] sm:$0xff]  ;;  %v6113_v31 = vld [vmem:[#allocation5_spill] sm:$0xff] }
 0x22e   :  { %v1691_v61 = vmul.f32 %v3489_v59, %v1667_v38  ;;  %v3491_v28 = vpop.eup %3490 }
 0x22f   :  { %1792 = vperm.xlu0 %3410, %v1714_v48   ;;  %v1708_v44 = vmul.f32 %v1692_v6, %v4741_v37  ;;  %v1689_v0 = vmul.f32 %v3491_v28, %v1665_v14 }
 0x230   :  { %1749 = vperm.xlu1 %3409, %v1691_v61   ;;  %v1707_v37 = vmul.f32 %v1691_v61, %v4743_v54  ;;  %v6109_v54 = vld [vmem:[#allocation63_spill] sm:$0xff] }
 0x231   :  { %v1716_v60 = vsub.f32 %v1700_v22, %v1708_v44  ;;  %v1705_v5 = vmul.f32 %v1689_v0, %v4739_v29  ;;  %v6106_v29 = vld [vmem:[#allocation17_spill] sm:$0xff] }
 0x232   :  { %v1715_v45 = vsub.f32 %v1699_v49, %v1707_v37 }
 0x233   :  { %1802 = vperm.xlu0 %3410, %v1716_v60   ;;  %v1713_v12 = vsub.f32 %v1697_v55, %v1705_v5  ;;  %v6114_v60 = vld [vmem:[#allocation4_spill] sm:$0xff]  ;;  %v6116_v55 = vld [vmem:[#allocation34_spill] sm:$0xff] }
 0x234   :  { %1739 = vperm.xlu1 %3409, %v1689_v0  }
 0x238   :  { %1754 = vperm.xlu1 %3409, %v1692_v6  }
 0x23c   :  { %1744 = vperm.xlu1 %3409, %v1690_v47  }
 0x240   :  { %1787 = vperm.xlu1 %3409, %v1713_v12   ;;  %v6117_v12 = vld [vmem:[#allocation49_spill] sm:$0xff] }
 0x244   :  { %1797 = vperm.xlu1 %3409, %v1715_v45   ;;  %v6119_v45 = vld [vmem:[#allocation81_spill] sm:$0xff] }
 0x297   :  { %v1730_v16 = vpop.permute.xlu1 %1729 }
 0x298   :  { %v4804_v24 = vmul.f32 %v6105_v58, %v1730_v16  ;;  %v4807_v9 = vmul.f32 %v6106_v29, %v1730_v16  ;;  %v4810_v41 = vmul.f32 %v6107_v51, %v1730_v16  ;;  %v4813_v3 = vmul.f32 %v6108_v18, %v1730_v16  ;;  %v6120_v58 = vld [vmem:[#allocation106_spill] sm:$0xff] }
 0x299   :  { %v4816_v20 = vmul.f32 %v6109_v54, %v1730_v16  ;;  %v4819_v47 = vmul.f32 %v6110_v15, %v1730_v16  ;;  %v4822_v43 = vmul.f32 %v6111_v33, %v1730_v16  ;;  %v4825_v38 = vmul.f32 %v6112_v40, %v1730_v16  ;;  %v6123_v54 = vld [vmem:[#allocation37_spill] sm:$0xff] }
 0x29a   :  { %v4828_v59 = vmul.f32 %v6113_v31, %v1730_v16  ;;  %v4831_v48 = vmul.f32 %v3827_v26, %v1730_v16  ;;  %v4834_v6 = vmul.f32 %v3901_v36, %v1730_v16  ;;  %v4837_v61 = vmul.f32 %v6054_v4, %v1730_v16  ;;  %v6115_v36 = vld [vmem:[#allocation19_spill] sm:$0xff]  ;;  %v6124_v33 = vld [vmem:[#allocation53_spill] sm:$0xff] }
 0x29b   :  { %v4840_v22 = vmul.f32 %v6058_v1, %v1730_v16  ;;  %v4843_v28 = vmul.f32 %v6003_v62, %v1730_v16  ;;  %v4846_v44 = vmul.f32 %v4201_v39, %v1730_v16  ;;  %v4849_v14 = vmul.f32 %v4455_v13, %v1730_v16  ;;  %v1735_v26 = vpop.permute.xlu1 %1734  ;;  %v6118_v1 = vld [vmem:[#allocation65_spill] sm:$0xff]  ;;  %v6121_v39 = vld [vmem:[#allocation150_spill] sm:$0xff] }
 0x29c   :  { %v1760_v0 = vmul.f32 %v6114_v60, %v1735_v26  ;;  %v1865_v5 = vmul.f32 %v6115_v36, %v1735_v26  ;;  %v1929_v4 = vmul.f32 %v6116_v55, %v1735_v26  ;;  %v1993_v37 = vmul.f32 %v6117_v12, %v1735_v26  ;;  %v6122_v16 = vld [vmem:[#allocation22_spill] sm:$0xff]  ;;  %v6125_v31 = vld [vmem:[#allocation69_spill] sm:$0xff] }
 0x29d   :  { %v2057_v49 = vmul.f32 %v6118_v1, %v1735_v26  ;;  %v2121_v62 = vmul.f32 %v6119_v45, %v1735_v26  ;;  %v2185_v29 = vmul.f32 %v6120_v58, %v1735_v26  ;;  %v2249_v51 = vmul.f32 %v6121_v39, %v1735_v26  ;;  %v6126_v1 = vld [vmem:[#allocation3_spill] sm:$0xff]  ;;  %v6128_v58 = vld [vmem:[#allocation18_spill] sm:$0xff] }
 0x29e   :  { %v4860_v13 = vmul.f32 %v3789_v7, %v1735_v26  ;;  %v4863_v18 = vmul.f32 %v6122_v16, %v1735_v26  ;;  %v4866_v15 = vmul.f32 %v6123_v54, %v1735_v26  ;;  %v4869_v40 = vmul.f32 %v6124_v33, %v1735_v26  ;;  %v6130_v16 = vld [vmem:[#allocation33_spill] sm:$0xff]  ;;  %v6132_v33 = vld [vmem:[#allocation48_spill] sm:$0xff] }
 0x29f   :  { %v4872_v60 = vmul.f32 %v6125_v31, %v1735_v26  ;;  %v4875_v36 = vmul.f32 %v4081_v10, %v1735_v26  ;;  %v4878_v55 = vmul.f32 %v4229_v42, %v1735_v26  ;;  %v4881_v7 = vmul.f32 %v4473_v34, %v1735_v26  ;;  %v1720_v12 = vpop.permute.xlu0 %1719  ;;  %v6134_v10 = vld [vmem:[#allocation64_spill] sm:$0xff]  ;;  %v6138_v34 = vld [vmem:[#allocation103_spill] sm:$0xff] }
 0x2a0   :  { %v4884_v45 = vmul.f32 %v1720_v12, %v6126_v1  ;;  %v4887_v39 = vmul.f32 %v1720_v12, %v6128_v58  ;;  %v4890_v54 = vmul.f32 %v1720_v12, %v6130_v16  ;;  %v4893_v31 = vmul.f32 %v1720_v12, %v6132_v33  ;;  %v6136_v42 = vld [vmem:[#allocation80_spill] sm:$0xff]  ;;  %v6140_v1 = vld [vmem:[#allocation149_spill] sm:$0xff]  ;;  %v1725_v58 = vpop.permute.xlu1 %1724 }
 0x2a1   :  { %v4896_v46 = vmul.f32 %v1720_v12, %v6134_v10  ;;  %v4899_v8 = vmul.f32 %v1720_v12, %v6136_v42  ;;  %v4902_v26 = vmul.f32 %v1720_v12, %v6138_v34  ;;  %v4905_v50 = vmul.f32 %v1720_v12, %v6140_v1  ;;  %v6144_v16 = vld [vmem:[#allocation21_spill] sm:$0xff]  ;;  %v6146_v33 = vld [vmem:[#allocation36_spill] sm:$0xff] }
 0x2a2   :  { %6127 = vst [vmem:[#allocation95_spill] sm:$0xff] %v4884_v45  ;;  %6129 = vst [vmem:[#allocation96_spill] sm:$0xff] %v4887_v39  ;;  %v4908_v53 = vmul.f32 %v1720_v12, %v6142_v17  ;;  %v4911_v19 = vmul.f32 %v1720_v12, %v6144_v16  ;;  %v4914_v32 = vmul.f32 %v1720_v12, %v6146_v33  ;;  %v6148_v10 = vld [vmem:[#allocation52_spill] sm:$0xff]  ;;  %v6155_v16 = vld [vmem:[#allocation6_spill] sm:$0xff] }
 0x2a3   :  { %6131 = vst [vmem:[#allocation104_spill] sm:$0xff] %v4890_v54  ;;  %6133 = vst [vmem:[#allocation97_spill] sm:$0xff] %v4893_v31  ;;  %v4917_v35 = vmul.f32 %v1720_v12, %v6148_v10  ;;  %v6150_v42 = vld [vmem:[#allocation68_spill] sm:$0xff]  ;;  %v4923_v34 = vmul.f32 %v1720_v12, %v4076_v30  ;;  %v4926_v1 = vmul.f32 %v1720_v12, %v4216_v56  ;;  %v6157_v10 = vld [vmem:[#allocation35_spill] sm:$0xff] }
 0x2a4   :  { %6135 = vst [vmem:[#allocation105_spill] sm:$0xff] %v4896_v46  ;;  %6137 = vst [vmem:[#allocation112_spill] sm:$0xff] %v4899_v8  ;;  %v4920_v63 = vmul.f32 %v1720_v12, %v6150_v42  ;;  %v4929_v17 = vmul.f32 %v1720_v12, %v4465_v52  ;;  %v4932_v21 = vmul.f32 %v1725_v58, %v6155_v16  ;;  %v6156_v33 = vld [vmem:[#allocation20_spill] sm:$0xff]  ;;  %v6158_v42 = vld [vmem:[#allocation51_spill] sm:$0xff] }
 0x2a5   :  { %6139 = vst [vmem:[#allocation107_spill] sm:$0xff] %v4902_v26  ;;  %6141 = vst [vmem:[#allocation98_spill] sm:$0xff] %v4905_v50  ;;  %v4935_v11 = vmul.f32 %v1725_v58, %v6156_v33  ;;  %v6159_v30 = vld [vmem:[#allocation67_spill] sm:$0xff]  ;;  %v6161_v52 = vld [vmem:[#allocation108_spill] sm:$0xff]  ;;  %v1783_v33 = vpop.permute.xlu0 %1782 }
 0x2a6   :  { %6143 = vst [vmem:[#allocation113_spill] sm:$0xff] %v4908_v53  ;;  %6145 = vst [vmem:[#allocation109_spill] sm:$0xff] %v4911_v19  ;;  %v6160_v56 = vld [vmem:[#allocation83_spill] sm:$0xff]  ;;  %v4950_v12 = vmul.f32 %v1725_v58, %v6161_v52  ;;  %v6162_v16 = vld [vmem:[#allocation153_spill] sm:$0xff]  ;;  %v4971_v52 = vmul.f32 %v1725_v58, %v6071_v25  ;;  %v1873_v26 = vadd.f32 %v1865_v5, %v1783_v33 }
 0x2a7   :  { %6147 = vst [vmem:[#allocation50_spill] sm:$0xff] %v4914_v32  ;;  %6149 = vst [vmem:[#allocation114_spill] sm:$0xff] %v4917_v35  ;;  %v4938_v35 = vmul.f32 %v1725_v58, %v6157_v10  ;;  %v6163_v32 = vld [vmem:[#allocation8_spill] sm:$0xff]  ;;  %v6164_v10 = vld [vmem:[#allocation23_spill] sm:$0xff]  ;;  %v1937_v8 = vadd.f32 %v1929_v4, %v1783_v33  ;;  %v2065_v46 = vadd.f32 %v2057_v49, %v1783_v33 }
 0x2a8   :  { %6151 = vst [vmem:[#allocation66_spill] sm:$0xff] %v4920_v63  ;;  %6152 = vst [vmem:[#allocation115_spill] sm:$0xff] %v4923_v34  ;;  %v4941_v63 = vmul.f32 %v1725_v58, %v6158_v42  ;;  %v4944_v34 = vmul.f32 %v1725_v58, %v6159_v30  ;;  %v4956_v19 = vmul.f32 %v1725_v58, %v6163_v32  ;;  %v6165_v42 = vld [vmem:[#allocation38_spill] sm:$0xff] }
 0x2a9   :  { %6153 = vst [vmem:[#allocation125_spill] sm:$0xff] %v4926_v1  ;;  %6154 = vst [vmem:[#allocation117_spill] sm:$0xff] %v4929_v17  ;;  %v4947_v1 = vmul.f32 %v1725_v58, %v6160_v56  ;;  %v4953_v17 = vmul.f32 %v1725_v58, %v6162_v16  ;;  %v4959_v53 = vmul.f32 %v1725_v58, %v6164_v10  ;;  %v1945_v45 = vmax.f32 %v1937_v8, 0.0 }
 0x2aa   :  { %v4962_v50 = vmul.f32 %v1725_v58, %v6165_v42  ;;  %v4965_v30 = vmul.f32 %v1725_v58, %v6065_v57  ;;  %v4968_v56 = vmul.f32 %v1725_v58, %v6068_v23  ;;  %6169 = vst [vmem:[#allocation70_spill] sm:$0xff] %v4971_v52  ;;  %v4974_v16 = vmul.f32 %v1725_v58, %v6074_v2 }
 0x2ab   :  { %v4977_v32 = vmul.f32 %v1725_v58, %v4479_v27  ;;  %v1808_v10 = vadd.f32 %v1783_v33, %v1760_v0  ;;  %v2001_v42 = vadd.f32 %v1993_v37, %v1783_v33  ;;  %v2129_v31 = vadd.f32 %v2121_v62, %v1783_v33 }
 0x2ac   :  { %6166 = vst [vmem:[#allocation54_spill] sm:$0xff] %v4962_v50  ;;  %6167 = vst [vmem:[#allocation118_spill] sm:$0xff] %v4965_v30  ;;  %v2193_v57 = vadd.f32 %v2185_v29, %v1783_v33  ;;  %v2257_v54 = vadd.f32 %v2249_v51, %v1783_v33  ;;  %v1881_v23 = vmax.f32 %v1873_v26, 0.0  ;;  %v2073_v25 = vmax.f32 %v2065_v46, 0.0 }
 0x2ad   :  { %6168 = vst [vmem:[#allocation129_spill] sm:$0xff] %v4968_v56  ;;  %6170 = vst [vmem:[#allocation132_spill] sm:$0xff] %v4974_v16  ;;  %v1816_v39 = vmax.f32 %v1808_v10, 0.0  ;;  %v2009_v56 = vmax.f32 %v2001_v42, 0.0  ;;  %v2137_v52 = vmax.f32 %v2129_v31, 0.0  ;;  %v3102_v27 = vpack.c.bf16 %v1945_v45, %v1945_v45 }
 0x2ae   :  { %v2201_v30 = vmax.f32 %v2193_v57, 0.0  ;;  %v2265_v2 = vmax.f32 %v2257_v54, 0.0  ;;  %v3094_v50 = vpack.c.bf16 %v1881_v23, %v1881_v23  ;;  %v3118_v0 = vpack.c.bf16 %v2073_v25, %v2073_v25 }
 0x2af   :  { %v3086_v16 = vpack.c.bf16 %v1816_v39, %v1816_v39  ;;  %v3110_v58 = vpack.c.bf16 %v2009_v56, %v2009_v56  ;;  %v3126_v5 = vpack.c.bf16 %v2137_v52, %v2137_v52  ;;  %1985 = vst.msk [vmem:[%s5717_s4 + $0x4c] sm:$0xf] %vm1853_vm2, %v3102_v27  ;;  %v2321_v46 = vadd.f32 %v4860_v13, %v1783_v33 }
 0x2b0   :  { %v3134_v4 = vpack.c.bf16 %v2201_v30, %v2201_v30  ;;  %v3142_v37 = vpack.c.bf16 %v2265_v2, %v2265_v2  ;;  %1921 = vst.msk [vmem:[%s5717_s4 + $0x2c] sm:$0xf] %vm1853_vm2, %v3094_v50  ;;  %v2385_v8 = vadd.f32 %v4863_v18, %v1783_v33  ;;  %v2449_v49 = vadd.f32 %v4866_v15, %v1783_v33  ;;  %v1778_v30 = vpop.permute.xlu1 %1777 }
 0x2b1   :  { %1857 = vst.msk [vmem:[%s5717_s4 + $0xc] sm:$0xf] %vm1853_vm2, %v3086_v16  ;;  %2049 = vst.msk [vmem:[%s5717_s4 + $0x6c] sm:$0xf] %vm1853_vm2, %v3110_v58  ;;  %v2513_v62 = vadd.f32 %v4869_v40, %v1783_v33  ;;  %v2577_v50 = vadd.f32 %v4872_v60, %v1783_v33  ;;  %v2641_v29 = vadd.f32 %v4875_v36, %v1783_v33  ;;  %v2329_v18 = vmax.f32 %v2321_v46, 0.0 }
 0x2b2   :  { %2113 = vst.msk [vmem:[%s5717_s4 + $0x8c] sm:$0xf] %vm1853_vm2, %v3118_v0  ;;  %2177 = vst.msk [vmem:[%s5717_s4 + $0xac] sm:$0xf] %vm1853_vm2, %v3126_v5  ;;  %v2705_v51 = vadd.f32 %v4878_v55, %v1783_v33  ;;  %v2769_v13 = vadd.f32 %v4881_v7, %v1783_v33  ;;  %v2393_v15 = vmax.f32 %v2385_v8, 0.0  ;;  %v2457_v40 = vmax.f32 %v2449_v49, 0.0 }
 0x2b3   :  { %2241 = vst.msk [vmem:[%s5717_s4 + $0xcc] sm:$0xf] %vm1853_vm2, %v3134_v4  ;;  %2305 = vst.msk [vmem:[%s5717_s4 + $0xec] sm:$0xf] %vm1853_vm2, %v3142_v37  ;;  %v2521_v45 = vmax.f32 %v2513_v62, 0.0  ;;  %v2585_v39 = vmax.f32 %v2577_v50, 0.0  ;;  %v3150_v56 = vpack.c.bf16 %v2329_v18, %v2329_v18  ;;  %v1807_v55 = vadd.f32 %v1778_v30, %v4804_v24 }
 0x2b4   :  { %v2649_v54 = vmax.f32 %v2641_v29, 0.0  ;;  %v2713_v31 = vmax.f32 %v2705_v51, 0.0  ;;  %v2777_v26 = vmax.f32 %v2769_v13, 0.0  ;;  %v3158_v52 = vpack.c.bf16 %v2393_v15, %v2393_v15 }
 0x2b5   :  { %v3166_v16 = vpack.c.bf16 %v2457_v40, %v2457_v40  ;;  %v3174_v10 = vpack.c.bf16 %v2521_v45, %v2521_v45  ;;  %v3182_v60 = vpack.c.bf16 %v2585_v39, %v2585_v39  ;;  %2369 = vst.msk [vmem:[%s5717_s4 + $0x10c] sm:$0xf] %vm1853_vm2, %v3150_v56  ;;  %v1872_v7 = vadd.f32 %v4807_v9, %v1778_v30  ;;  %v1773_v56 = vpop.permute.xlu0 %1772 }
 0x2b6   :  { %v3190_v42 = vpack.c.bf16 %v2649_v54, %v2649_v54  ;;  %v3198_v36 = vpack.c.bf16 %v2713_v31, %v2713_v31  ;;  %v3206_v57 = vpack.c.bf16 %v2777_v26, %v2777_v26  ;;  %2433 = vst.msk [vmem:[%s5717_s4 + $0x12c] sm:$0xf] %vm1853_vm2, %v3158_v52  ;;  %v1936_v33 = vadd.f32 %v4810_v41, %v1778_v30 }
 0x2b7   :  { %2497 = vst.msk [vmem:[%s5717_s4 + $0x14c] sm:$0xf] %vm1853_vm2, %v3166_v16  ;;  %2561 = vst.msk [vmem:[%s5717_s4 + $0x16c] sm:$0xf] %vm1853_vm2, %v3174_v10  ;;  %v2000_v23 = vadd.f32 %v4813_v3, %v1778_v30  ;;  %v2064_v24 = vadd.f32 %v4816_v20, %v1778_v30  ;;  %v2128_v9 = vadd.f32 %v4819_v47, %v1778_v30  ;;  %v1815_v25 = vmax.f32 %v1807_v55, 0.0 }
 0x2b8   :  { %2625 = vst.msk [vmem:[%s5717_s4 + $0x18c] sm:$0xf] %vm1853_vm2, %v3182_v60  ;;  %2689 = vst.msk [vmem:[%s5717_s4 + $0x1ac] sm:$0xf] %vm1853_vm2, %v3190_v42  ;;  %v2192_v41 = vadd.f32 %v4822_v43, %v1778_v30  ;;  %v2256_v3 = vadd.f32 %v4825_v38, %v1778_v30  ;;  %v1880_v2 = vmax.f32 %v1872_v7, 0.0  ;;  %v1944_v27 = vmax.f32 %v1936_v33, 0.0 }
 0x2b9   :  { %2753 = vst.msk [vmem:[%s5717_s4 + $0x1cc] sm:$0xf] %vm1853_vm2, %v3198_v36  ;;  %2817 = vst.msk [vmem:[%s5717_s4 + $0x1ec] sm:$0xf] %vm1853_vm2, %v3206_v57  ;;  %v2008_v58 = vmax.f32 %v2000_v23, 0.0  ;;  %v2072_v0 = vmax.f32 %v2064_v24, 0.0  ;;  %v3085_v46 = vpack.c.bf16 %v1815_v25, %v1815_v25  ;;  %v2320_v43 = vadd.f32 %v4828_v59, %v1778_v30 }
 0x2ba   :  { %v2136_v5 = vmax.f32 %v2128_v9, 0.0  ;;  %v2200_v4 = vmax.f32 %v2192_v41, 0.0  ;;  %v2264_v37 = vmax.f32 %v2256_v3, 0.0  ;;  %v3093_v8 = vpack.c.bf16 %v1880_v2, %v1880_v2 }
 0x2bb   :  { %v3101_v49 = vpack.c.bf16 %v1944_v27, %v1944_v27  ;;  %v3109_v62 = vpack.c.bf16 %v2008_v58, %v2008_v58  ;;  %v3117_v50 = vpack.c.bf16 %v2072_v0, %v2072_v0  ;;  %1856 = vst.msk [vmem:[%s5717_s4 + $0x8] sm:$0xf] %vm1853_vm2, %v3085_v46  ;;  %v2384_v38 = vadd.f32 %v4831_v48, %v1778_v30  ;;  %v6172_v46 = vld [vmem:[#allocation118_spill] sm:$0xff] }
 0x2bc   :  { %v3125_v20 = vpack.c.bf16 %v2136_v5, %v2136_v5  ;;  %v3133_v29 = vpack.c.bf16 %v2200_v4, %v2200_v4  ;;  %v3141_v47 = vpack.c.bf16 %v2264_v37, %v2264_v37  ;;  %1920 = vst.msk [vmem:[%s5717_s4 + $0x28] sm:$0xf] %vm1853_vm2, %v3093_v8  ;;  %v2448_v51 = vadd.f32 %v4834_v6, %v1778_v30  ;;  %v6171_v4 = vld [vmem:[#allocation54_spill] sm:$0xff] }
 0x2bd   :  { %1984 = vst.msk [vmem:[%s5717_s4 + $0x48] sm:$0xf] %vm1853_vm2, %v3101_v49  ;;  %2048 = vst.msk [vmem:[%s5717_s4 + $0x68] sm:$0xf] %vm1853_vm2, %v3109_v62  ;;  %v2512_v13 = vadd.f32 %v4837_v61, %v1778_v30  ;;  %v2576_v59 = vadd.f32 %v4840_v22, %v1778_v30  ;;  %v2640_v48 = vadd.f32 %v4843_v28, %v1778_v30  ;;  %v2328_v18 = vmax.f32 %v2320_v43, 0.0  ;;  %v6174_v49 = vld [vmem:[#allocation70_spill] sm:$0xff] }
 0x2be   :  { %2112 = vst.msk [vmem:[%s5717_s4 + $0x88] sm:$0xf] %vm1853_vm2, %v3117_v50  ;;  %2176 = vst.msk [vmem:[%s5717_s4 + $0xa8] sm:$0xf] %vm1853_vm2, %v3125_v20  ;;  %v2704_v6 = vadd.f32 %v4846_v44, %v1778_v30  ;;  %v2768_v61 = vadd.f32 %v4849_v14, %v1778_v30  ;;  %v2392_v15 = vmax.f32 %v2384_v38, 0.0  ;;  %v2456_v40 = vmax.f32 %v2448_v51, 0.0 }
 0x2bf   :  { %2240 = vst.msk [vmem:[%s5717_s4 + $0xc8] sm:$0xf] %vm1853_vm2, %v3133_v29  ;;  %2304 = vst.msk [vmem:[%s5717_s4 + $0xe8] sm:$0xf] %vm1853_vm2, %v3141_v47  ;;  %v2520_v45 = vmax.f32 %v2512_v13, 0.0  ;;  %v2584_v39 = vmax.f32 %v2576_v59, 0.0  ;;  %v3149_v52 = vpack.c.bf16 %v2328_v18, %v2328_v18  ;;  %v1806_v44 = vadd.f32 %v1773_v56, %v4932_v21 }
 0x2c0   :  { %v2648_v54 = vmax.f32 %v2640_v48, 0.0  ;;  %v2712_v31 = vmax.f32 %v2704_v6, 0.0  ;;  %v2776_v26 = vmax.f32 %v2768_v61, 0.0  ;;  %v3157_v16 = vpack.c.bf16 %v2392_v15, %v2392_v15  ;;  %v6175_v50 = vld [vmem:[#allocation132_spill] sm:$0xff]  ;;  %v1768_v61 = vpop.permute.xlu1 %1767 }
 0x2c1   :  { %v3165_v10 = vpack.c.bf16 %v2456_v40, %v2456_v40  ;;  %v3173_v60 = vpack.c.bf16 %v2520_v45, %v2520_v45  ;;  %v3181_v22 = vpack.c.bf16 %v2584_v39, %v2584_v39  ;;  %2368 = vst.msk [vmem:[%s5717_s4 + $0x108] sm:$0xf] %vm1853_vm2, %v3149_v52  ;;  %v1871_v14 = vadd.f32 %v4935_v11, %v1773_v56  ;;  %v6177_v52 = vld [vmem:[#allocation96_spill] sm:$0xff] }
 0x2c2   :  { %v3189_v42 = vpack.c.bf16 %v2648_v54, %v2648_v54  ;;  %v3197_v28 = vpack.c.bf16 %v2712_v31, %v2712_v31  ;;  %v3205_v36 = vpack.c.bf16 %v2776_v26, %v2776_v26  ;;  %2432 = vst.msk [vmem:[%s5717_s4 + $0x128] sm:$0xf] %vm1853_vm2, %v3157_v16  ;;  %v1935_v30 = vadd.f32 %v4938_v35, %v1773_v56 }
 0x2c3   :  { %2496 = vst.msk [vmem:[%s5717_s4 + $0x148] sm:$0xf] %vm1853_vm2, %v3165_v10  ;;  %2560 = vst.msk [vmem:[%s5717_s4 + $0x168] sm:$0xf] %vm1853_vm2, %v3173_v60  ;;  %v1999_v57 = vadd.f32 %v4941_v63, %v1773_v56  ;;  %v2063_v11 = vadd.f32 %v4944_v34, %v1773_v56  ;;  %v2127_v21 = vadd.f32 %v4947_v1, %v1773_v56  ;;  %v1814_v55 = vmax.f32 %v1806_v44, 0.0  ;;  %v6178_v10 = vld [vmem:[#allocation104_spill] sm:$0xff] }
 0x2c4   :  { %2624 = vst.msk [vmem:[%s5717_s4 + $0x188] sm:$0xf] %vm1853_vm2, %v3181_v22  ;;  %2688 = vst.msk [vmem:[%s5717_s4 + $0x1a8] sm:$0xf] %vm1853_vm2, %v3189_v42  ;;  %v2191_v63 = vadd.f32 %v4950_v12, %v1773_v56  ;;  %v2255_v35 = vadd.f32 %v4953_v17, %v1773_v56  ;;  %v1879_v7 = vmax.f32 %v1871_v14, 0.0  ;;  %v1943_v33 = vmax.f32 %v1935_v30, 0.0 }
 0x2c5   :  { %2752 = vst.msk [vmem:[%s5717_s4 + $0x1c8] sm:$0xf] %vm1853_vm2, %v3197_v28  ;;  %2816 = vst.msk [vmem:[%s5717_s4 + $0x1e8] sm:$0xf] %vm1853_vm2, %v3205_v36  ;;  %v2007_v23 = vmax.f32 %v1999_v57, 0.0  ;;  %v2071_v24 = vmax.f32 %v2063_v11, 0.0  ;;  %v3084_v25 = vpack.c.bf16 %v1814_v55, %v1814_v55  ;;  %v2319_v17 = vadd.f32 %v4956_v19, %v1773_v56 }
 0x2c6   :  { %v2135_v9 = vmax.f32 %v2127_v21, 0.0  ;;  %v2199_v41 = vmax.f32 %v2191_v63, 0.0  ;;  %v2263_v3 = vmax.f32 %v2255_v35, 0.0  ;;  %v3092_v2 = vpack.c.bf16 %v1879_v7, %v1879_v7  ;;  %v6173_v19 = vld [vmem:[#allocation129_spill] sm:$0xff]  ;;  %v6181_v44 = vld [vmem:[#allocation112_spill] sm:$0xff]  ;;  %v6182_v30 = vld [vmem:[#allocation107_spill] sm:$0xff]  ;;  %v5219_v63 = vpop.permute.xlu1 %1749 }
 0x2c7   :  { %v3100_v27 = vpack.c.bf16 %v1943_v33, %v1943_v33  ;;  %v3108_v58 = vpack.c.bf16 %v2007_v23, %v2007_v23  ;;  %v3116_v0 = vpack.c.bf16 %v2071_v24, %v2071_v24  ;;  %1855 = vst.msk [vmem:[%s5717_s4 + $0x4] sm:$0xf] %vm1853_vm2, %v3084_v25  ;;  %v2383_v12 = vadd.f32 %v4959_v53, %v1773_v56  ;;  %v6179_v22 = vld [vmem:[#allocation97_spill] sm:$0xff]  ;;  %v6183_v11 = vld [vmem:[#allocation98_spill] sm:$0xff] }
 0x2c8   :  { %v3124_v34 = vpack.c.bf16 %v2135_v9, %v2135_v9  ;;  %v3132_v5 = vpack.c.bf16 %v2199_v41, %v2199_v41  ;;  %v3140_v1 = vpack.c.bf16 %v2263_v3, %v2263_v3  ;;  %1919 = vst.msk [vmem:[%s5717_s4 + $0x24] sm:$0xf] %vm1853_vm2, %v3092_v2  ;;  %v2447_v37 = vadd.f32 %v6171_v4, %v1773_v56  ;;  %v6180_v28 = vld [vmem:[#allocation105_spill] sm:$0xff] }
 0x2c9   :  { %1983 = vst.msk [vmem:[%s5717_s4 + $0x44] sm:$0xf] %vm1853_vm2, %v3100_v27  ;;  %2047 = vst.msk [vmem:[%s5717_s4 + $0x64] sm:$0xf] %vm1853_vm2, %v3108_v58  ;;  %v2511_v8 = vadd.f32 %v6172_v46, %v1773_v56  ;;  %v2575_v53 = vadd.f32 %v6173_v19, %v1773_v56  ;;  %v2639_v62 = vadd.f32 %v6174_v49, %v1773_v56  ;;  %v2327_v47 = vmax.f32 %v2319_v17, 0.0 }
 0x2ca   :  { %2111 = vst.msk [vmem:[%s5717_s4 + $0x84] sm:$0xf] %vm1853_vm2, %v3116_v0  ;;  %2175 = vst.msk [vmem:[%s5717_s4 + $0xa4] sm:$0xf] %vm1853_vm2, %v3124_v34  ;;  %v2703_v20 = vadd.f32 %v6175_v50, %v1773_v56  ;;  %v2767_v29 = vadd.f32 %v4977_v32, %v1773_v56  ;;  %v2391_v43 = vmax.f32 %v2383_v12, 0.0  ;;  %v2455_v38 = vmax.f32 %v2447_v37, 0.0 }
 0x2cb   :  { %2239 = vst.msk [vmem:[%s5717_s4 + $0xc4] sm:$0xf] %vm1853_vm2, %v3132_v5  ;;  %2303 = vst.msk [vmem:[%s5717_s4 + $0xe4] sm:$0xf] %vm1853_vm2, %v3140_v1  ;;  %v2519_v51 = vmax.f32 %v2511_v8, 0.0  ;;  %v2583_v13 = vmax.f32 %v2575_v53, 0.0  ;;  %v3148_v18 = vpack.c.bf16 %v2327_v47, %v2327_v47  ;;  %v1870_v16 = vadd.f32 %v6177_v52, %v1768_v61 }
 0x2cc   :  { %v2647_v59 = vmax.f32 %v2639_v62, 0.0  ;;  %v2711_v48 = vmax.f32 %v2703_v20, 0.0  ;;  %v2775_v6 = vmax.f32 %v2767_v29, 0.0  ;;  %v3156_v15 = vpack.c.bf16 %v2391_v43, %v2391_v43  ;;  %v6176_v32 = vld [vmem:[#allocation95_spill] sm:$0xff]  ;;  %v6184_v1 = vld [vmem:[#allocation113_spill] sm:$0xff]  ;;  %v6186_v37 = vld [vmem:[#allocation50_spill] sm:$0xff] }
 0x2cd   :  { %v3164_v40 = vpack.c.bf16 %v2455_v38, %v2455_v38  ;;  %v3172_v45 = vpack.c.bf16 %v2519_v51, %v2519_v51  ;;  %v3180_v39 = vpack.c.bf16 %v2583_v13, %v2583_v13  ;;  %2367 = vst.msk [vmem:[%s5717_s4 + $0x104] sm:$0xf] %vm1853_vm2, %v3148_v18  ;;  %v1805_v56 = vadd.f32 %v1768_v61, %v6176_v32  ;;  %v6185_v12 = vld [vmem:[#allocation109_spill] sm:$0xff]  ;;  %v6187_v8 = vld [vmem:[#allocation114_spill] sm:$0xff]  ;;  %v6189_v62 = vld [vmem:[#allocation115_spill] sm:$0xff]  ;;  %v1740_v38 = vpop.permute.xlu1 %1739 }
 0x2ce   :  { %v3188_v54 = vpack.c.bf16 %v2647_v59, %v2647_v59  ;;  %v3196_v31 = vpack.c.bf16 %v2711_v48, %v2711_v48  ;;  %v3204_v26 = vpack.c.bf16 %v2775_v6, %v2775_v6  ;;  %2431 = vst.msk [vmem:[%s5717_s4 + $0x124] sm:$0xf] %vm1853_vm2, %v3156_v15  ;;  %v1934_v60 = vadd.f32 %v6178_v10, %v1768_v61  ;;  %v6188_v53 = vld [vmem:[#allocation66_spill] sm:$0xff]  ;;  %v6190_v20 = vld [vmem:[#allocation125_spill] sm:$0xff] }
 0x2cf   :  { %2495 = vst.msk [vmem:[%s5717_s4 + $0x144] sm:$0xf] %vm1853_vm2, %v3164_v40  ;;  %2559 = vst.msk [vmem:[%s5717_s4 + $0x164] sm:$0xf] %vm1853_vm2, %v3172_v45  ;;  %v1998_v42 = vadd.f32 %v6179_v22, %v1768_v61  ;;  %v2062_v36 = vadd.f32 %v6180_v28, %v1768_v61  ;;  %v2126_v14 = vadd.f32 %v6181_v44, %v1768_v61  ;;  %v1813_v35 = vmax.f32 %v1805_v56, 0.0  ;;  %v6191_v47 = vld [vmem:[#allocation117_spill] sm:$0xff] }
 0x2d0   :  { %2623 = vst.msk [vmem:[%s5717_s4 + $0x184] sm:$0xf] %vm1853_vm2, %v3180_v39  ;;  %2687 = vst.msk [vmem:[%s5717_s4 + $0x1a4] sm:$0xf] %vm1853_vm2, %v3188_v54  ;;  %v2190_v57 = vadd.f32 %v6182_v30, %v1768_v61  ;;  %v2254_v21 = vadd.f32 %v6183_v11, %v1768_v61  ;;  %v1878_v55 = vmax.f32 %v1870_v16, 0.0  ;;  %v1942_v7 = vmax.f32 %v1934_v60, 0.0  ;;  %v5261_v16 = vpop.permute.xlu0 %1792 }
 0x2d1   :  { %2751 = vst.msk [vmem:[%s5717_s4 + $0x1c4] sm:$0xf] %vm1853_vm2, %v3196_v31  ;;  %2815 = vst.msk [vmem:[%s5717_s4 + $0x1e4] sm:$0xf] %vm1853_vm2, %v3204_v26  ;;  %v2006_v33 = vmax.f32 %v1998_v42, 0.0  ;;  %v2070_v23 = vmax.f32 %v2062_v36, 0.0  ;;  %v3083_v3 = vpack.c.bf16 %v1813_v35, %v1813_v35  ;;  %v2318_v17 = vadd.f32 %v6184_v1, %v1768_v61 }
 0x2d2   :  { %v2134_v24 = vmax.f32 %v2126_v14, 0.0  ;;  %v2198_v9 = vmax.f32 %v2190_v57, 0.0  ;;  %v2262_v41 = vmax.f32 %v2254_v21, 0.0  ;;  %v3091_v25 = vpack.c.bf16 %v1878_v55, %v1878_v55  ;;  %v6193_v60 = vld [vmem:[#allocation25_spill] sm:$0xff]  ;;  %v6194_v42 = vld [vmem:[#allocation40_spill] sm:$0xff]  ;;  %v6197_v57 = vld [vmem:[#allocation86_spill] sm:$0xff] }
 0x2d3   :  { %v3099_v2 = vpack.c.bf16 %v1942_v7, %v1942_v7  ;;  %v3107_v27 = vpack.c.bf16 %v2006_v33, %v2006_v33  ;;  %v3115_v58 = vpack.c.bf16 %v2070_v23, %v2070_v23  ;;  %1854 = vst.msk [vmem:[%s5717_s4] sm:$0xf] %vm1853_vm2, %v3083_v3  ;;  %v2382_v4 = vadd.f32 %v6185_v12, %v1768_v61  ;;  %v6195_v36 = vld [vmem:[#allocation56_spill] sm:$0xff]  ;;  %v6199_v55 = vld [vmem:[#allocation99_spill] sm:$0xff]  ;;  %v1755_v33 = vpop.permute.xlu1 %1754  ;;  %v6200_v23 = vld [vmem:[#allocation14_spill] sm:$0xff] }
 0x2d4   :  { %v3123_v0 = vpack.c.bf16 %v2134_v24, %v2134_v24  ;;  %v3131_v34 = vpack.c.bf16 %v2198_v9, %v2198_v9  ;;  %v3139_v5 = vpack.c.bf16 %v2262_v41, %v2262_v41  ;;  %1918 = vst.msk [vmem:[%s5717_s4 + $0x20] sm:$0xf] %vm1853_vm2, %v3091_v25  ;;  %v2446_v46 = vadd.f32 %v6186_v37, %v1768_v61  ;;  %v6196_v14 = vld [vmem:[#allocation72_spill] sm:$0xff]  ;;  %v6201_v9 = vld [vmem:[#allocation29_spill] sm:$0xff]  ;;  %v6206_v1 = vld [vmem:[#allocation131_spill] sm:$0xff] }
 0x2d5   :  { %1982 = vst.msk [vmem:[%s5717_s4 + $0x40] sm:$0xf] %vm1853_vm2, %v3099_v2  ;;  %2046 = vst.msk [vmem:[%s5717_s4 + $0x60] sm:$0xf] %vm1853_vm2, %v3107_v27  ;;  %v2510_v19 = vadd.f32 %v6187_v8, %v1768_v61  ;;  %v2574_v49 = vadd.f32 %v6188_v53, %v1768_v61  ;;  %v2638_v50 = vadd.f32 %v6189_v62, %v1768_v61  ;;  %v2326_v51 = vmax.f32 %v2318_v17, 0.0  ;;  %v6198_v21 = vld [vmem:[#allocation124_spill] sm:$0xff] }
 0x2d6   :  { %2110 = vst.msk [vmem:[%s5717_s4 + $0x80] sm:$0xf] %vm1853_vm2, %v3115_v58  ;;  %2174 = vst.msk [vmem:[%s5717_s4 + $0xa0] sm:$0xf] %vm1853_vm2, %v3123_v0  ;;  %v2702_v29 = vadd.f32 %v6190_v20, %v1768_v61  ;;  %v2766_v43 = vadd.f32 %v6191_v47, %v1768_v61  ;;  %v2390_v13 = vmax.f32 %v2382_v4, 0.0  ;;  %v2454_v59 = vmax.f32 %v2446_v46, 0.0  ;;  %v1803_v20 = vpop.permute.xlu0 %1802 }
 0x2d7   :  { %2238 = vst.msk [vmem:[%s5717_s4 + $0xc0] sm:$0xf] %vm1853_vm2, %v3131_v34  ;;  %2302 = vst.msk [vmem:[%s5717_s4 + $0xe0] sm:$0xf] %vm1853_vm2, %v3139_v5  ;;  %v2518_v48 = vmax.f32 %v2510_v19, 0.0  ;;  %v2582_v6 = vmax.f32 %v2574_v49, 0.0  ;;  %v3147_v45 = vpack.c.bf16 %v2326_v51, %v2326_v51  ;;  %v5283_v22 = vmul.f32 %v1740_v38, %v6193_v60 }
 0x2d8   :  { %v2646_v18 = vmax.f32 %v2638_v50, 0.0  ;;  %v2710_v15 = vmax.f32 %v2702_v29, 0.0  ;;  %v2774_v40 = vmax.f32 %v2766_v43, 0.0  ;;  %v3155_v39 = vpack.c.bf16 %v2390_v13, %v2390_v13  ;;  %v6192_v61 = vld [vmem:[#allocation10_spill] sm:$0xff]  ;;  %v6202_v3 = vld [vmem:[#allocation44_spill] sm:$0xff]  ;;  %v6208_v37 = vld [vmem:[#allocation11_spill] sm:$0xff] }
 0x2d9   :  { %v3163_v54 = vpack.c.bf16 %v2454_v59, %v2454_v59  ;;  %v3171_v31 = vpack.c.bf16 %v2518_v48, %v2518_v48  ;;  %v3179_v26 = vpack.c.bf16 %v2582_v6, %v2582_v6  ;;  %2366 = vst.msk [vmem:[%s5717_s4 + $0x100] sm:$0xf] %vm1853_vm2, %v3147_v45  ;;  %v5280_v10 = vmul.f32 %v1740_v38, %v6192_v61  ;;  %v6203_v2 = vld [vmem:[#allocation60_spill] sm:$0xff]  ;;  %v6205_v34 = vld [vmem:[#allocation90_spill] sm:$0xff]  ;;  %v6210_v53 = vld [vmem:[#allocation41_spill] sm:$0xff] }
 0x2da   :  { %v3187_v32 = vpack.c.bf16 %v2646_v18, %v2646_v18  ;;  %v3195_v56 = vpack.c.bf16 %v2710_v15, %v2710_v15  ;;  %v3203_v52 = vpack.c.bf16 %v2774_v40, %v2774_v40  ;;  %2430 = vst.msk [vmem:[%s5717_s4 + $0x120] sm:$0xf] %vm1853_vm2, %v3155_v39  ;;  %v5286_v28 = vmul.f32 %v1740_v38, %v6194_v42  ;;  %v6204_v58 = vld [vmem:[#allocation76_spill] sm:$0xff]  ;;  %v6207_v12 = vld [vmem:[#allocation154_spill] sm:$0xff]  ;;  %v6211_v62 = vld [vmem:[#allocation57_spill] sm:$0xff] }
 0x2db   :  { %2494 = vst.msk [vmem:[%s5717_s4 + $0x140] sm:$0xf] %vm1853_vm2, %v3163_v54  ;;  %2558 = vst.msk [vmem:[%s5717_s4 + $0x160] sm:$0xf] %vm1853_vm2, %v3171_v31  ;;  %v5289_v44 = vmul.f32 %v1740_v38, %v6195_v36  ;;  %v5308_v30 = vmul.f32 %v1740_v38, %v6196_v14  ;;  %v5311_v11 = vmul.f32 %v1740_v38, %v6197_v57  ;;  %v6209_v8 = vld [vmem:[#allocation26_spill] sm:$0xff]  ;;  %v6212_v29 = vld [vmem:[#allocation73_spill] sm:$0xff] }
 0x2dc   :  { %2622 = vst.msk [vmem:[%s5717_s4 + $0x180] sm:$0xf] %vm1853_vm2, %v3179_v26  ;;  %2686 = vst.msk [vmem:[%s5717_s4 + $0x1a0] sm:$0xf] %vm1853_vm2, %v3187_v32  ;;  %v5314_v35 = vmul.f32 %v1740_v38, %v6198_v21  ;;  %v5317_v7 = vmul.f32 %v1740_v38, %v6199_v55  ;;  %v5320_v24 = vmul.f32 %v1740_v38, %v6200_v23  ;;  %v6213_v43 = vld [vmem:[#allocation87_spill] sm:$0xff]  ;;  %v6215_v48 = vld [vmem:[#allocation94_spill] sm:$0xff] }
 0x2dd   :  { %2750 = vst.msk [vmem:[%s5717_s4 + $0x1c0] sm:$0xf] %vm1853_vm2, %v3195_v56  ;;  %2814 = vst.msk [vmem:[%s5717_s4 + $0x1e0] sm:$0xf] %vm1853_vm2, %v3203_v52  ;;  %v5323_v41 = vmul.f32 %v1740_v38, %v6201_v9  ;;  %v5326_v25 = vmul.f32 %v1740_v38, %v6202_v3  ;;  %v5329_v27 = vmul.f32 %v1740_v38, %v6203_v2  ;;  %v6214_v13 = vld [vmem:[#allocation127_spill] sm:$0xff] }
 0x2de   :  { %v5332_v0 = vmul.f32 %v1740_v38, %v6204_v58  ;;  %v5335_v5 = vmul.f32 %v1740_v38, %v6205_v34  ;;  %v5338_v17 = vmul.f32 %v1740_v38, %v6206_v1  ;;  %v5341_v4 = vmul.f32 %v1740_v38, %v6207_v12  ;;  %v6216_v58 = vld [vmem:[#allocation15_spill] sm:$0xff]  ;;  %v6217_v1 = vld [vmem:[#allocation30_spill] sm:$0xff] }
 0x2df   :  { %v1764_v46 = vmul.f32 %v6208_v37, %v1755_v33  ;;  %v1869_v19 = vmul.f32 %v6209_v8, %v1755_v33  ;;  %v1933_v49 = vmul.f32 %v6210_v53, %v1755_v33  ;;  %v1997_v50 = vmul.f32 %v6211_v62, %v1755_v33  ;;  %v6218_v37 = vld [vmem:[#allocation45_spill] sm:$0xff]  ;;  %v6221_v62 = vld [vmem:[#allocation91_spill] sm:$0xff] }
 0x2e0   :  { %v2061_v47 = vmul.f32 %v6212_v29, %v1755_v33  ;;  %v2125_v51 = vmul.f32 %v6213_v43, %v1755_v33  ;;  %v2189_v59 = vmul.f32 %v6214_v13, %v1755_v33  ;;  %v2253_v6 = vmul.f32 %v6215_v48, %v1755_v33  ;;  %v6219_v8 = vld [vmem:[#allocation61_spill] sm:$0xff]  ;;  %v6223_v43 = vld [vmem:[#allocation111_spill] sm:$0xff] }
 0x2e1   :  { %v1812_v18 = vadd.f32 %v1803_v20, %v1764_v46  ;;  %v1877_v38 = vadd.f32 %v1869_v19, %v1803_v20  ;;  %v1941_v15 = vadd.f32 %v1933_v49, %v1803_v20  ;;  %v2005_v40 = vadd.f32 %v1997_v50, %v1803_v20  ;;  %v6220_v53 = vld [vmem:[#allocation77_spill] sm:$0xff] }
 0x2e2   :  { %v2069_v45 = vadd.f32 %v2061_v47, %v1803_v20  ;;  %v2133_v39 = vadd.f32 %v2125_v51, %v1803_v20  ;;  %v2197_v54 = vadd.f32 %v2189_v59, %v1803_v20  ;;  %v2261_v31 = vadd.f32 %v2253_v6, %v1803_v20  ;;  %v6222_v29 = vld [vmem:[#allocation133_spill] sm:$0xff] }
 0x2e3   :  { %v1820_v26 = vmax.f32 %v1812_v18, 0.0  ;;  %v1885_v32 = vmax.f32 %v1877_v38, 0.0  ;;  %v1949_v56 = vmax.f32 %v1941_v15, 0.0  ;;  %v2013_v52 = vmax.f32 %v2005_v40, 0.0 }
 0x2e4   :  { %v2077_v61 = vmax.f32 %v2069_v45, 0.0  ;;  %v2141_v60 = vmax.f32 %v2133_v39, 0.0  ;;  %v2205_v42 = vmax.f32 %v2197_v54, 0.0  ;;  %v2269_v36 = vmax.f32 %v2261_v31, 0.0 }
 0x2e5   :  { %v3090_v14 = vpack.c.bf16 %v1820_v26, %v1820_v26  ;;  %v3098_v57 = vpack.c.bf16 %v1885_v32, %v1885_v32  ;;  %v3106_v21 = vpack.c.bf16 %v1949_v56, %v1949_v56  ;;  %v3114_v55 = vpack.c.bf16 %v2013_v52, %v2013_v52 }
 0x2e6   :  { %v3122_v23 = vpack.c.bf16 %v2077_v61, %v2077_v61  ;;  %v3130_v9 = vpack.c.bf16 %v2141_v60, %v2141_v60  ;;  %v3138_v3 = vpack.c.bf16 %v2205_v42, %v2205_v42  ;;  %v3146_v2 = vpack.c.bf16 %v2269_v36, %v2269_v36  ;;  %v5391_v61 = vpop.permute.xlu1 %1744 }
 0x2e7   :  { %1861 = vst.msk [vmem:[%s5717_s4 + $0x1c] sm:$0xf] %vm1853_vm2, %v3090_v14  ;;  %1925 = vst.msk [vmem:[%s5717_s4 + $0x3c] sm:$0xf] %vm1853_vm2, %v3098_v57  ;;  %v2317_v34 = vmul.f32 %v6216_v58, %v1755_v33  ;;  %v2381_v12 = vmul.f32 %v6217_v1, %v1755_v33  ;;  %v2445_v46 = vmul.f32 %v6218_v37, %v1755_v33 }
 0x2e8   :  { %1989 = vst.msk [vmem:[%s5717_s4 + $0x5c] sm:$0xf] %vm1853_vm2, %v3106_v21  ;;  %2053 = vst.msk [vmem:[%s5717_s4 + $0x7c] sm:$0xf] %vm1853_vm2, %v3114_v55  ;;  %v2509_v19 = vmul.f32 %v6219_v8, %v1755_v33  ;;  %v2573_v49 = vmul.f32 %v6220_v53, %v1755_v33  ;;  %v2637_v50 = vmul.f32 %v6221_v62, %v1755_v33 }
 0x2e9   :  { %2117 = vst.msk [vmem:[%s5717_s4 + $0x9c] sm:$0xf] %vm1853_vm2, %v3122_v23  ;;  %2181 = vst.msk [vmem:[%s5717_s4 + $0xbc] sm:$0xf] %vm1853_vm2, %v3130_v9  ;;  %v2701_v47 = vmul.f32 %v6222_v29, %v1755_v33  ;;  %v2765_v51 = vmul.f32 %v6223_v43, %v1755_v33  ;;  %v2325_v13 = vadd.f32 %v2317_v34, %v1803_v20  ;;  %v6225_v9 = vld [vmem:[#allocation28_spill] sm:$0xff]  ;;  %v6227_v34 = vld [vmem:[#allocation59_spill] sm:$0xff] }
 0x2ea   :  { %2245 = vst.msk [vmem:[%s5717_s4 + $0xdc] sm:$0xf] %vm1853_vm2, %v3138_v3  ;;  %2309 = vst.msk [vmem:[%s5717_s4 + $0xfc] sm:$0xf] %vm1853_vm2, %v3146_v2  ;;  %v2389_v59 = vadd.f32 %v2381_v12, %v1803_v20  ;;  %v2453_v48 = vadd.f32 %v2445_v46, %v1803_v20  ;;  %v2517_v6 = vadd.f32 %v2509_v19, %v1803_v20  ;;  %v6226_v2 = vld [vmem:[#allocation43_spill] sm:$0xff]  ;;  %v6229_v46 = vld [vmem:[#allocation89_spill] sm:$0xff] }
 0x2eb   :  { %v2581_v18 = vadd.f32 %v2573_v49, %v1803_v20  ;;  %v2645_v38 = vadd.f32 %v2637_v50, %v1803_v20  ;;  %v2709_v15 = vadd.f32 %v2701_v47, %v1803_v20  ;;  %v2773_v40 = vadd.f32 %v2765_v51, %v1803_v20  ;;  %v6224_v20 = vld [vmem:[#allocation13_spill] sm:$0xff]  ;;  %v6228_v12 = vld [vmem:[#allocation75_spill] sm:$0xff]  ;;  %v6230_v19 = vld [vmem:[#allocation130_spill] sm:$0xff] }
 0x2ec   :  { %v2333_v45 = vmax.f32 %v2325_v13, 0.0  ;;  %v2397_v39 = vmax.f32 %v2389_v59, 0.0  ;;  %v2461_v54 = vmax.f32 %v2453_v48, 0.0  ;;  %v2525_v31 = vmax.f32 %v2517_v6, 0.0  ;;  %v6231_v49 = vld [vmem:[#allocation102_spill] sm:$0xff] }
 0x2ed   :  { %v2589_v26 = vmax.f32 %v2581_v18, 0.0  ;;  %v2653_v32 = vmax.f32 %v2645_v38, 0.0  ;;  %v2717_v56 = vmax.f32 %v2709_v15, 0.0  ;;  %v2781_v52 = vmax.f32 %v2773_v40, 0.0 }
 0x2ee   :  { %v3154_v60 = vpack.c.bf16 %v2333_v45, %v2333_v45  ;;  %v3162_v33 = vpack.c.bf16 %v2397_v39, %v2397_v39  ;;  %v3170_v42 = vpack.c.bf16 %v2461_v54, %v2461_v54  ;;  %v3178_v36 = vpack.c.bf16 %v2525_v31, %v2525_v31 }
 0x2ef   :  { %v3186_v14 = vpack.c.bf16 %v2589_v26, %v2589_v26  ;;  %v3194_v57 = vpack.c.bf16 %v2653_v32, %v2653_v32  ;;  %v3202_v21 = vpack.c.bf16 %v2717_v56, %v2717_v56  ;;  %v3210_v55 = vpack.c.bf16 %v2781_v52, %v2781_v52 }
 0x2f0   :  { %2373 = vst.msk [vmem:[%s5717_s4 + $0x11c] sm:$0xf] %vm1853_vm2, %v3154_v60  ;;  %2437 = vst.msk [vmem:[%s5717_s4 + $0x13c] sm:$0xf] %vm1853_vm2, %v3162_v33  ;;  %v1762_v23 = vmul.f32 %v5391_v61, %v6224_v20  ;;  %v1867_v3 = vmul.f32 %v5391_v61, %v6225_v9  ;;  %v1931_v58 = vmul.f32 %v5391_v61, %v6226_v2 }
 0x2f1   :  { %2501 = vst.msk [vmem:[%s5717_s4 + $0x15c] sm:$0xf] %vm1853_vm2, %v3170_v42  ;;  %2565 = vst.msk [vmem:[%s5717_s4 + $0x17c] sm:$0xf] %vm1853_vm2, %v3178_v36  ;;  %v1995_v1 = vmul.f32 %v5391_v61, %v6227_v34  ;;  %v2059_v37 = vmul.f32 %v5391_v61, %v6228_v12  ;;  %v2123_v8 = vmul.f32 %v5391_v61, %v6229_v46  ;;  %v6232_v36 = vld [vmem:[#allocation16_spill] sm:$0xff] }
 0x2f2   :  { %2629 = vst.msk [vmem:[%s5717_s4 + $0x19c] sm:$0xf] %vm1853_vm2, %v3186_v14  ;;  %2693 = vst.msk [vmem:[%s5717_s4 + $0x1bc] sm:$0xf] %vm1853_vm2, %v3194_v57  ;;  %v2187_v53 = vmul.f32 %v5391_v61, %v6230_v19  ;;  %v2251_v62 = vmul.f32 %v5391_v61, %v6231_v49  ;;  %v1810_v50 = vadd.f32 %v5261_v16, %v1762_v23  ;;  %v6233_v57 = vld [vmem:[#allocation31_spill] sm:$0xff]  ;;  %v6235_v23 = vld [vmem:[#allocation62_spill] sm:$0xff] }
 0x2f3   :  { %2757 = vst.msk [vmem:[%s5717_s4 + $0x1dc] sm:$0xf] %vm1853_vm2, %v3202_v21  ;;  %2821 = vst.msk [vmem:[%s5717_s4 + $0x1fc] sm:$0xf] %vm1853_vm2, %v3210_v55  ;;  %v1875_v29 = vadd.f32 %v1867_v3, %v5261_v16  ;;  %v1939_v47 = vadd.f32 %v1931_v58, %v5261_v16  ;;  %v2003_v43 = vadd.f32 %v1995_v1, %v5261_v16  ;;  %v6234_v55 = vld [vmem:[#allocation46_spill] sm:$0xff]  ;;  %v6237_v58 = vld [vmem:[#allocation92_spill] sm:$0xff] }
 0x2f4   :  { %v2067_v51 = vadd.f32 %v2059_v37, %v5261_v16  ;;  %v2131_v13 = vadd.f32 %v2123_v8, %v5261_v16  ;;  %v2195_v59 = vadd.f32 %v2187_v53, %v5261_v16  ;;  %v2259_v48 = vadd.f32 %v2251_v62, %v5261_v16  ;;  %v6236_v3 = vld [vmem:[#allocation78_spill] sm:$0xff]  ;;  %v6238_v1 = vld [vmem:[#allocation137_spill] sm:$0xff]  ;;  %v6239_v37 = vld [vmem:[#allocation155_spill] sm:$0xff] }
 0x2f5   :  { %v1818_v6 = vmax.f32 %v1810_v50, 0.0  ;;  %v1883_v18 = vmax.f32 %v1875_v29, 0.0  ;;  %v1947_v38 = vmax.f32 %v1939_v47, 0.0  ;;  %v2011_v15 = vmax.f32 %v2003_v43, 0.0 }
 0x2f6   :  { %v2075_v40 = vmax.f32 %v2067_v51, 0.0  ;;  %v2139_v45 = vmax.f32 %v2131_v13, 0.0  ;;  %v2203_v39 = vmax.f32 %v2195_v59, 0.0  ;;  %v2267_v54 = vmax.f32 %v2259_v48, 0.0 }
 0x2f7   :  { %v3088_v31 = vpack.c.bf16 %v1818_v6, %v1818_v6  ;;  %v3096_v26 = vpack.c.bf16 %v1883_v18, %v1883_v18  ;;  %v3104_v32 = vpack.c.bf16 %v1947_v38, %v1947_v38  ;;  %v3112_v56 = vpack.c.bf16 %v2011_v15, %v2011_v15  ;;  %v1788_v38 = vpop.permute.xlu1 %1787 }
 0x2f8   :  { %v3120_v52 = vpack.c.bf16 %v2075_v40, %v2075_v40  ;;  %v3128_v60 = vpack.c.bf16 %v2139_v45, %v2139_v45  ;;  %v3136_v33 = vpack.c.bf16 %v2203_v39, %v2203_v39  ;;  %v3144_v42 = vpack.c.bf16 %v2267_v54, %v2267_v54 }
 0x2f9   :  { %1859 = vst.msk [vmem:[%s5717_s4 + $0x14] sm:$0xf] %vm1853_vm2, %v3088_v31  ;;  %1923 = vst.msk [vmem:[%s5717_s4 + $0x34] sm:$0xf] %vm1853_vm2, %v3096_v26  ;;  %v2315_v14 = vmul.f32 %v5391_v61, %v6232_v36  ;;  %v2379_v21 = vmul.f32 %v5391_v61, %v6233_v57  ;;  %v2443_v20 = vmul.f32 %v5391_v61, %v6234_v55 }
 0x2fa   :  { %1987 = vst.msk [vmem:[%s5717_s4 + $0x54] sm:$0xf] %vm1853_vm2, %v3104_v32  ;;  %2051 = vst.msk [vmem:[%s5717_s4 + $0x74] sm:$0xf] %vm1853_vm2, %v3112_v56  ;;  %v2507_v9 = vmul.f32 %v5391_v61, %v6235_v23  ;;  %v2571_v2 = vmul.f32 %v5391_v61, %v6236_v3  ;;  %v2635_v34 = vmul.f32 %v5391_v61, %v6237_v58 }
 0x2fb   :  { %2115 = vst.msk [vmem:[%s5717_s4 + $0x94] sm:$0xf] %vm1853_vm2, %v3120_v52  ;;  %2179 = vst.msk [vmem:[%s5717_s4 + $0xb4] sm:$0xf] %vm1853_vm2, %v3128_v60  ;;  %v2699_v12 = vmul.f32 %v5391_v61, %v6238_v1  ;;  %v2763_v46 = vmul.f32 %v5391_v61, %v6239_v37  ;;  %v2323_v8 = vadd.f32 %v2315_v14, %v5261_v16 }
 0x2fc   :  { %2243 = vst.msk [vmem:[%s5717_s4 + $0xd4] sm:$0xf] %vm1853_vm2, %v3136_v33  ;;  %2307 = vst.msk [vmem:[%s5717_s4 + $0xf4] sm:$0xf] %vm1853_vm2, %v3144_v42  ;;  %v2387_v19 = vadd.f32 %v2379_v21, %v5261_v16  ;;  %v2451_v53 = vadd.f32 %v2443_v20, %v5261_v16  ;;  %v2515_v49 = vadd.f32 %v2507_v9, %v5261_v16 }
 0x2fd   :  { %v2579_v62 = vadd.f32 %v2571_v2, %v5261_v16  ;;  %v2643_v50 = vadd.f32 %v2635_v34, %v5261_v16  ;;  %v2707_v29 = vadd.f32 %v2699_v12, %v5261_v16  ;;  %v2771_v47 = vadd.f32 %v2763_v46, %v5261_v16 }
 0x2fe   :  { %v2331_v43 = vmax.f32 %v2323_v8, 0.0  ;;  %v2395_v51 = vmax.f32 %v2387_v19, 0.0  ;;  %v2459_v13 = vmax.f32 %v2451_v53, 0.0  ;;  %v2523_v61 = vmax.f32 %v2515_v49, 0.0 }
 0x2ff   :  { %v2587_v59 = vmax.f32 %v2579_v62, 0.0  ;;  %v2651_v48 = vmax.f32 %v2643_v50, 0.0  ;;  %v2715_v6 = vmax.f32 %v2707_v29, 0.0  ;;  %v2779_v18 = vmax.f32 %v2771_v47, 0.0 }
 0x300   :  { %v3152_v15 = vpack.c.bf16 %v2331_v43, %v2331_v43  ;;  %v3160_v40 = vpack.c.bf16 %v2395_v51, %v2395_v51  ;;  %v3168_v45 = vpack.c.bf16 %v2459_v13, %v2459_v13  ;;  %v3176_v39 = vpack.c.bf16 %v2523_v61, %v2523_v61 }
 0x301   :  { %v3184_v54 = vpack.c.bf16 %v2587_v59, %v2587_v59  ;;  %v3192_v31 = vpack.c.bf16 %v2651_v48, %v2651_v48  ;;  %v3200_v26 = vpack.c.bf16 %v2715_v6, %v2715_v6  ;;  %v3208_v32 = vpack.c.bf16 %v2779_v18, %v2779_v18  ;;  %v6241_v59 = vld [vmem:[#allocation24_spill] sm:$0xff]  ;;  %v6242_v6 = vld [vmem:[#allocation39_spill] sm:$0xff] }
 0x302   :  { %2371 = vst.msk [vmem:[%s5717_s4 + $0x114] sm:$0xf] %vm1853_vm2, %v3152_v15  ;;  %2435 = vst.msk [vmem:[%s5717_s4 + $0x134] sm:$0xf] %vm1853_vm2, %v3160_v40  ;;  %v1809_v16 = vadd.f32 %v1788_v38, %v5280_v10  ;;  %v1874_v56 = vadd.f32 %v5283_v22, %v1788_v38  ;;  %v1938_v52 = vadd.f32 %v5286_v28, %v1788_v38  ;;  %v6244_v40 = vld [vmem:[#allocation71_spill] sm:$0xff] }
 0x303   :  { %2499 = vst.msk [vmem:[%s5717_s4 + $0x154] sm:$0xf] %vm1853_vm2, %v3168_v45  ;;  %2563 = vst.msk [vmem:[%s5717_s4 + $0x174] sm:$0xf] %vm1853_vm2, %v3176_v39  ;;  %v2002_v60 = vadd.f32 %v5289_v44, %v1788_v38  ;;  %v2066_v10 = vadd.f32 %v5308_v30, %v1788_v38  ;;  %v2130_v22 = vadd.f32 %v5311_v11, %v1788_v38  ;;  %v6245_v39 = vld [vmem:[#allocation85_spill] sm:$0xff] }
 0x304   :  { %2627 = vst.msk [vmem:[%s5717_s4 + $0x194] sm:$0xf] %vm1853_vm2, %v3184_v54  ;;  %2691 = vst.msk [vmem:[%s5717_s4 + $0x1b4] sm:$0xf] %vm1853_vm2, %v3192_v31  ;;  %v2194_v28 = vadd.f32 %v5314_v35, %v1788_v38  ;;  %v2258_v44 = vadd.f32 %v5317_v7, %v1788_v38  ;;  %v1817_v33 = vmax.f32 %v1809_v16, 0.0  ;;  %v1882_v42 = vmax.f32 %v1874_v56, 0.0  ;;  %v1798_v56 = vpop.permute.xlu1 %1797 }
 0x305   :  { %2755 = vst.msk [vmem:[%s5717_s4 + $0x1d4] sm:$0xf] %vm1853_vm2, %v3200_v26  ;;  %2819 = vst.msk [vmem:[%s5717_s4 + $0x1f4] sm:$0xf] %vm1853_vm2, %v3208_v32  ;;  %v1946_v36 = vmax.f32 %v1938_v52, 0.0  ;;  %v2010_v14 = vmax.f32 %v2002_v60, 0.0  ;;  %v2322_v35 = vadd.f32 %v5320_v24, %v1788_v38  ;;  %v2386_v7 = vadd.f32 %v5323_v41, %v1788_v38 }
 0x306   :  { %v2074_v57 = vmax.f32 %v2066_v10, 0.0  ;;  %v2138_v21 = vmax.f32 %v2130_v22, 0.0  ;;  %v2202_v55 = vmax.f32 %v2194_v28, 0.0  ;;  %v2266_v20 = vmax.f32 %v2258_v44, 0.0  ;;  %v6246_v31 = vld [vmem:[#allocation121_spill] sm:$0xff]  ;;  %v6248_v52 = vld [vmem:[#allocation12_spill] sm:$0xff] }
 0x307   :  { %v3087_v23 = vpack.c.bf16 %v1817_v33, %v1817_v33  ;;  %v3095_v9 = vpack.c.bf16 %v1882_v42, %v1882_v42  ;;  %v3103_v3 = vpack.c.bf16 %v1946_v36, %v1946_v36  ;;  %v3111_v2 = vpack.c.bf16 %v2010_v14, %v2010_v14  ;;  %v6247_v32 = vld [vmem:[#allocation93_spill] sm:$0xff]  ;;  %v6249_v10 = vld [vmem:[#allocation27_spill] sm:$0xff]  ;;  %v6250_v28 = vld [vmem:[#allocation42_spill] sm:$0xff] }
 0x308   :  { %v3119_v58 = vpack.c.bf16 %v2074_v57, %v2074_v57  ;;  %v3127_v30 = vpack.c.bf16 %v2138_v21, %v2138_v21  ;;  %v3135_v34 = vpack.c.bf16 %v2202_v55, %v2202_v55  ;;  %v3143_v11 = vpack.c.bf16 %v2266_v20, %v2266_v20  ;;  %v6251_v33 = vld [vmem:[#allocation58_spill] sm:$0xff]  ;;  %v6253_v57 = vld [vmem:[#allocation88_spill] sm:$0xff] }
 0x309   :  { %1858 = vst.msk [vmem:[%s5717_s4 + $0x10] sm:$0xf] %vm1853_vm2, %v3087_v23  ;;  %1922 = vst.msk [vmem:[%s5717_s4 + $0x30] sm:$0xf] %vm1853_vm2, %v3095_v9  ;;  %v2450_v1 = vadd.f32 %v5326_v25, %v1788_v38  ;;  %v2514_v12 = vadd.f32 %v5329_v27, %v1788_v38  ;;  %v2578_v24 = vadd.f32 %v5332_v0, %v1788_v38  ;;  %v2330_v37 = vmax.f32 %v2322_v35, 0.0  ;;  %v6252_v36 = vld [vmem:[#allocation74_spill] sm:$0xff] }
 0x30a   :  { %1986 = vst.msk [vmem:[%s5717_s4 + $0x50] sm:$0xf] %vm1853_vm2, %v3103_v3  ;;  %2050 = vst.msk [vmem:[%s5717_s4 + $0x70] sm:$0xf] %vm1853_vm2, %v3111_v2  ;;  %v2642_v41 = vadd.f32 %v5335_v5, %v1788_v38  ;;  %v2706_v25 = vadd.f32 %v5338_v17, %v1788_v38  ;;  %v2770_v27 = vadd.f32 %v5341_v4, %v1788_v38  ;;  %v2394_v46 = vmax.f32 %v2386_v7, 0.0  ;;  %v6240_v17 = vld [vmem:[#allocation9_spill] sm:$0xff] }
 0x30b   :  { %2114 = vst.msk [vmem:[%s5717_s4 + $0x90] sm:$0xf] %vm1853_vm2, %v3119_v58  ;;  %2178 = vst.msk [vmem:[%s5717_s4 + $0xb0] sm:$0xf] %vm1853_vm2, %v3127_v30  ;;  %v2458_v8 = vmax.f32 %v2450_v1, 0.0  ;;  %v2522_v19 = vmax.f32 %v2514_v12, 0.0  ;;  %v3151_v29 = vpack.c.bf16 %v2330_v37, %v2330_v37  ;;  %v1763_v4 = vmul.f32 %v6240_v17, %v5219_v63 }
 0x30c   :  { %2242 = vst.msk [vmem:[%s5717_s4 + $0xd0] sm:$0xf] %vm1853_vm2, %v3135_v34  ;;  %2306 = vst.msk [vmem:[%s5717_s4 + $0xf0] sm:$0xf] %vm1853_vm2, %v3143_v11  ;;  %v2586_v53 = vmax.f32 %v2578_v24, 0.0  ;;  %v2650_v49 = vmax.f32 %v2642_v41, 0.0  ;;  %v3159_v47 = vpack.c.bf16 %v2394_v46, %v2394_v46  ;;  %v1868_v48 = vmul.f32 %v6241_v59, %v5219_v63 }
 0x30d   :  { %v2714_v62 = vmax.f32 %v2706_v25, 0.0  ;;  %v2778_v50 = vmax.f32 %v2770_v27, 0.0  ;;  %v3167_v43 = vpack.c.bf16 %v2458_v8, %v2458_v8  ;;  %v3175_v51 = vpack.c.bf16 %v2522_v19, %v2522_v19  ;;  %2370 = vst.msk [vmem:[%s5717_s4 + $0x110] sm:$0xf] %vm1853_vm2, %v3151_v29  ;;  %v6243_v38 = vld [vmem:[#allocation55_spill] sm:$0xff]  ;;  %v6254_v55 = vld [vmem:[#allocation128_spill] sm:$0xff] }
 0x30e   :  { %v3183_v13 = vpack.c.bf16 %v2586_v53, %v2586_v53  ;;  %v3191_v0 = vpack.c.bf16 %v2650_v49, %v2650_v49  ;;  %2434 = vst.msk [vmem:[%s5717_s4 + $0x130] sm:$0xf] %vm1853_vm2, %v3159_v47  ;;  %v1932_v18 = vmul.f32 %v6242_v6, %v5219_v63  ;;  %v1996_v15 = vmul.f32 %v6243_v38, %v5219_v63  ;;  %v6255_v23 = vld [vmem:[#allocation101_spill] sm:$0xff] }
 0x30f   :  { %v3199_v61 = vpack.c.bf16 %v2714_v62, %v2714_v62  ;;  %v3207_v5 = vpack.c.bf16 %v2778_v50, %v2778_v50  ;;  %2498 = vst.msk [vmem:[%s5717_s4 + $0x150] sm:$0xf] %vm1853_vm2, %v3167_v43  ;;  %2562 = vst.msk [vmem:[%s5717_s4 + $0x170] sm:$0xf] %vm1853_vm2, %v3175_v51  ;;  %v2060_v45 = vmul.f32 %v6244_v40, %v5219_v63 }
 0x310   :  { %2626 = vst.msk [vmem:[%s5717_s4 + $0x190] sm:$0xf] %vm1853_vm2, %v3183_v13  ;;  %2690 = vst.msk [vmem:[%s5717_s4 + $0x1b0] sm:$0xf] %vm1853_vm2, %v3191_v0  ;;  %v2124_v54 = vmul.f32 %v6245_v39, %v5219_v63  ;;  %v2188_v26 = vmul.f32 %v6246_v31, %v5219_v63  ;;  %v2252_v16 = vmul.f32 %v6247_v32, %v5219_v63 }
 0x311   :  { %2754 = vst.msk [vmem:[%s5717_s4 + $0x1d0] sm:$0xf] %vm1853_vm2, %v3199_v61  ;;  %2818 = vst.msk [vmem:[%s5717_s4 + $0x1f0] sm:$0xf] %vm1853_vm2, %v3207_v5  ;;  %v2316_v60 = vmul.f32 %v6248_v52, %v5219_v63  ;;  %v2380_v22 = vmul.f32 %v6249_v10, %v5219_v63  ;;  %v2444_v44 = vmul.f32 %v6250_v28, %v5219_v63 }
 0x312   :  { %v2508_v42 = vmul.f32 %v6251_v33, %v5219_v63  ;;  %v2572_v14 = vmul.f32 %v6252_v36, %v5219_v63  ;;  %v2636_v21 = vmul.f32 %v6253_v57, %v5219_v63  ;;  %v2700_v20 = vmul.f32 %v6254_v55, %v5219_v63 }
 0x313   :  { %v2764_v9 = vmul.f32 %v6255_v23, %v5219_v63  ;;  %v1811_v3 = vadd.f32 %v1798_v56, %v1763_v4  ;;  %v1876_v2 = vadd.f32 %v1868_v48, %v1798_v56  ;;  %v1940_v58 = vadd.f32 %v1932_v18, %v1798_v56 }
 0x314   :  { %v2004_v30 = vadd.f32 %v1996_v15, %v1798_v56  ;;  %v2068_v34 = vadd.f32 %v2060_v45, %v1798_v56  ;;  %v2132_v11 = vadd.f32 %v2124_v54, %v1798_v56  ;;  %v2196_v35 = vadd.f32 %v2188_v26, %v1798_v56 }
 0x315   :  { %v2260_v7 = vadd.f32 %v2252_v16, %v1798_v56  ;;  %v1819_v1 = vmax.f32 %v1811_v3, 0.0  ;;  %v1884_v12 = vmax.f32 %v1876_v2, 0.0  ;;  %v1948_v24 = vmax.f32 %v1940_v58, 0.0 }
 0x316   :  { %v2012_v41 = vmax.f32 %v2004_v30, 0.0  ;;  %v2076_v25 = vmax.f32 %v2068_v34, 0.0  ;;  %v2140_v27 = vmax.f32 %v2132_v11, 0.0  ;;  %v2204_v37 = vmax.f32 %v2196_v35, 0.0 }
 0x317   :  { %v2268_v46 = vmax.f32 %v2260_v7, 0.0  ;;  %v3089_v8 = vpack.c.bf16 %v1819_v1, %v1819_v1  ;;  %v3097_v19 = vpack.c.bf16 %v1884_v12, %v1884_v12  ;;  %v3105_v53 = vpack.c.bf16 %v1948_v24, %v1948_v24 }
 0x318   :  { %v3113_v63 = vpack.c.bf16 %v2012_v41, %v2012_v41  ;;  %v3121_v49 = vpack.c.bf16 %v2076_v25, %v2076_v25  ;;  %v3129_v62 = vpack.c.bf16 %v2140_v27, %v2140_v27  ;;  %v3137_v50 = vpack.c.bf16 %v2204_v37, %v2204_v37 }
 0x319   :  { %v3145_v29 = vpack.c.bf16 %v2268_v46, %v2268_v46  ;;  %1860 = vst.msk [vmem:[%s5717_s4 + $0x18] sm:$0xf] %vm1853_vm2, %v3089_v8  ;;  %1924 = vst.msk [vmem:[%s5717_s4 + $0x38] sm:$0xf] %vm1853_vm2, %v3097_v19  ;;  %v2324_v47 = vadd.f32 %v2316_v60, %v1798_v56  ;;  %v2388_v43 = vadd.f32 %v2380_v22, %v1798_v56 }
 0x31a   :  { %1988 = vst.msk [vmem:[%s5717_s4 + $0x58] sm:$0xf] %vm1853_vm2, %v3105_v53  ;;  %2052 = vst.msk [vmem:[%s5717_s4 + $0x78] sm:$0xf] %vm1853_vm2, %v3113_v63  ;;  %v2452_v51 = vadd.f32 %v2444_v44, %v1798_v56  ;;  %v2516_v13 = vadd.f32 %v2508_v42, %v1798_v56  ;;  %v2580_v0 = vadd.f32 %v2572_v14, %v1798_v56 }
 0x31b   :  { %2116 = vst.msk [vmem:[%s5717_s4 + $0x98] sm:$0xf] %vm1853_vm2, %v3121_v49  ;;  %2180 = vst.msk [vmem:[%s5717_s4 + $0xb8] sm:$0xf] %vm1853_vm2, %v3129_v62  ;;  %v2644_v61 = vadd.f32 %v2636_v21, %v1798_v56  ;;  %v2708_v5 = vadd.f32 %v2700_v20, %v1798_v56  ;;  %v2772_v17 = vadd.f32 %v2764_v9, %v1798_v56  ;;  %v2332_v4 = vmax.f32 %v2324_v47, 0.0 }
 0x31c   :  { %2244 = vst.msk [vmem:[%s5717_s4 + $0xd8] sm:$0xf] %vm1853_vm2, %v3137_v50  ;;  %2308 = vst.msk [vmem:[%s5717_s4 + $0xf8] sm:$0xf] %vm1853_vm2, %v3145_v29  ;;  %v2396_v59 = vmax.f32 %v2388_v43, 0.0  ;;  %v2460_v48 = vmax.f32 %v2452_v51, 0.0 }
 0x31d   :  { %v2524_v6 = vmax.f32 %v2516_v13, 0.0  ;;  %v2588_v18 = vmax.f32 %v2580_v0, 0.0  ;;  %v2652_v38 = vmax.f32 %v2644_v61, 0.0  ;;  %v2716_v15 = vmax.f32 %v2708_v5, 0.0 }
 0x31e   :  { %v2780_v40 = vmax.f32 %v2772_v17, 0.0  ;;  %v3153_v45 = vpack.c.bf16 %v2332_v4, %v2332_v4  ;;  %v3161_v39 = vpack.c.bf16 %v2396_v59, %v2396_v59  ;;  %v3169_v54 = vpack.c.bf16 %v2460_v48, %v2460_v48 }
 0x31f   :  { %v3177_v31 = vpack.c.bf16 %v2524_v6, %v2524_v6  ;;  %v3185_v26 = vpack.c.bf16 %v2588_v18, %v2588_v18  ;;  %v3193_v32 = vpack.c.bf16 %v2652_v38, %v2652_v38  ;;  %v3201_v16 = vpack.c.bf16 %v2716_v15, %v2716_v15 }
 0x320   :  { %v3209_v52 = vpack.c.bf16 %v2780_v40, %v2780_v40  ;;  %2372 = vst.msk [vmem:[%s5717_s4 + $0x118] sm:$0xf] %vm1853_vm2, %v3153_v45  ;;  %2436 = vst.msk [vmem:[%s5717_s4 + $0x138] sm:$0xf] %vm1853_vm2, %v3161_v39 }
 0x321   :  { %2500 = vst.msk [vmem:[%s5717_s4 + $0x158] sm:$0xf] %vm1853_vm2, %v3169_v54  ;;  %2564 = vst.msk [vmem:[%s5717_s4 + $0x178] sm:$0xf] %vm1853_vm2, %v3177_v31 }
 0x322   :  { %2628 = vst.msk [vmem:[%s5717_s4 + $0x198] sm:$0xf] %vm1853_vm2, %v3185_v26  ;;  %2692 = vst.msk [vmem:[%s5717_s4 + $0x1b8] sm:$0xf] %vm1853_vm2, %v3193_v32 }
 0x323   :  { %2756 = vst.msk [vmem:[%s5717_s4 + $0x1d8] sm:$0xf] %vm1853_vm2, %v3201_v16  ;;  %2820 = vst.msk [vmem:[%s5717_s4 + $0x1f8] sm:$0xf] %vm1853_vm2, %v3209_v52 }

// kernel: generator_forward.7
= control target key start
LH: loop header
LB: loop body
LE: loop exit
PB: predicated region body
PF: predicated region fallthrough
CT: control target
= control target key end

     0   :  { %v909_v0 = vmov 0.0   ;;  %vm910_vm0 = vmmov 0   ;;  %v911_v61 = vmov 0   ;;  %s1169_s1 = inlined_call_operand.vmem [shape: bf16[4,128,128], index: 1, kind: input, shape index: {}]   ;;  %s1170_s0 = inlined_call_operand.vmem [shape: bf16[4,16,128], index: 0, kind: input, shape index: {}]   ;;  %s1171_s2 = inlined_call_operand.vmem [shape: f32[16,1], index: 2, kind: input, shape index: {}]   ;;  %s1172_s3 = inlined_call_operand.vmem [shape: f32[16,1], index: 3, kind: input, shape index: {}]   ;;  %s1173_s4 = inlined_call_operand.vmem [shape: bf16[16,512], index: 4, kind: output, shape index: {}]  }
   0x1   :  { %784 = vmatprep.subr.bf16.mxu0 %v909_v0  ;;  %804 = vmatprep.subr.bf16.mxu1 %v909_v0  ;;  %v869_v1 = vld [vmem:[%s1169_s1] sm:$0xff]   ;;  %v871_v3 = vld [vmem:[%s1169_s1 + $0x8] sm:$0xff]   ;;  %v873_v5 = vld [vmem:[%s1169_s1 + $0x10] sm:$0xff]  }
   0x2   :  { %v870_v2 = vld [vmem:[%s1169_s1 + $0x40] sm:$0xff]   ;;  %800 = vmatprep.mubr.msk.bf16.mxu0 %vm910_vm0, %v909_v0  ;;  %820 = vmatprep.mubr.msk.bf16.mxu1 %vm910_vm0, %v909_v0  ;;  %v872_v4 = vld [vmem:[%s1169_s1 + $0x48] sm:$0xff]   ;;  %v874_v6 = vld [vmem:[%s1169_s1 + $0x50] sm:$0xff]  }
   0x3   :  { %785 = vmatpush3.bf16.msra.mxu0 %v869_v1  ;;  %805 = vmatpush3.bf16.msra.mxu1 %v870_v2  ;;  %v875_v7 = vld [vmem:[%s1169_s1 + $0x18] sm:$0xff]   ;;  %v877_v9 = vld [vmem:[%s1169_s1 + $0x20] sm:$0xff]   ;;  %v879_v11 = vld [vmem:[%s1169_s1 + $0x28] sm:$0xff]  }
   0x4   :  { %786 = vmatprep.subr.bf16.mxu0 %v909_v0  ;;  %806 = vmatprep.subr.bf16.mxu1 %v909_v0  ;;  %v876_v8 = vld [vmem:[%s1169_s1 + $0x58] sm:$0xff]   ;;  %v878_v10 = vld [vmem:[%s1169_s1 + $0x60] sm:$0xff]   ;;  %v880_v12 = vld [vmem:[%s1169_s1 + $0x68] sm:$0xff]  }
   0x5   :  { %v881_v13 = vld [vmem:[%s1169_s1 + $0x30] sm:$0xff]   ;;  %v883_v15 = vld [vmem:[%s1169_s1 + $0x38] sm:$0xff]   ;;  %v885_v17 = vld [vmem:[%s1170_s0] sm:$0xff]   ;;  %867 = vset.pattern.permute.xlu0 %v911_v61  ;;  %868 = vset.pattern.permute.xlu1 %v911_v61 }
   0x6   :  { %v882_v14 = vld [vmem:[%s1169_s1 + $0x70] sm:$0xff]   ;;  %v884_v16 = vld [vmem:[%s1169_s1 + $0x78] sm:$0xff]   ;;  %v886_v18 = vld [vmem:[%s1170_s0 + $0x8] sm:$0xff]  }
   0x7   :  { %787 = vmatpush3.bf16.msra.mxu0 %v871_v3  ;;  %807 = vmatpush3.bf16.msra.mxu1 %v872_v4  ;;  %v887_v19 = vld [vmem:[%s1169_s1 + $0x80] sm:$0xff]   ;;  %v889_v21 = vld [vmem:[%s1169_s1 + $0x88] sm:$0xff]   ;;  %v891_v23 = vld [vmem:[%s1169_s1 + $0x90] sm:$0xff]  }
   0x8   :  { %788 = vmatprep.subr.bf16.mxu0 %v909_v0  ;;  %808 = vmatprep.subr.bf16.mxu1 %v909_v0  ;;  %v888_v20 = vld [vmem:[%s1169_s1 + $0xc0] sm:$0xff]   ;;  %v890_v22 = vld [vmem:[%s1169_s1 + $0xc8] sm:$0xff]   ;;  %v892_v24 = vld [vmem:[%s1169_s1 + $0xd0] sm:$0xff]  }
   0x9   :  { %v893_v25 = vld [vmem:[%s1169_s1 + $0x98] sm:$0xff]   ;;  %v895_v27 = vld [vmem:[%s1169_s1 + $0xa0] sm:$0xff]   ;;  %v897_v29 = vld [vmem:[%s1169_s1 + $0xa8] sm:$0xff]  }
   0xa   :  { %v894_v26 = vld [vmem:[%s1169_s1 + $0xd8] sm:$0xff]   ;;  %v896_v28 = vld [vmem:[%s1169_s1 + $0xe0] sm:$0xff]   ;;  %v898_v30 = vld [vmem:[%s1169_s1 + $0xe8] sm:$0xff]  }
   0xb   :  { %789 = vmatpush3.bf16.msra.mxu0 %v873_v5  ;;  %809 = vmatpush3.bf16.msra.mxu1 %v874_v6  ;;  %v899_v31 = vld [vmem:[%s1169_s1 + $0xb0] sm:$0xff]   ;;  %v901_v33 = vld [vmem:[%s1169_s1 + $0xb8] sm:$0xff]  }
   0xc   :  { %790 = vmatprep.subr.bf16.mxu0 %v909_v0  ;;  %810 = vmatprep.subr.bf16.mxu1 %v909_v0  ;;  %v900_v32 = vld [vmem:[%s1169_s1 + $0xf0] sm:$0xff]   ;;  %v902_v34 = vld [vmem:[%s1169_s1 + $0xf8] sm:$0xff]  }
   0xd   :  { %v903_v35 = vld [vmem:[%s1170_s0 + $0x10] sm:$0xff]   ;;  %v904_v36 = vld [vmem:[%s1170_s0 + $0x18] sm:$0xff]  }
   0xf   :  { %791 = vmatpush3.bf16.msra.mxu0 %v875_v7  ;;  %811 = vmatpush3.bf16.msra.mxu1 %v876_v8 }
  0x10   :  { %792 = vmatprep.subr.bf16.mxu0 %v909_v0  ;;  %812 = vmatprep.subr.bf16.mxu1 %v909_v0 }
  0x13   :  { %793 = vmatpush3.bf16.msra.mxu0 %v877_v9  ;;  %813 = vmatpush3.bf16.msra.mxu1 %v878_v10 }
  0x14   :  { %794 = vmatprep.subr.bf16.mxu0 %v909_v0  ;;  %814 = vmatprep.subr.bf16.mxu1 %v909_v0 }
  0x17   :  { %795 = vmatpush3.bf16.msra.mxu0 %v879_v11  ;;  %815 = vmatpush3.bf16.msra.mxu1 %v880_v12 }
  0x18   :  { %796 = vmatprep.subr.bf16.mxu0 %v909_v0  ;;  %816 = vmatprep.subr.bf16.mxu1 %v909_v0 }
  0x1b   :  { %797 = vmatpush3.bf16.msra.mxu0 %v881_v13  ;;  %817 = vmatpush3.bf16.msra.mxu1 %v882_v14 }
  0x1c   :  { %798 = vmatprep.subr.bf16.mxu0 %v909_v0  ;;  %818 = vmatprep.subr.bf16.mxu1 %v909_v0 }
  0x1f   :  { %799 = vmatpush3.bf16.msra.mxu0 %v883_v15  ;;  %819 = vmatpush3.bf16.msra.mxu1 %v884_v16 }
  0x20   :  { %824 = vmatprep.subr.bf16.mxu0 %v909_v0  ;;  %844 = vmatprep.subr.bf16.mxu1 %v909_v0 }
  0x22   :  { %801 = vmatmul.mubr.bf16.vlgmr.msra.gmra.mrb[0].mxu0 %v885_v17  ;;  %821 = vmatmul.mubr.bf16.vlgmr.msra.gmra.mrb[0].mxu1 %v886_v18 }
  0x23   :  { %825 = vmatpush3.bf16.msra.mxu0 %v887_v19  ;;  %845 = vmatpush3.bf16.msra.mxu1 %v888_v20 }
  0x24   :  { %826 = vmatprep.subr.bf16.mxu0 %v909_v0  ;;  %846 = vmatprep.subr.bf16.mxu1 %v909_v0 }
  0x25   :  { %840 = vmatprep.mubr.msk.bf16.mxu0 %vm910_vm0, %v909_v0  ;;  %860 = vmatprep.mubr.msk.bf16.mxu1 %vm910_vm0, %v909_v0 }
  0x27   :  { %827 = vmatpush3.bf16.msra.mxu0 %v889_v21  ;;  %847 = vmatpush3.bf16.msra.mxu1 %v890_v22 }
  0x28   :  { %828 = vmatprep.subr.bf16.mxu0 %v909_v0  ;;  %848 = vmatprep.subr.bf16.mxu1 %v909_v0 }
  0x2b   :  { %829 = vmatpush3.bf16.msra.mxu0 %v891_v23  ;;  %849 = vmatpush3.bf16.msra.mxu1 %v892_v24 }
  0x2c   :  { %830 = vmatprep.subr.bf16.mxu0 %v909_v0  ;;  %850 = vmatprep.subr.bf16.mxu1 %v909_v0 }
  0x2f   :  { %831 = vmatpush3.bf16.msra.mxu0 %v893_v25  ;;  %851 = vmatpush3.bf16.msra.mxu1 %v894_v26 }
  0x30   :  { %832 = vmatprep.subr.bf16.mxu0 %v909_v0  ;;  %852 = vmatprep.subr.bf16.mxu1 %v909_v0 }
  0x33   :  { %833 = vmatpush3.bf16.msra.mxu0 %v895_v27  ;;  %853 = vmatpush3.bf16.msra.mxu1 %v896_v28 }
  0x34   :  { %834 = vmatprep.subr.bf16.mxu0 %v909_v0  ;;  %854 = vmatprep.subr.bf16.mxu1 %v909_v0 }
  0x37   :  { %835 = vmatpush3.bf16.msra.mxu0 %v897_v29  ;;  %855 = vmatpush3.bf16.msra.mxu1 %v898_v30 }
  0x38   :  { %836 = vmatprep.subr.bf16.mxu0 %v909_v0  ;;  %856 = vmatprep.subr.bf16.mxu1 %v909_v0 }
  0x3b   :  { %837 = vmatpush3.bf16.msra.mxu0 %v899_v31  ;;  %857 = vmatpush3.bf16.msra.mxu1 %v900_v32 }
  0x3c   :  { %838 = vmatprep.subr.bf16.mxu0 %v909_v0  ;;  %858 = vmatprep.subr.bf16.mxu1 %v909_v0 }
  0x3f   :  { %839 = vmatpush3.bf16.msra.mxu0 %v901_v33  ;;  %859 = vmatpush3.bf16.msra.mxu1 %v902_v34 }
  0x42   :  { %841 = vmatmul.mubr.bf16.vlgmr.msra.gmra.mrb[4].mxu0 %v903_v35  ;;  %861 = vmatmul.mubr.bf16.vlgmr.msra.gmra.mrb[4].mxu1 %v904_v36  ;;  %v540_v36 = vld [vmem:[%s1171_s2] sm:$0xff] }
  0xf5   :  { %v1085_v37 = vpop.f32.mrb[0].mxu0  ;;  %v1087_v38 = vpop.f32.mrb[0].mxu1 }
  0xf6   :  { %476 = vadd.xlane.f32.xlu0 %v1085_v37  ;;  %v802_v39 = vpop.f32.mrb[1].mxu0  ;;  %482 = vadd.xlane.f32.xlu1 %v1087_v38  ;;  %v822_v41 = vpop.f32.mrb[1].mxu1  ;;  %v500_v45 = vmul.f32 %v1085_v37, %v1085_v37  ;;  %v508_v47 = vmul.f32 %v1087_v38, %v1087_v38 }
  0xf7   :  { %v1091_v40 = vpop.f32.mrb[2].mxu0  ;;  %v1093_v43 = vpop.f32.mrb[2].mxu1  ;;  %v541_v41 = vld [vmem:[%s1171_s2 + $0x8] sm:$0xff] }
  0xf8   :  { %v803_v42 = vpop.f32.mrb[3].mxu0  ;;  %v823_v44 = vpop.f32.mrb[3].mxu1  ;;  %v501_v46 = vmul.f32 %v1091_v40, %v1091_v40  ;;  %v509_v48 = vmul.f32 %v1093_v43, %v1093_v43 }
  0xfa   :  { %478 = vadd.xlane.f32.xlu0 %v1091_v40  ;;  %484 = vadd.xlane.f32.xlu1 %v1093_v43 }
  0xfe   :  { %502 = vadd.xlane.f32.xlu0 %v500_v45  ;;  %504 = vadd.xlane.f32.xlu1 %v501_v46 }
 0x102   :  { %510 = vadd.xlane.f32.xlu0 %v508_v47  ;;  %512 = vadd.xlane.f32.xlu1 %v509_v48  ;;  %v548_v47 = vld [vmem:[%s1172_s3] sm:$0xff] }
 0x115   :  { %v1105_v49 = vpop.f32.mrb[4].mxu0  ;;  %v1107_v50 = vpop.f32.mrb[4].mxu1 }
 0x116   :  { %488 = vadd.xlane.f32.xlu0 %v1105_v49  ;;  %v842_v51 = vpop.f32.mrb[5].mxu0  ;;  %v862_v53 = vpop.f32.mrb[5].mxu1  ;;  %v516_v57 = vmul.f32 %v1105_v49, %v1105_v49  ;;  %v524_v59 = vmul.f32 %v1107_v50, %v1107_v50 }
 0x117   :  { %v1110_v52 = vpop.f32.mrb[6].mxu0  ;;  %v1112_v54 = vpop.f32.mrb[6].mxu1  ;;  %v549_v53 = vld [vmem:[%s1172_s3 + $0x8] sm:$0xff] }
 0x118   :  { %490 = vadd.xlane.f32.xlu1 %v1110_v52  ;;  %v843_v55 = vpop.f32.mrb[7].mxu0  ;;  %v863_v56 = vpop.f32.mrb[7].mxu1  ;;  %v517_v58 = vmul.f32 %v1110_v52, %v1110_v52  ;;  %v525_v60 = vmul.f32 %v1112_v54, %v1112_v54 }
 0x11a   :  { %494 = vadd.xlane.f32.xlu0 %v1107_v50 }
 0x11c   :  { %496 = vadd.xlane.f32.xlu1 %v1112_v54 }
 0x11e   :  { %518 = vadd.xlane.f32.xlu0 %v516_v57 }
 0x120   :  { %520 = vadd.xlane.f32.xlu1 %v517_v58 }
 0x122   :  { %526 = vadd.xlane.f32.xlu0 %v524_v59 }
 0x124   :  { %528 = vadd.xlane.f32.xlu1 %v525_v60 }
 0x183   :  { %v477_v62 = vpop.xlane.xlu0 %476  ;;  %v483_v63 = vpop.xlane.xlu1 %482 }
 0x184   :  { %v486_v8 = vadd.f32 %v483_v63, %v477_v62 }
 0x187   :  { %v479_v0 = vpop.xlane.xlu0 %478  ;;  %v485_v1 = vpop.xlane.xlu1 %484 }
 0x188   :  { %v487_v10 = vadd.f32 %v485_v1, %v479_v0 }
 0x18b   :  { %v503_v2 = vpop.xlane.xlu0 %502  ;;  %v505_v3 = vpop.xlane.xlu1 %504 }
 0x18f   :  { %v511_v4 = vpop.xlane.xlu0 %510  ;;  %v513_v5 = vpop.xlane.xlu1 %512 }
 0x190   :  { %v514_v16 = vadd.f32 %v511_v4, %v503_v2  ;;  %v515_v19 = vadd.f32 %v513_v5, %v505_v3 }
 0x1a3   :  { %v489_v6 = vpop.xlane.xlu0 %488 }
 0x1a4   :  { %v492_v11 = vadd.f32 %v489_v6, %v486_v8 }
 0x1a5   :  { %v491_v7 = vpop.xlane.xlu1 %490 }
 0x1a6   :  { %v493_v13 = vadd.f32 %v491_v7, %v487_v10 }
 0x1a7   :  { %v495_v9 = vpop.xlane.xlu0 %494 }
 0x1a8   :  { %v498_v14 = vadd.f32 %v495_v9, %v492_v11 }
 0x1a9   :  { %v497_v12 = vpop.xlane.xlu1 %496 }
 0x1aa   :  { %v499_v17 = vadd.f32 %v497_v12, %v493_v13  ;;  %v532_v20 = vmul.f32 0.001953125, %v498_v14 }
 0x1ab   :  { %v519_v15 = vpop.xlane.xlu0 %518 }
 0x1ac   :  { %v522_v21 = vadd.f32 %v519_v15, %v514_v16  ;;  %v533_v23 = vmul.f32 0.001953125, %v499_v17  ;;  %v536_v27 = vmul.f32 %v532_v20, %v532_v20 }
 0x1ad   :  { %v521_v18 = vpop.xlane.xlu1 %520 }
 0x1ae   :  { %v523_v24 = vadd.f32 %v521_v18, %v515_v19  ;;  %v537_v30 = vmul.f32 %v533_v23, %v533_v23 }
 0x1af   :  { %v527_v22 = vpop.xlane.xlu0 %526 }
 0x1b0   :  { %v530_v25 = vadd.f32 %v527_v22, %v522_v21 }
 0x1b1   :  { %v529_v26 = vpop.xlane.xlu1 %528 }
 0x1b2   :  { %v534_v28 = vmul.f32 0.001953125, %v530_v25  ;;  %v531_v29 = vadd.f32 %v529_v26, %v523_v24 }
 0x1b4   :  { %v538_v31 = vsub.f32 %v534_v28, %v536_v27  ;;  %v535_v32 = vmul.f32 0.001953125, %v531_v29 }
 0x1b6   :  { %v542_v33 = vadd.f32 1e-05, %v538_v31  ;;  %v539_v34 = vsub.f32 %v535_v32, %v537_v30 }
 0x1b8   :  { %905 = vrsqrt.f32 %v542_v33  ;;  %v543_v35 = vadd.f32 1e-05, %v539_v34 }
 0x1ba   :  { %907 = vrsqrt.f32 %v543_v35 }
 0x1c2   :  { %v906_v39 = vpop.eup %905 }
 0x1c3   :  { %v546_v42 = vmul.f32 %v906_v39, %v540_v36 }
 0x1c4   :  { %v908_v44 = vpop.eup %907 }
 0x1c5   :  { %556 = vperm.xlu0 %867, %v546_v42   ;;  %v547_v45 = vmul.f32 %v908_v44, %v541_v41  ;;  %v550_v46 = vmul.f32 %v546_v42, %v532_v20 }
 0x1c7   :  { %561 = vperm.xlu1 %868, %v547_v45   ;;  %v552_v48 = vsub.f32 %v548_v47, %v550_v46  ;;  %v551_v51 = vmul.f32 %v547_v45, %v533_v23 }
 0x1c9   :  { %v553_v55 = vsub.f32 %v549_v53, %v551_v51 }
 0x1cb   :  { %568 = vperm.xlu1 %868, %v552_v48  }
 0x1cf   :  { %573 = vperm.xlu1 %868, %v553_v55  }
 0x244   :  { %v557_v56 = vpop.permute.xlu0 %556 }
 0x245   :  { %v564_v58 = vmul.f32 %v557_v56, %v1085_v37  ;;  %v590_v59 = vmul.f32 %v557_v56, %v1087_v38  ;;  %v606_v60 = vmul.f32 %v557_v56, %v1105_v49  ;;  %v622_v61 = vmul.f32 %v557_v56, %v1107_v50 }
 0x246   :  { %v562_v57 = vpop.permute.xlu1 %561 }
 0x247   :  { %v565_v7 = vmul.f32 %v562_v57, %v1091_v40  ;;  %v591_v8 = vmul.f32 %v562_v57, %v1093_v43  ;;  %v607_v37 = vmul.f32 %v562_v57, %v1110_v52  ;;  %v623_v38 = vmul.f32 %v562_v57, %v1112_v54 }
 0x24a   :  { %v569_v62 = vpop.permute.xlu1 %568 }
 0x24b   :  { %v576_v63 = vadd.f32 %v569_v62, %v564_v58  ;;  %v592_v0 = vadd.f32 %v590_v59, %v569_v62  ;;  %v608_v1 = vadd.f32 %v606_v60, %v569_v62  ;;  %v624_v2 = vadd.f32 %v622_v61, %v569_v62 }
 0x24d   :  { %v578_v3 = vmax.f32 %v576_v63, 0.0  ;;  %v594_v4 = vmax.f32 %v592_v0, 0.0  ;;  %v610_v5 = vmax.f32 %v608_v1, 0.0  ;;  %v626_v6 = vmax.f32 %v624_v2, 0.0 }
 0x24e   :  { %v574_v49 = vpop.permute.xlu1 %573 }
 0x24f   :  { %v740_v9 = vpack.c.bf16 %v578_v3, %v578_v3  ;;  %v742_v50 = vpack.c.bf16 %v594_v4, %v594_v4  ;;  %v744_v10 = vpack.c.bf16 %v610_v5, %v610_v5  ;;  %v746_v11 = vpack.c.bf16 %v626_v6, %v626_v6 }
 0x250   :  { %v577_v12 = vadd.f32 %v574_v49, %v565_v7  ;;  %v593_v13 = vadd.f32 %v591_v8, %v574_v49  ;;  %v609_v14 = vadd.f32 %v607_v37, %v574_v49  ;;  %v625_v15 = vadd.f32 %v623_v38, %v574_v49 }
 0x251   :  { %588 = vst [vmem:[%s1173_s4] sm:$0xf] %v740_v9  ;;  %604 = vst [vmem:[%s1173_s4 + $0x4] sm:$0xf] %v742_v50 }
 0x252   :  { %620 = vst [vmem:[%s1173_s4 + $0x8] sm:$0xf] %v744_v10  ;;  %636 = vst [vmem:[%s1173_s4 + $0xc] sm:$0xf] %v746_v11  ;;  %v579_v40 = vmax.f32 %v577_v12, 0.0  ;;  %v595_v43 = vmax.f32 %v593_v13, 0.0 }
 0x253   :  { %v611_v52 = vmax.f32 %v609_v14, 0.0  ;;  %v627_v54 = vmax.f32 %v625_v15, 0.0 }
 0x254   :  { %v741_v16 = vpack.c.bf16 %v579_v40, %v579_v40  ;;  %v743_v17 = vpack.c.bf16 %v595_v43, %v595_v43 }
 0x255   :  { %v745_v18 = vpack.c.bf16 %v611_v52, %v611_v52  ;;  %v747_v19 = vpack.c.bf16 %v627_v54, %v627_v54 }
 0x256   :  { %589 = vst [vmem:[%s1173_s4 + $0x10] sm:$0xf] %v741_v16  ;;  %605 = vst [vmem:[%s1173_s4 + $0x14] sm:$0xf] %v743_v17 }
 0x257   :  { %621 = vst [vmem:[%s1173_s4 + $0x18] sm:$0xf] %v745_v18  ;;  %637 = vst [vmem:[%s1173_s4 + $0x1c] sm:$0xf] %v747_v19 }

// kernel: generator_forward.8
= control target key start
LH: loop header
LB: loop body
LE: loop exit
PB: predicated region body
PF: predicated region fallthrough
CT: control target
= control target key end

     0   :  { %v1202_v1 = vmov 0   ;;  %vm115_vm0 = vcmask 523264   ;;  %s1564_s1 = inlined_call_operand.vmem [shape: bf16[4,64,512], index: 1, kind: input, shape index: {}]   ;;  %s1565_s0 = inlined_call_operand.vmem [shape: bf16[4,8,64], index: 0, kind: input, shape index: {}]   ;;  %s1566_s2 = inlined_call_operand.vmem [shape: f32[8,1], index: 2, kind: input, shape index: {}]   ;;  %s1567_s3 = inlined_call_operand.vmem [shape: f32[8,1], index: 3, kind: input, shape index: {}]   ;;  %s1568_s4 = inlined_call_operand.vmem [shape: bf16[8,2048], index: 4, kind: output, shape index: {}]  }
   0x1   :  { %v1104_v0 = vld [vmem:[%s1564_s1 + $0x4] ss:$16 sps:$4 sm:$0xff]   ;;  %151 = vmatprep.mubr.bf16.mxu0 %v1202_v1  ;;  %192 = vmatprep.mubr.bf16.mxu1 %v1202_v1  ;;  %v1106_v2 = vld [vmem:[%s1564_s1 + $0xc] ss:$16 sps:$4 sm:$0xff]   ;;  %v1108_v3 = vld [vmem:[%s1564_s1] ss:$16 sps:$4 sm:$0xff]  }
   0x2   :  { %1102 = vset.pattern.permute.xlu0 %v1202_v1  ;;  %1103 = vset.pattern.permute.xlu1 %v1202_v1  ;;  %v1109_v4 = vld [vmem:[%s1564_s1 + $0x8] ss:$16 sps:$4 sm:$0xff]   ;;  %v1110_v5 = vld [vmem:[%s1564_s1 + $0x24] ss:$16 sps:$4 sm:$0xff]   ;;  %v1112_v6 = vld [vmem:[%s1564_s1 + $0x2c] ss:$16 sps:$4 sm:$0xff]  }
   0x3   :  { %119 = vmatprep.subr.bf16.mxu0 %v1104_v0  ;;  %160 = vmatprep.subr.bf16.mxu1 %v1106_v2  ;;  %v1114_v7 = vld [vmem:[%s1564_s1 + $0x20] ss:$16 sps:$4 sm:$0xff]   ;;  %v1115_v8 = vld [vmem:[%s1564_s1 + $0x28] ss:$16 sps:$4 sm:$0xff]   ;;  %v1116_v9 = vld [vmem:[%s1564_s1 + $0x44] ss:$16 sps:$4 sm:$0xff]  }
   0x4   :  { %120 = vmatpush1.bf16.msra.mxu0 %v1108_v3  ;;  %161 = vmatpush1.bf16.msra.mxu1 %v1109_v4  ;;  %v1118_v10 = vld [vmem:[%s1564_s1 + $0x4c] ss:$16 sps:$4 sm:$0xff]   ;;  %v1120_v11 = vld [vmem:[%s1564_s1 + $0x40] ss:$16 sps:$4 sm:$0xff]   ;;  %v1121_v12 = vld [vmem:[%s1564_s1 + $0x48] ss:$16 sps:$4 sm:$0xff]  }
   0x5   :  { %121 = vmatprep.subr.bf16.mxu0 %v1110_v5  ;;  %162 = vmatprep.subr.bf16.mxu1 %v1112_v6  ;;  %v1122_v13 = vld [vmem:[%s1564_s1 + $0x64] ss:$16 sps:$4 sm:$0xff]   ;;  %v1124_v14 = vld [vmem:[%s1564_s1 + $0x6c] ss:$16 sps:$4 sm:$0xff]   ;;  %v1126_v15 = vld [vmem:[%s1564_s1 + $0x60] ss:$16 sps:$4 sm:$0xff]  }
   0x6   :  { %v1127_v16 = vld [vmem:[%s1564_s1 + $0x68] ss:$16 sps:$4 sm:$0xff]   ;;  %v1130_v17 = vld [vmem:[%s1564_s1 + $0x84] ss:$16 sps:$4 sm:$0xff]   ;;  %v1133_v18 = vld [vmem:[%s1564_s1 + $0x8c] ss:$16 sps:$4 sm:$0xff]  }
   0x7   :  { %v18_v19 = vld [vmem:[%s1565_s0] sm:$0xf]  ;;  %v1131_v21 = vld [vmem:[%s1564_s1 + $0x88] ss:$16 sps:$4 sm:$0xff]   ;;  %v1136_v22 = vld [vmem:[%s1564_s1 + $0xa4] ss:$16 sps:$4 sm:$0xff]  }
   0x8   :  { %122 = vmatpush1.bf16.msra.mxu0 %v1114_v7  ;;  %163 = vmatpush1.bf16.msra.mxu1 %v1115_v8  ;;  %v1128_v20 = vld [vmem:[%s1564_s1 + $0x80] ss:$16 sps:$4 sm:$0xff]   ;;  %v1139_v23 = vld [vmem:[%s1564_s1 + $0xac] ss:$16 sps:$4 sm:$0xff]   ;;  %v1137_v25 = vld [vmem:[%s1564_s1 + $0xa8] ss:$16 sps:$4 sm:$0xff]  }
   0x9   :  { %123 = vmatprep.subr.bf16.mxu0 %v1116_v9  ;;  %164 = vmatprep.subr.bf16.mxu1 %v1118_v10  ;;  %v1134_v24 = vld [vmem:[%s1564_s1 + $0xa0] ss:$16 sps:$4 sm:$0xff]   ;;  %v1142_v26 = vld [vmem:[%s1564_s1 + $0xc4] ss:$16 sps:$4 sm:$0xff]   ;;  %v1145_v27 = vld [vmem:[%s1564_s1 + $0xcc] ss:$16 sps:$4 sm:$0xff]  }
   0xa   :  { %v1140_v28 = vld [vmem:[%s1564_s1 + $0xc0] ss:$16 sps:$4 sm:$0xff]   ;;  %v1143_v29 = vld [vmem:[%s1564_s1 + $0xc8] ss:$16 sps:$4 sm:$0xff]   ;;  %v1148_v30 = vld [vmem:[%s1564_s1 + $0xe4] ss:$16 sps:$4 sm:$0xff]  }
   0xb   :  { %v1151_v31 = vld [vmem:[%s1564_s1 + $0xec] ss:$16 sps:$4 sm:$0xff]   ;;  %v1146_v32 = vld [vmem:[%s1564_s1 + $0xe0] ss:$16 sps:$4 sm:$0xff]   ;;  %v1149_v33 = vld [vmem:[%s1564_s1 + $0xe8] ss:$16 sps:$4 sm:$0xff]  }
   0xc   :  { %124 = vmatpush1.bf16.msra.mxu0 %v1120_v11  ;;  %165 = vmatpush1.bf16.msra.mxu1 %v1121_v12  ;;  %v1154_v34 = vld [vmem:[%s1564_s1 + $0x104] ss:$16 sps:$4 sm:$0xff]   ;;  %v1157_v35 = vld [vmem:[%s1564_s1 + $0x10c] ss:$16 sps:$4 sm:$0xff]   ;;  %v1152_v37 = vld [vmem:[%s1564_s1 + $0x100] ss:$16 sps:$4 sm:$0xff]  }
   0xd   :  { %125 = vmatprep.subr.bf16.mxu0 %v1122_v13  ;;  %166 = vmatprep.subr.bf16.mxu1 %v1124_v14  ;;  %v980_v36 = vld [vmem:[%s1565_s0 + $0x4] sm:$0xf]  ;;  %v1155_v38 = vld [vmem:[%s1564_s1 + $0x108] ss:$16 sps:$4 sm:$0xff]   ;;  %v1163_v40 = vld [vmem:[%s1564_s1 + $0x12c] ss:$16 sps:$4 sm:$0xff]  }
   0xe   :  { %v1160_v39 = vld [vmem:[%s1564_s1 + $0x124] ss:$16 sps:$4 sm:$0xff]   ;;  %v1158_v41 = vld [vmem:[%s1564_s1 + $0x120] ss:$16 sps:$4 sm:$0xff]   ;;  %v1161_v42 = vld [vmem:[%s1564_s1 + $0x128] ss:$16 sps:$4 sm:$0xff]  }
   0xf   :  { %v1166_v43 = vld [vmem:[%s1564_s1 + $0x144] ss:$16 sps:$4 sm:$0xff]   ;;  %v1169_v44 = vld [vmem:[%s1564_s1 + $0x14c] ss:$16 sps:$4 sm:$0xff]   ;;  %v1164_v45 = vld [vmem:[%s1564_s1 + $0x140] ss:$16 sps:$4 sm:$0xff]  }
  0x10   :  { %126 = vmatpush1.bf16.msra.mxu0 %v1126_v15  ;;  %167 = vmatpush1.bf16.msra.mxu1 %v1127_v16  ;;  %v1167_v46 = vld [vmem:[%s1564_s1 + $0x148] ss:$16 sps:$4 sm:$0xff]   ;;  %v1172_v47 = vld [vmem:[%s1564_s1 + $0x164] ss:$16 sps:$4 sm:$0xff]   ;;  %v1175_v48 = vld [vmem:[%s1564_s1 + $0x16c] ss:$16 sps:$4 sm:$0xff]  }
  0x11   :  { %303 = vmatprep.subr.bf16.mxu0 %v1130_v17  ;;  %344 = vmatprep.subr.bf16.mxu1 %v1133_v18  ;;  %v1170_v49 = vld [vmem:[%s1564_s1 + $0x160] ss:$16 sps:$4 sm:$0xff]   ;;  %v1173_v50 = vld [vmem:[%s1564_s1 + $0x168] ss:$16 sps:$4 sm:$0xff]   ;;  %v1178_v51 = vld [vmem:[%s1564_s1 + $0x184] ss:$16 sps:$4 sm:$0xff]  }
  0x12   :  { %v1181_v52 = vld [vmem:[%s1564_s1 + $0x18c] ss:$16 sps:$4 sm:$0xff]   ;;  %v1015_v53 = vld [vmem:[%s1565_s0 + $0x8] sm:$0xf]  ;;  %v1176_v54 = vld [vmem:[%s1564_s1 + $0x180] ss:$16 sps:$4 sm:$0xff]  }
  0x13   :  { %978 = vmatmul.mubr.msk.bf16.vlgmr.msra.gmra.mrb[0].mxu0 %vm115_vm0, %v18_v19  ;;  %979 = vmatmul.mubr.msk.bf16.vlgmr.msra.gmra.mrb[0].mxu1 %vm115_vm0, %v18_v19  ;;  %v1179_v55 = vld [vmem:[%s1564_s1 + $0x188] ss:$16 sps:$4 sm:$0xff]   ;;  %v1184_v56 = vld [vmem:[%s1564_s1 + $0x1a4] ss:$16 sps:$4 sm:$0xff]   ;;  %v1187_v57 = vld [vmem:[%s1564_s1 + $0x1ac] ss:$16 sps:$4 sm:$0xff]  }
  0x14   :  { %304 = vmatpush1.bf16.msra.mxu0 %v1128_v20  ;;  %345 = vmatpush1.bf16.msra.mxu1 %v1131_v21  ;;  %v1182_v58 = vld [vmem:[%s1564_s1 + $0x1a0] ss:$16 sps:$4 sm:$0xff]   ;;  %v1185_v59 = vld [vmem:[%s1564_s1 + $0x1a8] ss:$16 sps:$4 sm:$0xff]   ;;  %v1190_v60 = vld [vmem:[%s1564_s1 + $0x1c4] ss:$16 sps:$4 sm:$0xff]  }
  0x15   :  { %305 = vmatprep.subr.bf16.mxu0 %v1136_v22  ;;  %346 = vmatprep.subr.bf16.mxu1 %v1139_v23  ;;  %v1193_v61 = vld [vmem:[%s1564_s1 + $0x1cc] ss:$16 sps:$4 sm:$0xff]   ;;  %v1188_v62 = vld [vmem:[%s1564_s1 + $0x1c0] ss:$16 sps:$4 sm:$0xff]   ;;  %v1191_v63 = vld [vmem:[%s1564_s1 + $0x1c8] ss:$16 sps:$4 sm:$0xff]  }
  0x16   :  { %335 = vmatprep.mubr.bf16.mxu0 %v1202_v1  ;;  %376 = vmatprep.mubr.bf16.mxu1 %v1202_v1  ;;  %v1196_v0 = vld [vmem:[%s1564_s1 + $0x1e4] ss:$16 sps:$4 sm:$0xff]   ;;  %v1194_v2 = vld [vmem:[%s1564_s1 + $0x1e0] ss:$16 sps:$4 sm:$0xff]   ;;  %v1197_v3 = vld [vmem:[%s1564_s1 + $0x1e8] ss:$16 sps:$4 sm:$0xff]  }
  0x17   :  { %v1050_v4 = vld [vmem:[%s1565_s0 + $0xc] sm:$0xf] }
  0x18   :  { %306 = vmatpush1.bf16.msra.mxu0 %v1134_v24  ;;  %347 = vmatpush1.bf16.msra.mxu1 %v1137_v25 }
  0x19   :  { %307 = vmatprep.subr.bf16.mxu0 %v1142_v26  ;;  %348 = vmatprep.subr.bf16.mxu1 %v1145_v27 }
  0x1c   :  { %308 = vmatpush1.bf16.msra.mxu0 %v1140_v28  ;;  %349 = vmatpush1.bf16.msra.mxu1 %v1143_v29 }
  0x1d   :  { %309 = vmatprep.subr.bf16.mxu0 %v1148_v30  ;;  %350 = vmatprep.subr.bf16.mxu1 %v1151_v31 }
  0x20   :  { %310 = vmatpush1.bf16.msra.mxu0 %v1146_v32  ;;  %351 = vmatpush1.bf16.msra.mxu1 %v1149_v33 }
  0x21   :  { %487 = vmatprep.subr.bf16.mxu0 %v1154_v34  ;;  %528 = vmatprep.subr.bf16.mxu1 %v1157_v35 }
  0x23   :  { %1013 = vmatmul.mubr.msk.bf16.vlgmr.msra.gmra.mrb[4].mxu0 %vm115_vm0, %v980_v36  ;;  %1014 = vmatmul.mubr.msk.bf16.vlgmr.msra.gmra.mrb[4].mxu1 %vm115_vm0, %v980_v36 }
  0x24   :  { %488 = vmatpush1.bf16.msra.mxu0 %v1152_v37  ;;  %529 = vmatpush1.bf16.msra.mxu1 %v1155_v38 }
  0x25   :  { %489 = vmatprep.subr.bf16.mxu0 %v1160_v39  ;;  %530 = vmatprep.subr.bf16.mxu1 %v1163_v40 }
  0x26   :  { %519 = vmatprep.mubr.bf16.mxu0 %v1202_v1  ;;  %560 = vmatprep.mubr.bf16.mxu1 %v1202_v1 }
  0x28   :  { %490 = vmatpush1.bf16.msra.mxu0 %v1158_v41  ;;  %531 = vmatpush1.bf16.msra.mxu1 %v1161_v42 }
  0x29   :  { %491 = vmatprep.subr.bf16.mxu0 %v1166_v43  ;;  %532 = vmatprep.subr.bf16.mxu1 %v1169_v44 }
  0x2c   :  { %492 = vmatpush1.bf16.msra.mxu0 %v1164_v45  ;;  %533 = vmatpush1.bf16.msra.mxu1 %v1167_v46 }
  0x2d   :  { %493 = vmatprep.subr.bf16.mxu0 %v1172_v47  ;;  %534 = vmatprep.subr.bf16.mxu1 %v1175_v48 }
  0x30   :  { %494 = vmatpush1.bf16.msra.mxu0 %v1170_v49  ;;  %535 = vmatpush1.bf16.msra.mxu1 %v1173_v50 }
  0x31   :  { %671 = vmatprep.subr.bf16.mxu0 %v1178_v51  ;;  %712 = vmatprep.subr.bf16.mxu1 %v1181_v52 }
  0x33   :  { %1048 = vmatmul.mubr.msk.bf16.vlgmr.msra.gmra.mrb[8].mxu0 %vm115_vm0, %v1015_v53  ;;  %1049 = vmatmul.mubr.msk.bf16.vlgmr.msra.gmra.mrb[8].mxu1 %vm115_vm0, %v1015_v53 }
  0x34   :  { %672 = vmatpush1.bf16.msra.mxu0 %v1176_v54  ;;  %713 = vmatpush1.bf16.msra.mxu1 %v1179_v55 }
  0x35   :  { %673 = vmatprep.subr.bf16.mxu0 %v1184_v56  ;;  %714 = vmatprep.subr.bf16.mxu1 %v1187_v57 }
  0x36   :  { %703 = vmatprep.mubr.bf16.mxu0 %v1202_v1  ;;  %744 = vmatprep.mubr.bf16.mxu1 %v1202_v1  ;;  %v1199_v1 = vld [vmem:[%s1564_s1 + $0x1ec] ss:$16 sps:$4 sm:$0xff]  }
  0x38   :  { %674 = vmatpush1.bf16.msra.mxu0 %v1182_v58  ;;  %715 = vmatpush1.bf16.msra.mxu1 %v1185_v59 }
  0x39   :  { %675 = vmatprep.subr.bf16.mxu0 %v1190_v60  ;;  %716 = vmatprep.subr.bf16.mxu1 %v1193_v61 }
  0x3c   :  { %676 = vmatpush1.bf16.msra.mxu0 %v1188_v62  ;;  %717 = vmatpush1.bf16.msra.mxu1 %v1191_v63 }
  0x3d   :  { %677 = vmatprep.subr.bf16.mxu0 %v1196_v0  ;;  %718 = vmatprep.subr.bf16.mxu1 %v1199_v1 }
  0x40   :  { %678 = vmatpush1.bf16.msra.mxu0 %v1194_v2  ;;  %719 = vmatpush1.bf16.msra.mxu1 %v1197_v3 }
  0x43   :  { %1083 = vmatmul.mubr.msk.bf16.vlgmr.msra.gmra.mrb[12].mxu0 %vm115_vm0, %v1050_v4  ;;  %1084 = vmatmul.mubr.msk.bf16.vlgmr.msra.gmra.mrb[12].mxu1 %vm115_vm0, %v1050_v4 }
  0xe6   :  { %v1450_v5 = vpop.f32.mrb[0].mxu0  ;;  %v1452_v6 = vpop.f32.mrb[0].mxu1 }
  0xe7   :  { %v777_v7 = vmul.f32 %v1450_v5, %v1450_v5  ;;  %v1456_v8 = vpop.f32.mrb[1].mxu0  ;;  %v1458_v9 = vpop.f32.mrb[1].mxu1  ;;  %v779_v12 = vmul.f32 %v1452_v6, %v1452_v6 }
  0xe8   :  { %v753_v10 = vadd.f32 %v1456_v8, %v1450_v5  ;;  %v778_v11 = vmul.f32 %v1456_v8, %v1456_v8  ;;  %v157_v13 = vpop.f32.mrb[2].mxu0  ;;  %v198_v14 = vpop.f32.mrb[2].mxu1  ;;  %v780_v18 = vmul.f32 %v1458_v9, %v1458_v9 }
  0xe9   :  { %v158_v15 = vpop.f32.mrb[3].mxu0  ;;  %v199_v16 = vpop.f32.mrb[3].mxu1 }
  0xea   :  { %v754_v17 = vadd.f32 %v753_v10, %v1452_v6  ;;  %v781_v19 = vadd.f32 %v778_v11, %v777_v7 }
  0xec   :  { %v755_v20 = vadd.f32 %v754_v17, %v1458_v9  ;;  %v782_v21 = vadd.f32 %v781_v19, %v779_v12 }
  0xee   :  { %756 = vadd.xlane.f32.xlu0 %v755_v20  ;;  %v783_v22 = vadd.f32 %v782_v21, %v780_v18 }
  0xf0   :  { %784 = vadd.xlane.f32.xlu1 %v783_v22 }
  0xf6   :  { %v1470_v23 = vpop.f32.mrb[4].mxu0  ;;  %v1472_v24 = vpop.f32.mrb[4].mxu1 }
  0xf7   :  { %v787_v25 = vmul.f32 %v1470_v23, %v1470_v23  ;;  %v1476_v26 = vpop.f32.mrb[5].mxu0  ;;  %v1478_v27 = vpop.f32.mrb[5].mxu1  ;;  %v789_v30 = vmul.f32 %v1472_v24, %v1472_v24 }
  0xf8   :  { %v759_v28 = vadd.f32 %v1476_v26, %v1470_v23  ;;  %v788_v29 = vmul.f32 %v1476_v26, %v1476_v26  ;;  %v341_v31 = vpop.f32.mrb[6].mxu0  ;;  %v382_v32 = vpop.f32.mrb[6].mxu1  ;;  %v790_v36 = vmul.f32 %v1478_v27, %v1478_v27 }
  0xf9   :  { %v342_v33 = vpop.f32.mrb[7].mxu0  ;;  %v383_v34 = vpop.f32.mrb[7].mxu1 }
  0xfa   :  { %v760_v35 = vadd.f32 %v759_v28, %v1472_v24  ;;  %v791_v37 = vadd.f32 %v788_v29, %v787_v25 }
  0xfc   :  { %v761_v38 = vadd.f32 %v760_v35, %v1478_v27  ;;  %v792_v39 = vadd.f32 %v791_v37, %v789_v30 }
  0xfe   :  { %762 = vadd.xlane.f32.xlu0 %v761_v38  ;;  %v793_v40 = vadd.f32 %v792_v39, %v790_v36 }
 0x102   :  { %794 = vadd.xlane.f32.xlu0 %v793_v40  ;;  %v821_v40 = vld [vmem:[%s1566_s2] sm:$0xff] }
 0x106   :  { %v1490_v41 = vpop.f32.mrb[8].mxu0  ;;  %v1492_v42 = vpop.f32.mrb[8].mxu1 }
 0x107   :  { %v797_v43 = vmul.f32 %v1490_v41, %v1490_v41  ;;  %v1496_v44 = vpop.f32.mrb[9].mxu0  ;;  %v1498_v45 = vpop.f32.mrb[9].mxu1  ;;  %v799_v48 = vmul.f32 %v1492_v42, %v1492_v42 }
 0x108   :  { %v765_v46 = vadd.f32 %v1496_v44, %v1490_v41  ;;  %v798_v47 = vmul.f32 %v1496_v44, %v1496_v44  ;;  %v525_v49 = vpop.f32.mrb[10].mxu0  ;;  %v566_v50 = vpop.f32.mrb[10].mxu1  ;;  %v800_v54 = vmul.f32 %v1498_v45, %v1498_v45 }
 0x109   :  { %v526_v51 = vpop.f32.mrb[11].mxu0  ;;  %v567_v52 = vpop.f32.mrb[11].mxu1 }
 0x10a   :  { %v766_v53 = vadd.f32 %v765_v46, %v1492_v42  ;;  %v801_v55 = vadd.f32 %v798_v47, %v797_v43  ;;  %v825_v47 = vld [vmem:[%s1567_s3] sm:$0xff] }
 0x10c   :  { %v767_v56 = vadd.f32 %v766_v53, %v1498_v45  ;;  %v802_v57 = vadd.f32 %v801_v55, %v799_v48 }
 0x10e   :  { %768 = vadd.xlane.f32.xlu1 %v767_v56  ;;  %v803_v58 = vadd.f32 %v802_v57, %v800_v54 }
 0x110   :  { %804 = vadd.xlane.f32.xlu0 %v803_v58 }
 0x116   :  { %v1510_v59 = vpop.f32.mrb[12].mxu0  ;;  %v1512_v60 = vpop.f32.mrb[12].mxu1 }
 0x117   :  { %v807_v61 = vmul.f32 %v1510_v59, %v1510_v59  ;;  %v707_v62 = vpop.f32.mrb[13].mxu0  ;;  %v748_v63 = vpop.f32.mrb[13].mxu1  ;;  %v809_v0 = vmul.f32 %v1512_v60, %v1512_v60 }
 0x118   :  { %v771_v1 = vadd.f32 %v707_v62, %v1510_v59  ;;  %v808_v2 = vmul.f32 %v707_v62, %v707_v62  ;;  %v709_v3 = vpop.f32.mrb[14].mxu0  ;;  %v750_v4 = vpop.f32.mrb[14].mxu1  ;;  %v810_v14 = vmul.f32 %v748_v63, %v748_v63 }
 0x119   :  { %v710_v7 = vpop.f32.mrb[15].mxu0  ;;  %v751_v10 = vpop.f32.mrb[15].mxu1 }
 0x11a   :  { %v772_v11 = vadd.f32 %v771_v1, %v1512_v60  ;;  %v811_v12 = vadd.f32 %v808_v2, %v807_v61 }
 0x11c   :  { %v773_v13 = vadd.f32 %v772_v11, %v748_v63  ;;  %v812_v15 = vadd.f32 %v811_v12, %v809_v0 }
 0x11e   :  { %774 = vadd.xlane.f32.xlu1 %v773_v13  ;;  %v813_v16 = vadd.f32 %v812_v15, %v810_v14 }
 0x122   :  { %814 = vadd.xlane.f32.xlu1 %v813_v16 }
 0x17b   :  { %v757_v17 = vpop.xlane.xlu0 %756 }
 0x17d   :  { %v785_v19 = vpop.xlane.xlu1 %784 }
 0x18b   :  { %v763_v18 = vpop.xlane.xlu0 %762 }
 0x18c   :  { %v764_v22 = vadd.f32 %v763_v18, %v757_v17 }
 0x18f   :  { %v795_v20 = vpop.xlane.xlu0 %794 }
 0x190   :  { %v796_v30 = vadd.f32 %v795_v20, %v785_v19 }
 0x19b   :  { %v769_v21 = vpop.xlane.xlu1 %768 }
 0x19c   :  { %v770_v25 = vadd.f32 %v769_v21, %v764_v22 }
 0x19d   :  { %v805_v28 = vpop.xlane.xlu0 %804 }
 0x19e   :  { %v806_v32 = vadd.f32 %v805_v28, %v796_v30 }
 0x1ab   :  { %v775_v29 = vpop.xlane.xlu1 %774 }
 0x1ac   :  { %v776_v31 = vadd.f32 %v775_v29, %v770_v25 }
 0x1ae   :  { %v817_v33 = vmul.f32 0.00048828125, %v776_v31 }
 0x1af   :  { %v815_v34 = vpop.xlane.xlu1 %814 }
 0x1b0   :  { %v816_v35 = vadd.f32 %v815_v34, %v806_v32  ;;  %v819_v36 = vmul.f32 %v817_v33, %v817_v33 }
 0x1b2   :  { %v818_v37 = vmul.f32 0.00048828125, %v816_v35 }
 0x1b4   :  { %v820_v38 = vsub.f32 %v818_v37, %v819_v36 }
 0x1b6   :  { %v822_v39 = vadd.f32 1e-05, %v820_v38 }
 0x1b8   :  { %1200 = vrsqrt.f32 %v822_v39 }
 0x1c2   :  { %v1201_v43 = vpop.eup %1200 }
 0x1c3   :  { %v824_v46 = vmul.f32 %v1201_v43, %v821_v40 }
 0x1c5   :  { %830 = vperm.xlu0 %1102, %v824_v46   ;;  %v826_v48 = vmul.f32 %v824_v46, %v817_v33 }
 0x1c7   :  { %v827_v49 = vsub.f32 %v825_v47, %v826_v48 }
 0x1c9   :  { %839 = vperm.xlu1 %1103, %v827_v49  }
 0x244   :  { %v831_v50 = vpop.permute.xlu0 %830 }
 0x245   :  { %v833_v51 = vmul.f32 %v831_v50, %v1450_v5  ;;  %v834_v52 = vmul.f32 %v831_v50, %v1456_v8  ;;  %v835_v53 = vmul.f32 %v831_v50, %v1452_v6  ;;  %v836_v54 = vmul.f32 %v831_v50, %v1458_v9 }
 0x246   :  { %v868_v55 = vmul.f32 %v831_v50, %v1470_v23  ;;  %v869_v56 = vmul.f32 %v831_v50, %v1476_v26  ;;  %v870_v57 = vmul.f32 %v831_v50, %v1472_v24  ;;  %v871_v58 = vmul.f32 %v831_v50, %v1478_v27 }
 0x247   :  { %v898_v61 = vmul.f32 %v831_v50, %v1490_v41  ;;  %v899_v0 = vmul.f32 %v831_v50, %v1496_v44  ;;  %v900_v5 = vmul.f32 %v831_v50, %v1492_v42  ;;  %v901_v8 = vmul.f32 %v831_v50, %v1498_v45 }
 0x248   :  { %v928_v6 = vmul.f32 %v831_v50, %v1510_v59  ;;  %v929_v1 = vmul.f32 %v831_v50, %v707_v62  ;;  %v930_v9 = vmul.f32 %v831_v50, %v1512_v60  ;;  %v931_v23 = vmul.f32 %v831_v50, %v748_v63  ;;  %v840_v2 = vpop.permute.xlu1 %839 }
 0x249   :  { %v842_v26 = vadd.f32 %v840_v2, %v833_v51  ;;  %v843_v3 = vadd.f32 %v840_v2, %v834_v52  ;;  %v844_v24 = vadd.f32 %v840_v2, %v835_v53  ;;  %v845_v4 = vadd.f32 %v840_v2, %v836_v54 }
 0x24a   :  { %v872_v27 = vadd.f32 %v868_v55, %v840_v2  ;;  %v873_v7 = vadd.f32 %v869_v56, %v840_v2  ;;  %v874_v41 = vadd.f32 %v870_v57, %v840_v2  ;;  %v875_v10 = vadd.f32 %v871_v58, %v840_v2 }
 0x24b   :  { %v846_v44 = vmax.f32 %v842_v26, 0.0  ;;  %v847_v11 = vmax.f32 %v843_v3, 0.0  ;;  %v848_v42 = vmax.f32 %v844_v24, 0.0  ;;  %v849_v12 = vmax.f32 %v845_v4, 0.0 }
 0x24c   :  { %v876_v45 = vmax.f32 %v872_v27, 0.0  ;;  %v877_v13 = vmax.f32 %v873_v7, 0.0  ;;  %v878_v59 = vmax.f32 %v874_v41, 0.0  ;;  %v879_v62 = vmax.f32 %v875_v10, 0.0 }
 0x24d   :  { %v1093_v14 = vpack.c.bf16 %v847_v11, %v846_v44  ;;  %v1094_v60 = vpack.c.bf16 %v849_v12, %v848_v42  ;;  %v902_v63 = vadd.f32 %v898_v61, %v840_v2  ;;  %v903_v15 = vadd.f32 %v899_v0, %v840_v2 }
 0x24e   :  { %v1095_v16 = vpack.c.bf16 %v877_v13, %v876_v45  ;;  %v1096_v17 = vpack.c.bf16 %v879_v62, %v878_v59  ;;  %v904_v18 = vadd.f32 %v900_v5, %v840_v2  ;;  %v905_v19 = vadd.f32 %v901_v8, %v840_v2 }
 0x24f   :  { %866 = vst [vmem:[%s1568_s4] sm:$0xff] %v1093_v14  ;;  %867 = vst [vmem:[%s1568_s4 + $0x8] sm:$0xff] %v1094_v60  ;;  %v906_v20 = vmax.f32 %v902_v63, 0.0  ;;  %v907_v21 = vmax.f32 %v903_v15, 0.0  ;;  %v932_v22 = vadd.f32 %v928_v6, %v840_v2  ;;  %v933_v25 = vadd.f32 %v929_v1, %v840_v2 }
 0x250   :  { %896 = vst [vmem:[%s1568_s4 + $0x10] sm:$0xff] %v1095_v16  ;;  %897 = vst [vmem:[%s1568_s4 + $0x18] sm:$0xff] %v1096_v17  ;;  %v908_v28 = vmax.f32 %v904_v18, 0.0  ;;  %v909_v29 = vmax.f32 %v905_v19, 0.0  ;;  %v934_v30 = vadd.f32 %v930_v9, %v840_v2  ;;  %v935_v31 = vadd.f32 %v931_v23, %v840_v2 }
 0x251   :  { %v1097_v32 = vpack.c.bf16 %v907_v21, %v906_v20  ;;  %v936_v33 = vmax.f32 %v932_v22, 0.0  ;;  %v937_v34 = vmax.f32 %v933_v25, 0.0 }
 0x252   :  { %v1098_v35 = vpack.c.bf16 %v909_v29, %v908_v28  ;;  %v938_v36 = vmax.f32 %v934_v30, 0.0  ;;  %v939_v37 = vmax.f32 %v935_v31, 0.0 }
 0x253   :  { %926 = vst [vmem:[%s1568_s4 + $0x20] sm:$0xff] %v1097_v32  ;;  %v1099_v38 = vpack.c.bf16 %v937_v34, %v936_v33 }
 0x254   :  { %927 = vst [vmem:[%s1568_s4 + $0x28] sm:$0xff] %v1098_v35  ;;  %v1100_v39 = vpack.c.bf16 %v939_v37, %v938_v36 }
 0x255   :  { %956 = vst [vmem:[%s1568_s4 + $0x30] sm:$0xff] %v1099_v38 }
 0x256   :  { %957 = vst [vmem:[%s1568_s4 + $0x38] sm:$0xff] %v1100_v39 }

// kernel: generator_forward.9
= control target key start
LH: loop header
LB: loop body
LE: loop exit
PB: predicated region body
PF: predicated region fallthrough
CT: control target
= control target key end

     0   :  { %s1008_s9 = smov 0   ;;  %s1010_s10 = smov 0   ;;  %s1127_s0 = inlined_call_operand.vmem [shape: bf16[4,8,32], index: 0, kind: input, shape index: {}]   ;;  %s1128_s1 = inlined_call_operand.vmem [shape: bf16[4,32,2048], index: 1, kind: input, shape index: {}]   ;;  %s1129_s2 = inlined_call_operand.vmem [shape: f32[4,8,2048], index: 2, kind: output, shape index: {}]  }
   0x1   :  { %s1012_s11 = smov 0  }
   0x2 LB: > { %s24_s12 = sadd.s32 1, %s986_s10  ;;  %p861_p0 = scmp.ge.s32.totalorder %s990_s11, 1  ;;  %s990_s11 = sphi %s1012_s11, %s12_s11   ;;  %s986_s10 = sphi %s1010_s10, %s1131_s10   ;;  %s982_s9 = sphi %s1008_s9, %s1130_s9  }
   0x3   : > { %p26_p1 = scmp.ge.s32.totalorder %s24_s12, 4  ;;  %p142_p2 = scmp.lt.s32.totalorder %s990_s11, 5 }
   0x5   : > { %s1133_s12 = smov (%p26_p1, %s24_s12), 0  ;;  %p143_p3 = pnand %p861_p0, %p142_p2 }
   0x6   : > { %p176_p4 = scmp.lt.s32.totalorder (!%p143_p3), %s982_s9, 3  ;;  %v992_v0 = vmov (!%p143_p3), 0   ;;  %vm394_vm0 = vcmask (!%p143_p3), 261120  }
   0x7   : > { %146 = sbr.rel (%p143_p3) target bundleno = 280 (0x118), region = 28  ;;  %430 = vmatprep.mubr.bf16.mxu0 (!%p143_p3), %v992_v0  ;;  %471 = vmatprep.mubr.bf16.mxu1 (!%p143_p3), %v992_v0 }
   0xe   : > { %s1135_s9 = smov (!%p176_p4, %s982_s9), 3 }
   0xf   : > { %s909_s13 = sshll.u32 %s1135_s9, 8  ;;  %s862_s17 = sshll.u32 %s1135_s9, 2 }
  0x10   : > { %s1034_s16 = scalar_lea.vmem %s1128_s1, %s909_s13  ;;  %s179_s20 = scalar_lea.vmem %s1127_s0, %s862_s17 }
  0x11   : > { %v202_v1 = vld [vmem:[%s1034_s16] sm:$0xff]  ;;  %v203_v3 = vld [vmem:[%s1034_s16 + $0x8] sm:$0xff]  ;;  %v204_v15 = vld [vmem:[%s1034_s16 + $0x10] sm:$0xff]  ;;  %s910_s21 = sshll.u32 %s1135_s9, 7 }
  0x12   : > { %v210_v2 = vld [vmem:[%s1034_s16 + $0x40] sm:$0xff]  ;;  %v211_v5 = vld [vmem:[%s1034_s16 + $0x48] sm:$0xff]  ;;  %v212_v16 = vld [vmem:[%s1034_s16 + $0x50] sm:$0xff]  ;;  %s1100_s24 = scalar_lea.vmem %s1129_s2, %s910_s21 }
  0x13   : > { %v868_v4 = vcombine.high %v202_v1, %v210_v2  ;;  %v867_v6 = vcombine.low %v202_v1, %v210_v2  ;;  %v218_v7 = vld [vmem:[%s1034_s16 + $0x80] sm:$0xff]  ;;  %v870_v9 = vcombine.high %v203_v3, %v211_v5  ;;  %v869_v10 = vcombine.low %v203_v3, %v211_v5  ;;  %v219_v12 = vld [vmem:[%s1034_s16 + $0x88] sm:$0xff]  ;;  %v205_v17 = vld [vmem:[%s1034_s16 + $0x18] sm:$0xff] }
  0x14   : > { %v226_v8 = vld [vmem:[%s1034_s16 + $0xc0] sm:$0xff]  ;;  %v227_v13 = vld [vmem:[%s1034_s16 + $0xc8] sm:$0xff]  ;;  %v213_v19 = vld [vmem:[%s1034_s16 + $0x58] sm:$0xff]  ;;  %v872_v21 = vcombine.high %v204_v15, %v212_v16  ;;  %v871_v28 = vcombine.low %v204_v15, %v212_v16 }
  0x15   : > { %v884_v11 = vcombine.high %v218_v7, %v226_v8  ;;  %398 = vmatprep.subr.bf16.mxu0 %v868_v4  ;;  %v886_v14 = vcombine.high %v219_v12, %v227_v13  ;;  %439 = vmatprep.subr.bf16.mxu1 %v870_v9  ;;  %v883_v18 = vcombine.low %v218_v7, %v226_v8  ;;  %v220_v23 = vld [vmem:[%s1034_s16 + $0x90] sm:$0xff]  ;;  %v221_v25 = vld [vmem:[%s1034_s16 + $0x98] sm:$0xff]  ;;  %v1056_v27 = vld [vmem:[%s179_s20] sm:$0xf] }
  0x16   : > { %399 = vmatpush1.bf16.msra.mxu0 %v867_v6  ;;  %440 = vmatpush1.bf16.msra.mxu1 %v869_v10  ;;  %v885_v20 = vcombine.low %v219_v12, %v227_v13  ;;  %v874_v22 = vcombine.high %v205_v17, %v213_v19  ;;  %v228_v24 = vld [vmem:[%s1034_s16 + $0xd0] sm:$0xff]  ;;  %v229_v26 = vld [vmem:[%s1034_s16 + $0xd8] sm:$0xff]  ;;  %v873_v29 = vcombine.low %v205_v17, %v213_v19  ;;  %v206_v32 = vld [vmem:[%s1034_s16 + $0x20] sm:$0xff] }
  0x17   : > { %400 = vmatprep.subr.bf16.mxu0 %v884_v11  ;;  %441 = vmatprep.subr.bf16.mxu1 %v886_v14  ;;  %v888_v30 = vcombine.high %v220_v23, %v228_v24  ;;  %v890_v31 = vcombine.high %v221_v25, %v229_v26  ;;  %v214_v33 = vld [vmem:[%s1034_s16 + $0x60] sm:$0xff]  ;;  %v207_v34 = vld [vmem:[%s1034_s16 + $0x28] sm:$0xff]  ;;  %v887_v36 = vcombine.low %v220_v23, %v228_v24  ;;  %v208_v48 = vld [vmem:[%s1034_s16 + $0x30] sm:$0xff] }
  0x18   : > { %v215_v35 = vld [vmem:[%s1034_s16 + $0x68] sm:$0xff]  ;;  %v889_v37 = vcombine.low %v221_v25, %v229_v26  ;;  %v876_v38 = vcombine.high %v206_v32, %v214_v33  ;;  %v222_v40 = vld [vmem:[%s1034_s16 + $0xa0] sm:$0xff]  ;;  %v875_v44 = vcombine.low %v206_v32, %v214_v33  ;;  %v216_v49 = vld [vmem:[%s1034_s16 + $0x70] sm:$0xff] }
  0x19   : > { %v878_v39 = vcombine.high %v207_v34, %v215_v35  ;;  %v230_v41 = vld [vmem:[%s1034_s16 + $0xe0] sm:$0xff]  ;;  %v223_v42 = vld [vmem:[%s1034_s16 + $0xa8] sm:$0xff]  ;;  %v877_v45 = vcombine.low %v207_v34, %v215_v35  ;;  %v209_v50 = vld [vmem:[%s1034_s16 + $0x38] sm:$0xff]  ;;  %v880_v54 = vcombine.high %v208_v48, %v216_v49  ;;  %v879_v60 = vcombine.low %v208_v48, %v216_v49 }
  0x1a   : > { %401 = vmatpush1.bf16.msra.mxu0 %v883_v18  ;;  %442 = vmatpush1.bf16.msra.mxu1 %v885_v20  ;;  %v231_v43 = vld [vmem:[%s1034_s16 + $0xe8] sm:$0xff]  ;;  %v892_v46 = vcombine.high %v222_v40, %v230_v41  ;;  %v217_v51 = vld [vmem:[%s1034_s16 + $0x78] sm:$0xff]  ;;  %v891_v52 = vcombine.low %v222_v40, %v230_v41  ;;  %v224_v56 = vld [vmem:[%s1034_s16 + $0xb0] sm:$0xff] }
  0x1b   : > { %480 = vmatprep.subr.bf16.mxu0 %v872_v21  ;;  %521 = vmatprep.subr.bf16.mxu1 %v874_v22  ;;  %v894_v47 = vcombine.high %v223_v42, %v231_v43  ;;  %v893_v53 = vcombine.low %v223_v42, %v231_v43  ;;  %v882_v55 = vcombine.high %v209_v50, %v217_v51  ;;  %v232_v57 = vld [vmem:[%s1034_s16 + $0xf0] sm:$0xff]  ;;  %v225_v58 = vld [vmem:[%s1034_s16 + $0xb8] sm:$0xff] }
  0x1c   : > { %v233_v59 = vld [vmem:[%s1034_s16 + $0xf8] sm:$0xff]  ;;  %v881_v61 = vcombine.low %v209_v50, %v217_v51  ;;  %v896_v62 = vcombine.high %v224_v56, %v232_v57  ;;  %v895_v1 = vcombine.low %v224_v56, %v232_v57 }
  0x1d   : > { %899 = vmatmul.mubr.msk.bf16.vlgmr.msra.gmra.mrb[0].mxu0 %vm394_vm0, %v1056_v27  ;;  %900 = vmatmul.mubr.msk.bf16.vlgmr.msra.gmra.mrb[0].mxu1 %vm394_vm0, %v1056_v27  ;;  %v898_v63 = vcombine.high %v225_v58, %v233_v59  ;;  %v897_v2 = vcombine.low %v225_v58, %v233_v59 }
  0x1e   : > { %481 = vmatpush1.bf16.msra.mxu0 %v871_v28  ;;  %522 = vmatpush1.bf16.msra.mxu1 %v873_v29 }
  0x1f   : > { %482 = vmatprep.subr.bf16.mxu0 %v888_v30  ;;  %523 = vmatprep.subr.bf16.mxu1 %v890_v31 }
  0x20   : > { %512 = vmatprep.mubr.bf16.mxu0 %v992_v0  ;;  %553 = vmatprep.mubr.bf16.mxu1 %v992_v0 }
  0x22   : > { %483 = vmatpush1.bf16.msra.mxu0 %v887_v36  ;;  %524 = vmatpush1.bf16.msra.mxu1 %v889_v37 }
  0x23   : > { %562 = vmatprep.subr.bf16.mxu0 %v876_v38  ;;  %603 = vmatprep.subr.bf16.mxu1 %v878_v39 }
  0x25   : > { %901 = vmatmul.mubr.msk.bf16.vlgmr.msra.gmra.mrb[4].mxu0 %vm394_vm0, %v1056_v27  ;;  %902 = vmatmul.mubr.msk.bf16.vlgmr.msra.gmra.mrb[4].mxu1 %vm394_vm0, %v1056_v27 }
  0x26   : > { %563 = vmatpush1.bf16.msra.mxu0 %v875_v44  ;;  %604 = vmatpush1.bf16.msra.mxu1 %v877_v45 }
  0x27   : > { %564 = vmatprep.subr.bf16.mxu0 %v892_v46  ;;  %605 = vmatprep.subr.bf16.mxu1 %v894_v47 }
  0x28   : > { %594 = vmatprep.mubr.bf16.mxu0 %v992_v0  ;;  %635 = vmatprep.mubr.bf16.mxu1 %v992_v0 }
  0x2a   : > { %565 = vmatpush1.bf16.msra.mxu0 %v891_v52  ;;  %606 = vmatpush1.bf16.msra.mxu1 %v893_v53 }
  0x2b   : > { %644 = vmatprep.subr.bf16.mxu0 %v880_v54  ;;  %685 = vmatprep.subr.bf16.mxu1 %v882_v55 }
  0x2d   : > { %903 = vmatmul.mubr.msk.bf16.vlgmr.msra.gmra.mrb[8].mxu0 %vm394_vm0, %v1056_v27  ;;  %904 = vmatmul.mubr.msk.bf16.vlgmr.msra.gmra.mrb[8].mxu1 %vm394_vm0, %v1056_v27 }
  0x2e   : > { %645 = vmatpush1.bf16.msra.mxu0 %v879_v60  ;;  %686 = vmatpush1.bf16.msra.mxu1 %v881_v61 }
  0x2f   : > { %646 = vmatprep.subr.bf16.mxu0 %v896_v62  ;;  %687 = vmatprep.subr.bf16.mxu1 %v898_v63 }
  0x30   : > { %676 = vmatprep.mubr.bf16.mxu0 %v992_v0  ;;  %717 = vmatprep.mubr.bf16.mxu1 %v992_v0 }
  0x32   : > { %647 = vmatpush1.bf16.msra.mxu0 %v895_v1  ;;  %688 = vmatpush1.bf16.msra.mxu1 %v897_v2 }
  0x35   : > { %905 = vmatmul.mubr.msk.bf16.vlgmr.msra.gmra.mrb[12].mxu0 %vm394_vm0, %v1056_v27  ;;  %906 = vmatmul.mubr.msk.bf16.vlgmr.msra.gmra.mrb[12].mxu1 %vm394_vm0, %v1056_v27 }
  0xf0   : > { %v432_v3 = vpop.f32.mrb[0].mxu0  ;;  %v473_v4 = vpop.f32.mrb[0].mxu1 }
  0xf1   : > { %936 = vtanh.f32 %v432_v3  ;;  %v434_v5 = vpop.f32.mrb[1].mxu0  ;;  %v475_v6 = vpop.f32.mrb[1].mxu1 }
  0xf2   : > { %938 = vtanh.f32 %v473_v4  ;;  %v436_v7 = vpop.f32.mrb[2].mxu0  ;;  %v477_v8 = vpop.f32.mrb[2].mxu1 }
  0xf3   : > { %940 = vtanh.f32 %v434_v5  ;;  %v437_v9 = vpop.f32.mrb[3].mxu0  ;;  %v478_v0 = vpop.f32.mrb[3].mxu1 }
  0xf4   : > { %942 = vtanh.f32 %v475_v6 }
  0xf8   : > { %v514_v10 = vpop.f32.mrb[4].mxu0  ;;  %v555_v11 = vpop.f32.mrb[4].mxu1 }
  0xf9   : > { %944 = vtanh.f32 %v514_v10  ;;  %v516_v12 = vpop.f32.mrb[5].mxu0  ;;  %v557_v13 = vpop.f32.mrb[5].mxu1 }
  0xfa   : > { %946 = vtanh.f32 %v555_v11  ;;  %v518_v14 = vpop.f32.mrb[6].mxu0  ;;  %v559_v16 = vpop.f32.mrb[6].mxu1 }
  0xfb   : > { %v937_v15 = vpop.eup %936  ;;  %948 = vtanh.f32 %v516_v12  ;;  %v519_v17 = vpop.f32.mrb[7].mxu0 }
  0xfc   : > { %v939_v18 = vpop.eup %938  ;;  %742 = vst [vmem:[%s1100_s24] sm:$0xff] %v937_v15  ;;  %950 = vtanh.f32 %v557_v13  ;;  %v560_v19 = vpop.f32.mrb[7].mxu1 }
  0xfd   : > { %v941_v20 = vpop.eup %940  ;;  %744 = vst [vmem:[%s1100_s24 + $0x10] sm:$0xff] %v939_v18 }
  0xfe   : > { %v943_v21 = vpop.eup %942  ;;  %743 = vst [vmem:[%s1100_s24 + $0x8] sm:$0xff] %v941_v20 }
  0xff   : > { %745 = vst [vmem:[%s1100_s24 + $0x18] sm:$0xff] %v943_v21 }
 0x100   : > { %v596_v22 = vpop.f32.mrb[8].mxu0  ;;  %v637_v23 = vpop.f32.mrb[8].mxu1 }
 0x101   : > { %952 = vtanh.f32 %v596_v22  ;;  %v598_v24 = vpop.f32.mrb[9].mxu0  ;;  %v639_v25 = vpop.f32.mrb[9].mxu1 }
 0x102   : > { %954 = vtanh.f32 %v637_v23  ;;  %v600_v26 = vpop.f32.mrb[10].mxu0  ;;  %v641_v28 = vpop.f32.mrb[10].mxu1 }
 0x103   : > { %v945_v27 = vpop.eup %944  ;;  %956 = vtanh.f32 %v598_v24  ;;  %v601_v29 = vpop.f32.mrb[11].mxu0 }
 0x104   : > { %v947_v30 = vpop.eup %946  ;;  %746 = vst [vmem:[%s1100_s24 + $0x20] sm:$0xff] %v945_v27  ;;  %958 = vtanh.f32 %v639_v25  ;;  %v642_v31 = vpop.f32.mrb[11].mxu1 }
 0x105   : > { %v949_v32 = vpop.eup %948  ;;  %748 = vst [vmem:[%s1100_s24 + $0x30] sm:$0xff] %v947_v30 }
 0x106   : > { %v951_v33 = vpop.eup %950  ;;  %747 = vst [vmem:[%s1100_s24 + $0x28] sm:$0xff] %v949_v32 }
 0x107   : > { %749 = vst [vmem:[%s1100_s24 + $0x38] sm:$0xff] %v951_v33 }
 0x108   : > { %v678_v34 = vpop.f32.mrb[12].mxu0  ;;  %v719_v35 = vpop.f32.mrb[12].mxu1 }
 0x109   : > { %960 = vtanh.f32 %v678_v34  ;;  %v680_v36 = vpop.f32.mrb[13].mxu0  ;;  %v721_v37 = vpop.f32.mrb[13].mxu1 }
 0x10a   : > { %962 = vtanh.f32 %v719_v35  ;;  %v682_v38 = vpop.f32.mrb[14].mxu0  ;;  %v723_v40 = vpop.f32.mrb[14].mxu1 }
 0x10b   : > { %v953_v39 = vpop.eup %952  ;;  %964 = vtanh.f32 %v680_v36  ;;  %v683_v41 = vpop.f32.mrb[15].mxu0 }
 0x10c   : > { %v955_v42 = vpop.eup %954  ;;  %750 = vst [vmem:[%s1100_s24 + $0x40] sm:$0xff] %v953_v39  ;;  %966 = vtanh.f32 %v721_v37  ;;  %v724_v43 = vpop.f32.mrb[15].mxu1 }
 0x10d   : > { %v957_v44 = vpop.eup %956  ;;  %752 = vst [vmem:[%s1100_s24 + $0x50] sm:$0xff] %v955_v42 }
 0x10e   : > { %v959_v45 = vpop.eup %958  ;;  %751 = vst [vmem:[%s1100_s24 + $0x48] sm:$0xff] %v957_v44 }
 0x10f   : > { %753 = vst [vmem:[%s1100_s24 + $0x58] sm:$0xff] %v959_v45 }
 0x113   : > { %v961_v46 = vpop.eup %960 }
 0x114   : > { %v963_v47 = vpop.eup %962  ;;  %754 = vst [vmem:[%s1100_s24 + $0x60] sm:$0xff] %v961_v46 }
 0x115   : > { %v965_v48 = vpop.eup %964  ;;  %756 = vst [vmem:[%s1100_s24 + $0x70] sm:$0xff] %v963_v47 }
 0x116   : > { %v967_v49 = vpop.eup %966  ;;  %755 = vst [vmem:[%s1100_s24 + $0x68] sm:$0xff] %v965_v48 }
 0x117   : > { %757 = vst [vmem:[%s1100_s24 + $0x78] sm:$0xff] %v967_v49 }
 0x118 PF: > { %s12_s11 = sadd.s32 1, %s990_s11   ;;  %s1130_s9 = smov %s986_s10 }
 0x119   : > { %p9_p5 = scmp.ge.s32.totalorder %s12_s11, 6   ;;  %s1131_s10 = smov %s1133_s12 }
 0x11b   :  { %11 = sbr.rel (!%p9_p5) target bundleno = 2 (0x2), region = 61 }

</bundles_post_ra>
